<compile_context>
chip_gen: v6e
topology: v6e:2x2x1
jax: 0.10.0
libtpu: 0.0.40
codegen_flags: <defaults>
</compile_context>

<pallas_src>
import jax
import jax.numpy as jnp
from jax.experimental import pallas as pl
from jax.experimental.pallas import tpu as pltpu


def _summarize_kernel(x_ref, we_ref, be_ref, ws_ref, bs_ref, out_ref):
    # x_ref:  (TM, Fp)        row tile of flattened paragraph features
    # we_ref: (Fp, Ep)        embed weight (resident across grid steps)
    # be_ref: (1, Ep)         embed bias
    # ws_ref: (1, Ep)         score weight as a row vector
    # bs_ref: (1,)  SMEM      score bias scalar
    # out_ref:(TM//128, 128)  lane-dense sigmoid scores for this row tile
    x = x_ref[...]
    # embed_model(paragraphs): linear + tanh  (MXU matmul, f32 accumulate)
    emb = jnp.tanh(
        jnp.dot(x, we_ref[...], preferred_element_type=jnp.float32) + be_ref[...]
    )
    # score_layer: Linear(dim_size, 1) as VPU multiply + lane reduction
    # (avoids a 1-wide MXU pass), then sigmoid.
    logits = jnp.sum(emb * ws_ref[...], axis=-1, keepdims=True) + bs_ref[0]
    scores = jax.nn.sigmoid(logits)                       # (TM, 1)
    out_ref[...] = scores.reshape(out_ref.shape).astype(out_ref.dtype)


def _round_up(x, m):
    return ((x + m - 1) // m) * m


def _pad_axis(a, axis, target):
    pad = target - a.shape[axis]
    if pad == 0:
        return a
    widths = [(0, 0)] * a.ndim
    widths[axis] = (0, pad)
    return jnp.pad(a, widths)


def _choose_row_tile(feat_pad, embed_pad, n_rows):
    # Keep (double-buffered x tile) + (f32 emb intermediate) well under the
    # most restrictive scoped-VMEM default (v5e: 16 MiB; v7x: 64 MiB physical)
    # without having to raise vmem_limit_bytes.
    budget_bytes = 12 * 1024 * 1024
    per_row_bytes = (2 * feat_pad + embed_pad) * 4
    tm = budget_bytes // max(per_row_bytes, 1)
    tm = max(1024, (tm // 1024) * 1024)   # multiple of 1024 -> lane-dense out blocks
    tm = min(tm, 4096)
    # Don't pad rows far beyond the actual problem size.
    tm = min(tm, _round_up(max(n_rows, 1), 1024))
    return tm


def summarize_forward(paragraphs, w_embed, b_embed, w_score, b_score):
    """paragraphs: (batch, doc_size, feat_dim) float32
    returns scores: (batch, doc_size) float32"""
    batch_size, doc_size, feat_dim = paragraphs.shape
    embed_dim = w_embed.shape[1]
    n_rows = batch_size * doc_size

    # Pad contraction / embed dims to full 128-lane width; pad rows to TM.
    feat_pad = _round_up(feat_dim, 128)
    embed_pad = _round_up(embed_dim, 128)
    tm = _choose_row_tile(feat_pad, embed_pad, n_rows)
    n_pad = _round_up(n_rows, tm)

    x = paragraphs.reshape(n_rows, feat_dim)
    x = _pad_axis(_pad_axis(x, 1, feat_pad), 0, n_pad)
    we = _pad_axis(_pad_axis(w_embed, 0, feat_pad), 1, embed_pad)
    be = _pad_axis(b_embed.reshape(1, embed_dim), 1, embed_pad)
    ws = _pad_axis(w_score.reshape(1, embed_dim), 1, embed_pad)  # (dim,1) -> row
    bs = b_score.reshape(1)

    grid = (n_pad // tm,)
    flops = 2 * n_pad * feat_pad * embed_pad + 2 * n_pad * embed_pad
    transcendentals = n_pad * embed_pad + n_pad
    bytes_accessed = 4 * (n_pad * feat_pad + feat_pad * embed_pad
                          + 2 * embed_pad + _round_up(n_pad, 128))

    out = pl.pallas_call(
        _summarize_kernel,
        out_shape=jax.ShapeDtypeStruct((n_pad // 128, 128), jnp.float32),
        grid_spec=pltpu.PrefetchScalarGridSpec(
            num_scalar_prefetch=0,
            grid=grid,
            in_specs=[
                pl.BlockSpec((tm, feat_pad), lambda i: (i, 0)),        # pipelined rows
                pl.BlockSpec((feat_pad, embed_pad), lambda i: (0, 0)),  # resident weight
                pl.BlockSpec((1, embed_pad), lambda i: (0, 0)),         # resident bias
                pl.BlockSpec((1, embed_pad), lambda i: (0, 0)),         # resident score w
                pl.BlockSpec(memory_space=pltpu.MemorySpace.SMEM),      # score bias scalar
            ],
            out_specs=pl.BlockSpec((tm // 128, 128), lambda i: (i, 0)),
        ),
        compiler_params=pltpu.CompilerParams(
            dimension_semantics=("parallel",),   # row tiles independent -> 2 TCs on v7x
        ),
        cost_estimate=pl.CostEstimate(
            flops=int(flops),
            transcendentals=int(transcendentals),
            bytes_accessed=int(bytes_accessed),
        ),
    )(x, we, be, ws, bs)

    # Undo the lane-dense / padded layout: (n_pad//128, 128) -> (batch, doc).
    return out.reshape(n_pad)[:n_rows].reshape(batch_size, doc_size)


def _reference(paragraphs, w_embed, b_embed, w_score, b_score):
    b, d, f = paragraphs.shape
    x = paragraphs.reshape(-1, f)
    emb = jnp.tanh(x @ w_embed + b_embed)
    logits = emb @ w_score + b_score
    return jax.nn.sigmoid(logits).reshape(b, d)


if __name__ == "__main__":
    # Small shapes: batch=2, doc_size=8, feat_dim=32, dim_size(embed_dim)=32
    batch, doc, feat, dim = 2, 8, 32, 32

    key = jax.random.PRNGKey(0)
    k_x, k_we, k_be, k_ws, k_bs = jax.random.split(key, 5)

    paragraphs = jax.random.normal(k_x, (batch, doc, feat), dtype=jnp.float32)

    # Deterministic parameter init (uniform, akin to nn.Linear default ranges)
    w_embed = jax.random.uniform(k_we, (feat, dim), jnp.float32, -0.1, 0.1)
    b_embed = jax.random.uniform(k_be, (dim,), jnp.float32, -0.1, 0.1)
    w_score = jax.random.uniform(k_ws, (dim, 1), jnp.float32, -0.1, 0.1)
    b_score = jax.random.uniform(k_bs, (1,), jnp.float32, -0.1, 0.1)

    scores = summarize_forward(paragraphs, w_embed, b_embed, w_score, b_score)
    scores = jax.block_until_ready(scores)

    ref = _reference(paragraphs, w_embed, b_embed, w_score, b_score)
    assert scores.shape == (batch, doc), scores.shape
    assert jnp.allclose(scores, ref, atol=1e-5, rtol=1e-5), "mismatch vs reference"

    print("KERNEL_OK")
</pallas_src>

<mosaic_0001>
module attributes {stable_mosaic.version = 11 : i64} {
  func.func @_summarize_kernel(%arg0: i32, %arg1: memref<1024x128xf32, #tpu.memory_space<vmem>>, %arg2: memref<128x128xf32, #tpu.memory_space<vmem>>, %arg3: memref<1x128xf32, #tpu.memory_space<vmem>>, %arg4: memref<1x128xf32, #tpu.memory_space<vmem>>, %arg5: memref<1xf32, #tpu.memory_space<smem>>, %arg6: memref<8x128xf32, #tpu.memory_space<vmem>>) attributes {dimension_semantics = [#tpu.dimension_semantics<parallel>], iteration_bounds = array<i64: 1>, scalar_prefetch = 0 : i64, scratch_operands = 0 : i64, tpu.core_type = #tpu.core_type<tc>, window_params = [{transform_indices = @transform_0, window_bounds = array<i64: 1024, 128>}, {pipeline_mode = #tpu.pipeline_mode<synchronous>, transform_indices = @transform_1, window_bounds = array<i64: 128, 128>}, {pipeline_mode = #tpu.pipeline_mode<synchronous>, transform_indices = @transform_2, window_bounds = array<i64: 1, 128>}, {pipeline_mode = #tpu.pipeline_mode<synchronous>, transform_indices = @transform_3, window_bounds = array<i64: 1, 128>}, {transform_indices = @transform_4, window_bounds = array<i64: 1>}, {transform_indices = @transform_5, window_bounds = array<i64: 8, 128>}]} {
    %c0 = arith.constant 0 : index
    %c0_0 = arith.constant 0 : index
    %0 = vector.load %arg1[%c0, %c0_0] : memref<1024x128xf32, #tpu.memory_space<vmem>>, vector<1024x128xf32>
    %c0_1 = arith.constant 0 : index
    %c0_2 = arith.constant 0 : index
    %1 = vector.load %arg2[%c0_1, %c0_2] : memref<128x128xf32, #tpu.memory_space<vmem>>, vector<128x128xf32>
    %cst = arith.constant dense<0.000000e+00> : vector<1024x128xf32>
    %2 = tpu.matmul %0, %1, %cst {dimension_numbers = #tpu.dot_dimension_numbers<[1], [0], [0], [1], [0, 0, 1, 1], [], []>} : vector<1024x128xf32>, vector<128x128xf32>, vector<1024x128xf32> -> vector<1024x128xf32>
    %c0_3 = arith.constant 0 : index
    %c0_4 = arith.constant 0 : index
    %3 = vector.load %arg3[%c0_3, %c0_4] : memref<1x128xf32, #tpu.memory_space<vmem>>, vector<1x128xf32>
    %4 = vector.broadcast %3 : vector<1x128xf32> to vector<1024x128xf32>
    %5 = arith.addf %2, %4 : vector<1024x128xf32>
    %6 = math.tanh %5 : vector<1024x128xf32>
    %c0_5 = arith.constant 0 : index
    %c0_6 = arith.constant 0 : index
    %7 = vector.load %arg4[%c0_5, %c0_6] : memref<1x128xf32, #tpu.memory_space<vmem>>, vector<1x128xf32>
    %8 = vector.broadcast %7 : vector<1x128xf32> to vector<1024x128xf32>
    %9 = arith.mulf %6, %8 : vector<1024x128xf32>
    %cst_7 = arith.constant dense<0.000000e+00> : vector<1024xf32>
    %10 = vector.multi_reduction <add>, %9, %cst_7 [1] : vector<1024x128xf32> to vector<1024xf32>
    %11 = vector.shape_cast %10 : vector<1024xf32> to vector<1024x1xf32>
    %c0_8 = arith.constant 0 : index
    %12 = memref.load %arg5[%c0_8] : memref<1xf32, #tpu.memory_space<smem>>
    %13 = vector.broadcast %12 : f32 to vector<1024x1xf32>
    %14 = arith.addf %11, %13 : vector<1024x1xf32>
    %15 = arith.negf %14 : vector<1024x1xf32>
    %16 = math.exp %15 : vector<1024x1xf32>
    %cst_9 = arith.constant 1.000000e+00 : f32
    %17 = vector.broadcast %cst_9 : f32 to vector<1024x1xf32>
    %18 = arith.addf %17, %16 : vector<1024x1xf32>
    %19 = arith.divf %17, %18 : vector<1024x1xf32>
    %20 = vector.shape_cast %19 : vector<1024x1xf32> to vector<8x128xf32>
    %c0_10 = arith.constant 0 : index
    %c0_11 = arith.constant 0 : index
    %21 = vector.load %arg6[%c0_10, %c0_11] : memref<8x128xf32, #tpu.memory_space<vmem>>, vector<8x128xf32>
    tpu.vector_store %arg6[%c0_10, %c0_11], %20 {strides = array<i32>} : memref<8x128xf32, #tpu.memory_space<vmem>>, vector<8x128xf32>,
    return
  }
  func.func @transform_0(%arg0: i32) -> (i32, i32) {
    %c0_i32 = arith.constant 0 : i32
    %c0_i32_0 = arith.constant 0 : i32
    return %arg0, %c0_i32 : i32, i32
  }
  func.func @transform_1(%arg0: i32) -> (i32, i32) {
    %c0_i32 = arith.constant 0 : i32
    %c0_i32_0 = arith.constant 0 : i32
    %c0_i32_1 = arith.constant 0 : i32
    return %c0_i32, %c0_i32_0 : i32, i32
  }
  func.func @transform_2(%arg0: i32) -> (i32, i32) {
    %c0_i32 = arith.constant 0 : i32
    %c0_i32_0 = arith.constant 0 : i32
    %c0_i32_1 = arith.constant 0 : i32
    return %c0_i32, %c0_i32_0 : i32, i32
  }
  func.func @transform_3(%arg0: i32) -> (i32, i32) {
    %c0_i32 = arith.constant 0 : i32
    %c0_i32_0 = arith.constant 0 : i32
    %c0_i32_1 = arith.constant 0 : i32
    return %c0_i32, %c0_i32_0 : i32, i32
  }
  func.func @transform_4(%arg0: i32) -> i32 {
    %c0_i32 = arith.constant 0 : i32
    %c0_i32_0 = arith.constant 0 : i32
    return %c0_i32 : i32
  }
  func.func @transform_5(%arg0: i32) -> (i32, i32) {
    %c0_i32 = arith.constant 0 : i32
    %c0_i32_0 = arith.constant 0 : i32
    return %arg0, %c0_i32 : i32, i32
  }
}

</mosaic_0001>

<bundles_post_ra>
// kernel: tpu_custom_call.1
= control target key start
LH: loop header
LB: loop body
LE: loop exit
PB: predicated region body
PF: predicated region fallthrough
CT: control target
= control target key end

     0   :  { %11 = vsyncpa [#allocation4], 0  ;;  %s5964_s0 = inlined_call_operand.hbm [shape: f32[1024,128], index: 0, kind: input, shape index: {}]   ;;  %s5965_s1 = inlined_call_operand.hbm [shape: f32[128,128], index: 1, kind: input, shape index: {}]   ;;  %s5966_s2 = inlined_call_operand.vmem [shape: f32[1,128], index: 2, kind: input, shape index: {}]   ;;  %s5967_s3 = inlined_call_operand.vmem [shape: f32[1,128], index: 3, kind: input, shape index: {}]   ;;  %s5968_s4 = inlined_call_operand.<no memory space> [shape: f32[1], index: 4, kind: input, shape index: {}]   ;;  %s5969_s5 = inlined_call_operand.hbm [shape: f32[8,128], index: 5, kind: output, shape index: {}]  }
   0x1   :  { %12 = vsyncpa [#allocation7], 0 }
   0x2   :  { %13 = vsyncpa [#allocation5], 0  ;;  %s4519_s18 = smov [#allocation3]  }
   0x3   :  { %s19_s19 = sshll.u32 %s4519_s18, 4  ;;  %s20_s19 = int_to_ptr.vmem [resolvable:$true] %s19_s19 }
   0x4   :  { %s4461_s20 = scalar_lea.vmem %s20_s19, 16384  ;;  %p4466_p1 = scmp.lt.s32.totalorder %s20_s19, %s20_s19 }
   0x5   :  { %p4462_p0 = scmp.ne.s32.totalorder %s20_s19, %s4461_s20  ;;  %p4467_p2 = scmp.lt.s32.totalorder %s4461_s20, %s4461_s20 }
   0x7   :  { %p4468_p3 = por %p4467_p2, %p4466_p1 }
   0x9   :  { %p4469_p4 = pnand %p4468_p3, %p4462_p0 }
   0xb   :  { %4472 = shalt.err (!%p4469_p4)
}
   0xc   :  { %s4520_s21 = smov 128   ;;  %s4521_s22 = smov 8  }
   0xd   :  { %25 = dma.hbm_to_vmem [thread:$0]  %s5964_s0, 16384, %s20_s19, [#allocation4], %s4520_s21, %s4520_s21, %s4521_s22  }
   0xe   :  { %s4522_s25 = smov [#allocation6]  }
   0xf   :  { %s31_s26 = sshll.u32 %s4522_s25, 4  ;;  %s32_s26 = int_to_ptr.vmem [resolvable:$true] %s31_s26 }
  0x10   :  { %s4481_s27 = scalar_lea.vmem %s32_s26, 2048  ;;  %p4486_p6 = scmp.lt.s32.totalorder %s32_s26, %s32_s26 }
  0x11   :  { %p4482_p5 = scmp.ne.s32.totalorder %s32_s26, %s4481_s27  ;;  %p4487_p7 = scmp.lt.s32.totalorder %s4481_s27, %s4481_s27 }
  0x13   :  { %p4488_p8 = por %p4487_p7, %p4486_p6 }
  0x15   :  { %p4489_p9 = pnand %p4488_p8, %p4482_p5 }
  0x17   :  { %4492 = shalt.err (!%p4489_p9)
}
  0x18   :  { %37 = dma.hbm_to_vmem [thread:$0]  %s5965_s1, 2048, %s32_s26, [#allocation7], %s4520_s21, %s4520_s21, %s4521_s22  }
  0x19   :  { %4513 = dma.done.wait [#allocation4], 16384  }
  0x1a   :  { %4514 = vsyncadd [#allocation4], 4294950912 }
  0x1b   :  { %4515 = dma.done.wait [#allocation7], 2048  }
  0x1c   :  { %4516 = vsyncadd [#allocation7], 4294965248  ;;  %v193_v0 = vld [vmem:[#allocation6 + $0x78] sm:$0xff]  ;;  %v192_v1 = vld [vmem:[#allocation6 + $0x70] sm:$0xff]  ;;  %vm2462_vm0 = vcmask 130112   ;;  %vm2469_vm1 = vcmask 195712  }
  0x1d   :  { %3421 = vmatprep.subr.mxu0 %v193_v0  ;;  %3645 = vmatprep.subr.mxu1 %v193_v0  ;;  %v191_v2 = vld [vmem:[#allocation6 + $0x68] sm:$0xff]  ;;  %v190_v3 = vld [vmem:[#allocation6 + $0x60] sm:$0xff]  ;;  %v189_v4 = vld [vmem:[#allocation6 + $0x58] sm:$0xff]  ;;  %vm2476_vm2 = vcmask 261312   ;;  %vm2483_vm3 = vcmask 326912   ;;  %vm2490_vm4 = vcmask 392512  }
  0x1e   :  { %3422 = vmatpush3.msra.mxu0 %v193_v0  ;;  %3661 = vmatpush3.msra.mxu1 %v193_v0  ;;  %v188_v5 = vld [vmem:[#allocation6 + $0x50] sm:$0xff]  ;;  %v187_v6 = vld [vmem:[#allocation6 + $0x48] sm:$0xff]  ;;  %v186_v7 = vld [vmem:[#allocation6 + $0x40] sm:$0xff]  ;;  %vm2497_vm5 = vcmask 458112   ;;  %vm2504_vm6 = vcmask 523712   ;;  %vm2511_vm7 = vcmask 589312  }
  0x1f   :  { %3423 = vmatprep.subr.mxu0 %v192_v1  ;;  %3646 = vmatprep.subr.mxu1 %v192_v1  ;;  %v185_v8 = vld [vmem:[#allocation6 + $0x38] sm:$0xff]  ;;  %v184_v9 = vld [vmem:[#allocation6 + $0x30] sm:$0xff]  ;;  %v183_v10 = vld [vmem:[#allocation6 + $0x28] sm:$0xff]  ;;  %vm2518_vm8 = vcmask 654912   ;;  %vm2525_vm9 = vcmask 720512   ;;  %vm2532_vm10 = vcmask 786112  }
  0x20   :  { %3424 = vmatpush3.msra.mxu0 %v192_v1  ;;  %3662 = vmatpush3.msra.mxu1 %v192_v1  ;;  %v182_v11 = vld [vmem:[#allocation6 + $0x20] sm:$0xff]  ;;  %v181_v12 = vld [vmem:[#allocation6 + $0x18] sm:$0xff]  ;;  %v180_v13 = vld [vmem:[#allocation6 + $0x10] sm:$0xff]  ;;  %vm2539_vm11 = vcmask 851712   ;;  %vm2546_vm12 = vcmask 917312   ;;  %vm2553_vm13 = vcmask 982912  }
  0x21   :  { %3425 = vmatprep.subr.mxu0 %v191_v2  ;;  %3647 = vmatprep.subr.mxu1 %v191_v2  ;;  %v179_v14 = vld [vmem:[#allocation6 + $0x8] sm:$0xff]  ;;  %v178_v15 = vld [vmem:[#allocation6] sm:$0xff]  ;;  %v52_v20 = vld [vmem:[#allocation3 + $0x10] sm:$0xff]  ;;  %vm2560_vm14 = vcmask 1048512   ;;  %vm3115_vm15 = vcmask 1041409  }
  0x22   :  { %3426 = vmatpush3.msra.mxu0 %v191_v2  ;;  %3663 = vmatpush3.msra.mxu1 %v191_v2  ;;  %v50_v16 = vld [vmem:[#allocation3] sm:$0xff]  ;;  %v51_v18 = vld [vmem:[#allocation3 + $0x8] sm:$0xff]  ;;  %v116_v21 = vld [vmem:[#allocation3 + $0x210] sm:$0xff] }
  0x23   :  { %3427 = vmatprep.subr.mxu0 %v190_v3  ;;  %3648 = vmatprep.subr.mxu1 %v190_v3  ;;  %v114_v17 = vld [vmem:[#allocation3 + $0x200] sm:$0xff]  ;;  %v115_v19 = vld [vmem:[#allocation3 + $0x208] sm:$0xff]  ;;  %v53_v22 = vld [vmem:[#allocation3 + $0x18] sm:$0xff] }
  0x24   :  { %3428 = vmatpush3.msra.mxu0 %v190_v3  ;;  %3664 = vmatpush3.msra.mxu1 %v190_v3  ;;  %v117_v23 = vld [vmem:[#allocation3 + $0x218] sm:$0xff]  ;;  %v118_v24 = vld [vmem:[#allocation3 + $0x220] sm:$0xff]  ;;  %v119_v26 = vld [vmem:[#allocation3 + $0x228] sm:$0xff] }
  0x25   :  { %3429 = vmatprep.subr.mxu0 %v189_v4  ;;  %3649 = vmatprep.subr.mxu1 %v189_v4  ;;  %v54_v25 = vld [vmem:[#allocation3 + $0x20] sm:$0xff]  ;;  %v55_v27 = vld [vmem:[#allocation3 + $0x28] sm:$0xff]  ;;  %v120_v28 = vld [vmem:[#allocation3 + $0x230] sm:$0xff] }
  0x26   :  { %3430 = vmatpush3.msra.mxu0 %v189_v4  ;;  %3665 = vmatpush3.msra.mxu1 %v189_v4  ;;  %v56_v29 = vld [vmem:[#allocation3 + $0x30] sm:$0xff]  ;;  %v121_v30 = vld [vmem:[#allocation3 + $0x238] sm:$0xff]  ;;  %v58_v32 = vld [vmem:[#allocation3 + $0x40] sm:$0xff] }
  0x27   :  { %3431 = vmatprep.subr.mxu0 %v188_v5  ;;  %3650 = vmatprep.subr.mxu1 %v188_v5  ;;  %v57_v31 = vld [vmem:[#allocation3 + $0x38] sm:$0xff]  ;;  %v122_v33 = vld [vmem:[#allocation3 + $0x240] sm:$0xff]  ;;  %v59_v34 = vld [vmem:[#allocation3 + $0x48] sm:$0xff] }
  0x28   :  { %3432 = vmatpush3.msra.mxu0 %v188_v5  ;;  %3666 = vmatpush3.msra.mxu1 %v188_v5  ;;  %v123_v35 = vld [vmem:[#allocation3 + $0x248] sm:$0xff]  ;;  %v60_v36 = vld [vmem:[#allocation3 + $0x50] sm:$0xff]  ;;  %v61_v38 = vld [vmem:[#allocation3 + $0x58] sm:$0xff] }
  0x29   :  { %3433 = vmatprep.subr.mxu0 %v187_v6  ;;  %3651 = vmatprep.subr.mxu1 %v187_v6  ;;  %v124_v37 = vld [vmem:[#allocation3 + $0x250] sm:$0xff]  ;;  %v125_v39 = vld [vmem:[#allocation3 + $0x258] sm:$0xff]  ;;  %v62_v40 = vld [vmem:[#allocation3 + $0x60] sm:$0xff] }
  0x2a   :  { %3434 = vmatpush3.msra.mxu0 %v187_v6  ;;  %3667 = vmatpush3.msra.mxu1 %v187_v6  ;;  %v126_v41 = vld [vmem:[#allocation3 + $0x260] sm:$0xff]  ;;  %v63_v42 = vld [vmem:[#allocation3 + $0x68] sm:$0xff]  ;;  %v64_v44 = vld [vmem:[#allocation3 + $0x70] sm:$0xff] }
  0x2b   :  { %3435 = vmatprep.subr.mxu0 %v186_v7  ;;  %3652 = vmatprep.subr.mxu1 %v186_v7  ;;  %v127_v43 = vld [vmem:[#allocation3 + $0x268] sm:$0xff]  ;;  %v128_v45 = vld [vmem:[#allocation3 + $0x270] sm:$0xff]  ;;  %v65_v46 = vld [vmem:[#allocation3 + $0x78] sm:$0xff] }
  0x2c   :  { %3436 = vmatpush3.msra.mxu0 %v186_v7  ;;  %3668 = vmatpush3.msra.mxu1 %v186_v7  ;;  %v129_v47 = vld [vmem:[#allocation3 + $0x278] sm:$0xff]  ;;  %v66_v48 = vld [vmem:[#allocation3 + $0x80] sm:$0xff]  ;;  %v67_v50 = vld [vmem:[#allocation3 + $0x88] sm:$0xff] }
  0x2d   :  { %3437 = vmatprep.subr.mxu0 %v185_v8  ;;  %3653 = vmatprep.subr.mxu1 %v185_v8  ;;  %v130_v49 = vld [vmem:[#allocation3 + $0x280] sm:$0xff]  ;;  %v131_v51 = vld [vmem:[#allocation3 + $0x288] sm:$0xff]  ;;  %v68_v52 = vld [vmem:[#allocation3 + $0x90] sm:$0xff] }
  0x2e   :  { %3438 = vmatpush3.msra.mxu0 %v185_v8  ;;  %3669 = vmatpush3.msra.mxu1 %v185_v8  ;;  %v132_v53 = vld [vmem:[#allocation3 + $0x290] sm:$0xff]  ;;  %v69_v54 = vld [vmem:[#allocation3 + $0x98] sm:$0xff]  ;;  %v70_v56 = vld [vmem:[#allocation3 + $0xa0] sm:$0xff] }
  0x2f   :  { %3439 = vmatprep.subr.mxu0 %v184_v9  ;;  %3654 = vmatprep.subr.mxu1 %v184_v9  ;;  %v133_v55 = vld [vmem:[#allocation3 + $0x298] sm:$0xff]  ;;  %v134_v57 = vld [vmem:[#allocation3 + $0x2a0] sm:$0xff]  ;;  %v71_v58 = vld [vmem:[#allocation3 + $0xa8] sm:$0xff] }
  0x30   :  { %3440 = vmatpush3.msra.mxu0 %v184_v9  ;;  %3670 = vmatpush3.msra.mxu1 %v184_v9  ;;  %v135_v59 = vld [vmem:[#allocation3 + $0x2a8] sm:$0xff]  ;;  %v72_v60 = vld [vmem:[#allocation3 + $0xb0] sm:$0xff]  ;;  %v73_v62 = vld [vmem:[#allocation3 + $0xb8] sm:$0xff] }
  0x31   :  { %3441 = vmatprep.subr.mxu0 %v183_v10  ;;  %3655 = vmatprep.subr.mxu1 %v183_v10  ;;  %v136_v61 = vld [vmem:[#allocation3 + $0x2b0] sm:$0xff]  ;;  %v137_v63 = vld [vmem:[#allocation3 + $0x2b8] sm:$0xff]  ;;  %v74_v0 = vld [vmem:[#allocation3 + $0xc0] sm:$0xff] }
  0x32   :  { %3442 = vmatpush3.msra.mxu0 %v183_v10  ;;  %3671 = vmatpush3.msra.mxu1 %v183_v10  ;;  %v138_v1 = vld [vmem:[#allocation3 + $0x2c0] sm:$0xff]  ;;  %v75_v2 = vld [vmem:[#allocation3 + $0xc8] sm:$0xff]  ;;  %v76_v4 = vld [vmem:[#allocation3 + $0xd0] sm:$0xff] }
  0x33   :  { %3443 = vmatprep.subr.mxu0 %v182_v11  ;;  %3656 = vmatprep.subr.mxu1 %v182_v11  ;;  %v139_v3 = vld [vmem:[#allocation3 + $0x2c8] sm:$0xff]  ;;  %v140_v5 = vld [vmem:[#allocation3 + $0x2d0] sm:$0xff]  ;;  %v77_v6 = vld [vmem:[#allocation3 + $0xd8] sm:$0xff] }
  0x34   :  { %3444 = vmatpush3.msra.mxu0 %v182_v11  ;;  %3672 = vmatpush3.msra.mxu1 %v182_v11  ;;  %v141_v7 = vld [vmem:[#allocation3 + $0x2d8] sm:$0xff]  ;;  %v78_v8 = vld [vmem:[#allocation3 + $0xe0] sm:$0xff]  ;;  %v79_v10 = vld [vmem:[#allocation3 + $0xe8] sm:$0xff] }
  0x35   :  { %3445 = vmatprep.subr.mxu0 %v181_v12  ;;  %3657 = vmatprep.subr.mxu1 %v181_v12  ;;  %v142_v9 = vld [vmem:[#allocation3 + $0x2e0] sm:$0xff]  ;;  %v143_v11 = vld [vmem:[#allocation3 + $0x2e8] sm:$0xff] }
  0x36   :  { %3446 = vmatpush3.msra.mxu0 %v181_v12  ;;  %3673 = vmatpush3.msra.mxu1 %v181_v12  ;;  %v80_v12 = vld [vmem:[#allocation3 + $0xf0] sm:$0xff] }
  0x37   :  { %3447 = vmatprep.subr.mxu0 %v180_v13  ;;  %3658 = vmatprep.subr.mxu1 %v180_v13 }
  0x38   :  { %3448 = vmatpush3.msra.mxu0 %v180_v13  ;;  %3674 = vmatpush3.msra.mxu1 %v180_v13  ;;  %v144_v13 = vld [vmem:[#allocation3 + $0x2f0] sm:$0xff] }
  0x39   :  { %3449 = vmatprep.subr.mxu0 %v179_v14  ;;  %3659 = vmatprep.subr.mxu1 %v179_v14 }
  0x3a   :  { %3450 = vmatpush3.msra.mxu0 %v179_v14  ;;  %3675 = vmatpush3.msra.mxu1 %v179_v14  ;;  %v81_v14 = vld [vmem:[#allocation3 + $0xf8] sm:$0xff] }
  0x3b   :  { %3451 = vmatprep.subr.mxu0 %v178_v15  ;;  %3660 = vmatprep.subr.mxu1 %v178_v15 }
  0x3c   :  { %3452 = vmatpush3.msra.mxu0 %v178_v15  ;;  %3676 = vmatpush3.msra.mxu1 %v178_v15  ;;  %v145_v15 = vld [vmem:[#allocation3 + $0x2f8] sm:$0xff] }
  0x3d   :  { %3453 = vmatprep.mubr.f32.mxu0 %v50_v16  ;;  %3549 = vmatprep.mubr.f32.mxu1 %v114_v17  ;;  %v82_v16 = vld [vmem:[#allocation3 + $0x100] sm:$0xff] }
  0x3e   :  { %3454 = vmatmul.mubr.f32.vlgmr.msra.gmra.mxu0 %v51_v18  ;;  %3550 = vmatmul.mubr.f32.vlgmr.msra.gmra.mxu1 %v115_v19  ;;  %v146_v17 = vld [vmem:[#allocation3 + $0x300] sm:$0xff]  ;;  %v83_v18 = vld [vmem:[#allocation3 + $0x108] sm:$0xff] }
  0x3f   :  { %3456 = vmatprep.mubr.f32.mxu0 %v52_v20  ;;  %3552 = vmatprep.mubr.f32.mxu1 %v116_v21  ;;  %v147_v19 = vld [vmem:[#allocation3 + $0x308] sm:$0xff]  ;;  %v84_v20 = vld [vmem:[#allocation3 + $0x110] sm:$0xff] }
  0x40   :  { %v148_v21 = vld [vmem:[#allocation3 + $0x310] sm:$0xff] }
  0x42   :  { %3457 = vmatmul.mubr.f32.gmra.mxu0 %v53_v22  ;;  %3553 = vmatmul.mubr.f32.gmra.mxu1 %v117_v23  ;;  %v85_v22 = vld [vmem:[#allocation3 + $0x118] sm:$0xff] }
  0x43   :  { %3555 = vmatprep.mubr.f32.mxu1 %v118_v24  ;;  %3459 = vmatprep.mubr.f32.mxu0 %v54_v25  ;;  %v149_v23 = vld [vmem:[#allocation3 + $0x318] sm:$0xff]  ;;  %v86_v24 = vld [vmem:[#allocation3 + $0x120] sm:$0xff] }
  0x44   :  { %v150_v25 = vld [vmem:[#allocation3 + $0x320] sm:$0xff] }
  0x46   :  { %3556 = vmatmul.mubr.f32.gmra.mxu1 %v119_v26  ;;  %3460 = vmatmul.mubr.f32.gmra.mxu0 %v55_v27  ;;  %v87_v26 = vld [vmem:[#allocation3 + $0x128] sm:$0xff] }
  0x47   :  { %3558 = vmatprep.mubr.f32.mxu1 %v120_v28  ;;  %3462 = vmatprep.mubr.f32.mxu0 %v56_v29  ;;  %v151_v27 = vld [vmem:[#allocation3 + $0x328] sm:$0xff]  ;;  %v88_v28 = vld [vmem:[#allocation3 + $0x130] sm:$0xff] }
  0x48   :  { %v152_v29 = vld [vmem:[#allocation3 + $0x330] sm:$0xff] }
  0x4a   :  { %3559 = vmatmul.mubr.f32.gmra.mxu1 %v121_v30  ;;  %3463 = vmatmul.mubr.f32.gmra.mxu0 %v57_v31  ;;  %v89_v30 = vld [vmem:[#allocation3 + $0x138] sm:$0xff] }
  0x4b   :  { %3465 = vmatprep.mubr.f32.mxu0 %v58_v32  ;;  %3561 = vmatprep.mubr.f32.mxu1 %v122_v33  ;;  %v153_v31 = vld [vmem:[#allocation3 + $0x338] sm:$0xff]  ;;  %v90_v32 = vld [vmem:[#allocation3 + $0x140] sm:$0xff] }
  0x4c   :  { %v154_v33 = vld [vmem:[#allocation3 + $0x340] sm:$0xff] }
  0x4e   :  { %3466 = vmatmul.mubr.f32.gmra.mxu0 %v59_v34  ;;  %3562 = vmatmul.mubr.f32.gmra.mxu1 %v123_v35  ;;  %v91_v34 = vld [vmem:[#allocation3 + $0x148] sm:$0xff] }
  0x4f   :  { %3468 = vmatprep.mubr.f32.mxu0 %v60_v36  ;;  %3564 = vmatprep.mubr.f32.mxu1 %v124_v37  ;;  %v155_v35 = vld [vmem:[#allocation3 + $0x348] sm:$0xff]  ;;  %v92_v36 = vld [vmem:[#allocation3 + $0x150] sm:$0xff] }
  0x50   :  { %v156_v37 = vld [vmem:[#allocation3 + $0x350] sm:$0xff] }
  0x52   :  { %3469 = vmatmul.mubr.f32.gmra.mxu0 %v61_v38  ;;  %3565 = vmatmul.mubr.f32.gmra.mxu1 %v125_v39  ;;  %v93_v38 = vld [vmem:[#allocation3 + $0x158] sm:$0xff] }
  0x53   :  { %3471 = vmatprep.mubr.f32.mxu0 %v62_v40  ;;  %3567 = vmatprep.mubr.f32.mxu1 %v126_v41  ;;  %v157_v39 = vld [vmem:[#allocation3 + $0x358] sm:$0xff]  ;;  %v94_v40 = vld [vmem:[#allocation3 + $0x160] sm:$0xff] }
  0x54   :  { %v158_v41 = vld [vmem:[#allocation3 + $0x360] sm:$0xff] }
  0x56   :  { %3472 = vmatmul.mubr.f32.gmra.mxu0 %v63_v42  ;;  %3568 = vmatmul.mubr.f32.gmra.mxu1 %v127_v43  ;;  %v95_v42 = vld [vmem:[#allocation3 + $0x168] sm:$0xff] }
  0x57   :  { %3474 = vmatprep.mubr.f32.mxu0 %v64_v44  ;;  %3570 = vmatprep.mubr.f32.mxu1 %v128_v45  ;;  %v159_v43 = vld [vmem:[#allocation3 + $0x368] sm:$0xff]  ;;  %v96_v44 = vld [vmem:[#allocation3 + $0x170] sm:$0xff] }
  0x58   :  { %v160_v45 = vld [vmem:[#allocation3 + $0x370] sm:$0xff] }
  0x5a   :  { %3475 = vmatmul.mubr.f32.gmra.mxu0 %v65_v46  ;;  %3571 = vmatmul.mubr.f32.gmra.mxu1 %v129_v47  ;;  %v97_v46 = vld [vmem:[#allocation3 + $0x178] sm:$0xff] }
  0x5b   :  { %3477 = vmatprep.mubr.f32.mxu0 %v66_v48  ;;  %3573 = vmatprep.mubr.f32.mxu1 %v130_v49  ;;  %v161_v47 = vld [vmem:[#allocation3 + $0x378] sm:$0xff]  ;;  %v98_v48 = vld [vmem:[#allocation3 + $0x180] sm:$0xff] }
  0x5c   :  { %v162_v49 = vld [vmem:[#allocation3 + $0x380] sm:$0xff] }
  0x5e   :  { %3478 = vmatmul.mubr.f32.gmra.mxu0 %v67_v50  ;;  %3574 = vmatmul.mubr.f32.gmra.mxu1 %v131_v51  ;;  %v99_v50 = vld [vmem:[#allocation3 + $0x188] sm:$0xff] }
  0x5f   :  { %3480 = vmatprep.mubr.f32.mxu0 %v68_v52  ;;  %3576 = vmatprep.mubr.f32.mxu1 %v132_v53  ;;  %v163_v51 = vld [vmem:[#allocation3 + $0x388] sm:$0xff]  ;;  %v100_v52 = vld [vmem:[#allocation3 + $0x190] sm:$0xff] }
  0x60   :  { %v164_v53 = vld [vmem:[#allocation3 + $0x390] sm:$0xff] }
  0x62   :  { %3481 = vmatmul.mubr.f32.gmra.mxu0 %v69_v54  ;;  %3577 = vmatmul.mubr.f32.gmra.mxu1 %v133_v55  ;;  %v101_v54 = vld [vmem:[#allocation3 + $0x198] sm:$0xff] }
  0x63   :  { %3483 = vmatprep.mubr.f32.mxu0 %v70_v56  ;;  %3579 = vmatprep.mubr.f32.mxu1 %v134_v57  ;;  %v165_v55 = vld [vmem:[#allocation3 + $0x398] sm:$0xff]  ;;  %v102_v56 = vld [vmem:[#allocation3 + $0x1a0] sm:$0xff] }
  0x64   :  { %v166_v57 = vld [vmem:[#allocation3 + $0x3a0] sm:$0xff] }
  0x66   :  { %3484 = vmatmul.mubr.f32.gmra.mxu0 %v71_v58  ;;  %3580 = vmatmul.mubr.f32.gmra.mxu1 %v135_v59  ;;  %v103_v58 = vld [vmem:[#allocation3 + $0x1a8] sm:$0xff] }
  0x67   :  { %3486 = vmatprep.mubr.f32.mxu0 %v72_v60  ;;  %3582 = vmatprep.mubr.f32.mxu1 %v136_v61  ;;  %v167_v59 = vld [vmem:[#allocation3 + $0x3a8] sm:$0xff]  ;;  %v104_v60 = vld [vmem:[#allocation3 + $0x1b0] sm:$0xff] }
  0x68   :  { %v168_v61 = vld [vmem:[#allocation3 + $0x3b0] sm:$0xff] }
  0x6a   :  { %3487 = vmatmul.mubr.f32.gmra.mxu0 %v73_v62  ;;  %3583 = vmatmul.mubr.f32.gmra.mxu1 %v137_v63  ;;  %v105_v62 = vld [vmem:[#allocation3 + $0x1b8] sm:$0xff] }
  0x6b   :  { %3489 = vmatprep.mubr.f32.mxu0 %v74_v0  ;;  %3585 = vmatprep.mubr.f32.mxu1 %v138_v1  ;;  %v169_v63 = vld [vmem:[#allocation3 + $0x3b8] sm:$0xff]  ;;  %v106_v0 = vld [vmem:[#allocation3 + $0x1c0] sm:$0xff] }
  0x6c   :  { %v170_v1 = vld [vmem:[#allocation3 + $0x3c0] sm:$0xff] }
  0x6e   :  { %3490 = vmatmul.mubr.f32.gmra.mxu0 %v75_v2  ;;  %3586 = vmatmul.mubr.f32.gmra.mxu1 %v139_v3  ;;  %v107_v2 = vld [vmem:[#allocation3 + $0x1c8] sm:$0xff] }
  0x6f   :  { %3492 = vmatprep.mubr.f32.mxu0 %v76_v4  ;;  %3588 = vmatprep.mubr.f32.mxu1 %v140_v5  ;;  %v171_v3 = vld [vmem:[#allocation3 + $0x3c8] sm:$0xff]  ;;  %v108_v4 = vld [vmem:[#allocation3 + $0x1d0] sm:$0xff] }
  0x70   :  { %v172_v5 = vld [vmem:[#allocation3 + $0x3d0] sm:$0xff] }
  0x72   :  { %3493 = vmatmul.mubr.f32.gmra.mxu0 %v77_v6  ;;  %3589 = vmatmul.mubr.f32.gmra.mxu1 %v141_v7  ;;  %v109_v6 = vld [vmem:[#allocation3 + $0x1d8] sm:$0xff] }
  0x73   :  { %3495 = vmatprep.mubr.f32.mxu0 %v78_v8  ;;  %3591 = vmatprep.mubr.f32.mxu1 %v142_v9  ;;  %v173_v7 = vld [vmem:[#allocation3 + $0x3d8] sm:$0xff]  ;;  %v174_v8 = vld [vmem:[#allocation3 + $0x3e0] sm:$0xff] }
  0x74   :  { %v110_v9 = vld [vmem:[#allocation3 + $0x1e0] sm:$0xff] }
  0x76   :  { %3496 = vmatmul.mubr.f32.gmra.mxu0 %v79_v10  ;;  %3592 = vmatmul.mubr.f32.gmra.mxu1 %v143_v11  ;;  %v175_v10 = vld [vmem:[#allocation3 + $0x3e8] sm:$0xff] }
  0x77   :  { %3498 = vmatprep.mubr.f32.mxu0 %v80_v12  ;;  %3594 = vmatprep.mubr.f32.mxu1 %v144_v13  ;;  %v111_v11 = vld [vmem:[#allocation3 + $0x1e8] sm:$0xff]  ;;  %v112_v12 = vld [vmem:[#allocation3 + $0x1f0] sm:$0xff] }
  0x78   :  { %v176_v13 = vld [vmem:[#allocation3 + $0x3f0] sm:$0xff] }
  0x7a   :  { %3499 = vmatmul.mubr.f32.gmra.mxu0 %v81_v14  ;;  %3595 = vmatmul.mubr.f32.gmra.mxu1 %v145_v15  ;;  %v113_v14 = vld [vmem:[#allocation3 + $0x1f8] sm:$0xff] }
  0x7b   :  { %3501 = vmatprep.mubr.f32.mxu0 %v82_v16  ;;  %3597 = vmatprep.mubr.f32.mxu1 %v146_v17  ;;  %v177_v15 = vld [vmem:[#allocation3 + $0x3f8] sm:$0xff]  ;;  %v4563_v16 = vld [vmem:[%s5966_s2] ss:$0 sm:$0xff] }
  0x7e   :  { %3502 = vmatmul.mubr.f32.gmra.mxu0 %v83_v18  ;;  %3598 = vmatmul.mubr.f32.gmra.mxu1 %v147_v19 }
  0x7f   :  { %3504 = vmatprep.mubr.f32.mxu0 %v84_v20  ;;  %3600 = vmatprep.mubr.f32.mxu1 %v148_v21 }
  0x82   :  { %3505 = vmatmul.mubr.f32.gmra.mxu0 %v85_v22  ;;  %3601 = vmatmul.mubr.f32.gmra.mxu1 %v149_v23 }
  0x83   :  { %3507 = vmatprep.mubr.f32.mxu0 %v86_v24  ;;  %3603 = vmatprep.mubr.f32.mxu1 %v150_v25 }
  0x86   :  { %3508 = vmatmul.mubr.f32.gmra.mxu0 %v87_v26  ;;  %3604 = vmatmul.mubr.f32.gmra.mxu1 %v151_v27 }
  0x87   :  { %3510 = vmatprep.mubr.f32.mxu0 %v88_v28  ;;  %3606 = vmatprep.mubr.f32.mxu1 %v152_v29 }
  0x8a   :  { %3511 = vmatmul.mubr.f32.gmra.mxu0 %v89_v30  ;;  %3607 = vmatmul.mubr.f32.gmra.mxu1 %v153_v31 }
  0x8b   :  { %3513 = vmatprep.mubr.f32.mxu0 %v90_v32  ;;  %3609 = vmatprep.mubr.f32.mxu1 %v154_v33 }
  0x8e   :  { %3514 = vmatmul.mubr.f32.gmra.mxu0 %v91_v34  ;;  %3610 = vmatmul.mubr.f32.gmra.mxu1 %v155_v35 }
  0x8f   :  { %3516 = vmatprep.mubr.f32.mxu0 %v92_v36  ;;  %3612 = vmatprep.mubr.f32.mxu1 %v156_v37 }
  0x92   :  { %3517 = vmatmul.mubr.f32.gmra.mxu0 %v93_v38  ;;  %3613 = vmatmul.mubr.f32.gmra.mxu1 %v157_v39 }
  0x93   :  { %3519 = vmatprep.mubr.f32.mxu0 %v94_v40  ;;  %3615 = vmatprep.mubr.f32.mxu1 %v158_v41  ;;  %v4578_v41 = vld [vmem:[%s5967_s3] ss:$0 sm:$0xff] }
  0x96   :  { %3520 = vmatmul.mubr.f32.gmra.mxu0 %v95_v42  ;;  %3616 = vmatmul.mubr.f32.gmra.mxu1 %v159_v43 }
  0x97   :  { %3522 = vmatprep.mubr.f32.mxu0 %v96_v44  ;;  %3618 = vmatprep.mubr.f32.mxu1 %v160_v45 }
  0x9a   :  { %3523 = vmatmul.mubr.f32.gmra.mxu0 %v97_v46  ;;  %3619 = vmatmul.mubr.f32.gmra.mxu1 %v161_v47 }
  0x9b   :  { %3525 = vmatprep.mubr.f32.mxu0 %v98_v48  ;;  %3621 = vmatprep.mubr.f32.mxu1 %v162_v49 }
  0x9e   :  { %3526 = vmatmul.mubr.f32.gmra.mxu0 %v99_v50  ;;  %3622 = vmatmul.mubr.f32.gmra.mxu1 %v163_v51 }
  0x9f   :  { %3528 = vmatprep.mubr.f32.mxu0 %v100_v52  ;;  %3624 = vmatprep.mubr.f32.mxu1 %v164_v53 }
  0xa2   :  { %3529 = vmatmul.mubr.f32.gmra.mxu0 %v101_v54  ;;  %3625 = vmatmul.mubr.f32.gmra.mxu1 %v165_v55 }
  0xa3   :  { %3531 = vmatprep.mubr.f32.mxu0 %v102_v56  ;;  %3627 = vmatprep.mubr.f32.mxu1 %v166_v57 }
  0xa6   :  { %3532 = vmatmul.mubr.f32.gmra.mxu0 %v103_v58  ;;  %3628 = vmatmul.mubr.f32.gmra.mxu1 %v167_v59 }
  0xa7   :  { %3534 = vmatprep.mubr.f32.mxu0 %v104_v60  ;;  %3630 = vmatprep.mubr.f32.mxu1 %v168_v61 }
  0xaa   :  { %3535 = vmatmul.mubr.f32.gmra.mxu0 %v105_v62  ;;  %3631 = vmatmul.mubr.f32.gmra.mxu1 %v169_v63 }
  0xab   :  { %3537 = vmatprep.mubr.f32.mxu0 %v106_v0  ;;  %3633 = vmatprep.mubr.f32.mxu1 %v170_v1 }
  0xae   :  { %3538 = vmatmul.mubr.f32.gmra.mxu0 %v107_v2  ;;  %3634 = vmatmul.mubr.f32.gmra.mxu1 %v171_v3 }
  0xaf   :  { %3540 = vmatprep.mubr.f32.mxu0 %v108_v4  ;;  %3636 = vmatprep.mubr.f32.mxu1 %v172_v5 }
  0xb2   :  { %3541 = vmatmul.mubr.f32.gmra.mxu0 %v109_v6  ;;  %3637 = vmatmul.mubr.f32.gmra.mxu1 %v173_v7 }
  0xb3   :  { %3639 = vmatprep.mubr.f32.mxu1 %v174_v8  ;;  %3543 = vmatprep.mubr.f32.mxu0 %v110_v9 }
  0xb6   :  { %3640 = vmatmul.mubr.f32.gmra.mxu1 %v175_v10  ;;  %3544 = vmatmul.mubr.f32.gmra.mxu0 %v111_v11 }
  0xb7   :  { %3546 = vmatprep.mubr.f32.mxu0 %v112_v12  ;;  %3642 = vmatprep.mubr.f32.mxu1 %v176_v13 }
  0xba   :  { %3547 = vmatmul.mubr.f32.gmra.mxu0 %v113_v14  ;;  %3643 = vmatmul.mubr.f32.gmra.mxu1 %v177_v15 }
  0xfe   :  { %v3455_v17 = vpop.f32.mrf.mxu0  ;;  %v3551_v18 = vpop.f32.mrf.mxu1 }
  0xff   :  { %v273_v19 = vadd.f32 %v3455_v17, %v4563_v16  ;;  %v593_v20 = vadd.f32 %v3551_v18, %v4563_v16 }
 0x100   :  { %v267_v21 = vpop.f32.mrf.mxu0  ;;  %v587_v22 = vpop.f32.mrf.mxu1 }
 0x101   :  { %3682 = vtanh.f32 %v273_v19  ;;  %v268_v23 = vadd.f32 %v4563_v16, %v267_v21  ;;  %v588_v26 = vadd.f32 %v4563_v16, %v587_v22 }
 0x102   :  { %3684 = vtanh.f32 %v593_v20  ;;  %v3458_v24 = vpop.f32.mrf.mxu0  ;;  %v3554_v25 = vpop.f32.mrf.mxu1 }
 0x103   :  { %3686 = vtanh.f32 %v268_v23  ;;  %v283_v27 = vadd.f32 %v3458_v24, %v4563_v16  ;;  %v603_v28 = vadd.f32 %v3554_v25, %v4563_v16 }
 0x104   :  { %v277_v29 = vpop.f32.mrf.mxu0  ;;  %v597_v30 = vpop.f32.mrf.mxu1 }
 0x105   :  { %3688 = vtanh.f32 %v283_v27  ;;  %v598_v33 = vadd.f32 %v4563_v16, %v597_v30  ;;  %v278_v34 = vadd.f32 %v4563_v16, %v277_v29 }
 0x106   :  { %3690 = vtanh.f32 %v603_v28  ;;  %v3557_v31 = vpop.f32.mrf.mxu1  ;;  %v3461_v32 = vpop.f32.mrf.mxu0 }
 0x107   :  { %3692 = vtanh.f32 %v588_v26  ;;  %v613_v37 = vadd.f32 %v3557_v31, %v4563_v16  ;;  %v293_v38 = vadd.f32 %v3461_v32, %v4563_v16 }
 0x108   :  { %v607_v35 = vpop.f32.mrf.mxu1  ;;  %v287_v36 = vpop.f32.mrf.mxu0  ;;  %3694 = vtanh.f32 %v598_v33 }
 0x109   :  { %3696 = vtanh.f32 %v278_v34  ;;  %v288_v48 = vadd.f32 %v4563_v16, %v287_v36  ;;  %v608_v51 = vadd.f32 %v4563_v16, %v607_v35 }
 0x10a   :  { %v3560_v39 = vpop.f32.mrf.mxu1  ;;  %v3464_v40 = vpop.f32.mrf.mxu0  ;;  %3698 = vtanh.f32 %v613_v37 }
 0x10b   :  { %3700 = vtanh.f32 %v293_v38  ;;  %v623_v55 = vadd.f32 %v3560_v39, %v4563_v16  ;;  %v303_v57 = vadd.f32 %v3464_v40, %v4563_v16 }
 0x10c   :  { %v617_v42 = vpop.f32.mrf.mxu1  ;;  %v297_v43 = vpop.f32.mrf.mxu0  ;;  %3702 = vtanh.f32 %v288_v48 }
 0x10d   :  { %3704 = vtanh.f32 %v608_v51  ;;  %v298_v6 = vadd.f32 %v4563_v16, %v297_v43  ;;  %v618_v18 = vadd.f32 %v4563_v16, %v617_v42 }
 0x10e   :  { %v3683_v44 = vpop.eup %3682  ;;  %v3467_v45 = vpop.f32.mrf.mxu0  ;;  %3706 = vtanh.f32 %v623_v55 }
 0x10f   :  { %v3563_v46 = vpop.f32.mrf.mxu1  ;;  %v3685_v47 = vpop.eup %3684  ;;  %v1042_v49 = vmul.f32 %v3683_v44, %v4578_v41  ;;  %3708 = vtanh.f32 %v303_v57  ;;  %v313_v3 = vadd.f32 %v3467_v45, %v4563_v16 }
 0x110   :  { %v3687_v50 = vpop.eup %3686  ;;  %v1106_v52 = vmul.f32 %v3685_v47, %v4578_v41  ;;  %v4584_v53 = vpop.f32.mrf.mxu0  ;;  %v633_v28 = vadd.f32 %v3563_v46, %v4563_v16 }
 0x111   :  { %v4586_v54 = vpop.f32.mrf.mxu1  ;;  %1171 = vadd.xlane.f32.xlu0 %v1042_v49  ;;  %v1041_v62 = vmul.f32 %v3687_v50, %v4578_v41  ;;  %3710 = vtanh.f32 %v313_v3  ;;  %v308_v38 = vadd.f32 %v4563_v16, %v4584_v53 }
 0x112   :  { %v3689_v56 = vpop.eup %3688  ;;  %1299 = vadd.xlane.f32.xlu1 %v1106_v52  ;;  %v3470_v58 = vpop.f32.mrf.mxu0  ;;  %3712 = vtanh.f32 %v298_v6  ;;  %v628_v50 = vadd.f32 %v4563_v16, %v4586_v54 }
 0x113   :  { %v4590_v59 = vpop.f32.mrf.mxu1  ;;  %v3691_v60 = vpop.eup %3690  ;;  %v1044_v61 = vmul.f32 %v3689_v56, %v4578_v41  ;;  %v323_v13 = vadd.f32 %v3470_v58, %v4563_v16 }
 0x114   :  { %v3693_v63 = vpop.eup %3692  ;;  %v4594_v0 = vpop.f32.mrf.mxu0  ;;  %v1108_v2 = vmul.f32 %v3691_v60, %v4578_v41  ;;  %v643_v54 = vadd.f32 %v4590_v59, %v4563_v16 }
 0x115   :  { %v4596_v1 = vpop.f32.mrf.mxu1  ;;  %1169 = vadd.xlane.f32.xlu0 %v1041_v62  ;;  %v1105_v7 = vmul.f32 %v3693_v63, %v4578_v41  ;;  %v3695_v8 = vpop.eup %3694  ;;  %3714 = vtanh.f32 %v323_v13  ;;  %v318_v59 = vadd.f32 %v4563_v16, %v4594_v0 }
 0x116   :  { %1175 = vadd.xlane.f32.xlu1 %v1044_v61  ;;  %v3473_v4 = vpop.f32.mrf.mxu0  ;;  %v3697_v11 = vpop.eup %3696  ;;  %v1107_v19 = vmul.f32 %v3695_v8, %v4578_v41  ;;  %3716 = vtanh.f32 %v618_v18 }
 0x117   :  { %v4600_v5 = vpop.f32.mrf.mxu1  ;;  %v3699_v12 = vpop.eup %3698  ;;  %v1043_v20 = vmul.f32 %v3697_v11, %v4578_v41  ;;  %v333_v24 = vadd.f32 %v3473_v4, %v4563_v16 }
 0x118   :  { %v4604_v9 = vpop.f32.mrf.mxu0  ;;  %v3701_v17 = vpop.eup %3700  ;;  %v1110_v23 = vmul.f32 %v3699_v12, %v4578_v41 }
 0x119   :  { %v4606_v10 = vpop.f32.mrf.mxu1  ;;  %1297 = vadd.xlane.f32.xlu0 %v1105_v7  ;;  %v1046_v25 = vmul.f32 %v3701_v17, %v4578_v41  ;;  %v3703_v29 = vpop.eup %3702  ;;  %3718 = vtanh.f32 %v333_v24 }
 0x11a   :  { %1303 = vadd.xlane.f32.xlu1 %v1108_v2  ;;  %v3476_v14 = vpop.f32.mrf.mxu0  ;;  %v3705_v32 = vpop.eup %3704  ;;  %3720 = vtanh.f32 %v633_v28  ;;  %v1045_v39 = vmul.f32 %v3703_v29, %v4578_v41 }
 0x11b   :  { %v4609_v15 = vpop.f32.mrf.mxu1  ;;  %v3707_v33 = vpop.eup %3706  ;;  %v343_v34 = vadd.f32 %v3476_v14, %v4563_v16  ;;  %v1109_v40 = vmul.f32 %v3705_v32, %v4578_v41 }
 0x11c   :  { %v4614_v21 = vpop.f32.mrf.mxu0  ;;  %v3709_v37 = vpop.eup %3708  ;;  %v1112_v44 = vmul.f32 %v3707_v33, %v4578_v41 }
 0x11d   :  { %v4616_v22 = vpop.f32.mrf.mxu1  ;;  %1301 = vadd.xlane.f32.xlu0 %v1107_v19  ;;  %3722 = vtanh.f32 %v343_v34  ;;  %v1048_v46 = vmul.f32 %v3709_v37, %v4578_v41 }
 0x11e   :  { %1173 = vadd.xlane.f32.xlu1 %v1043_v20  ;;  %v3479_v26 = vpop.f32.mrf.mxu0  ;;  %v3711_v49 = vpop.eup %3710  ;;  %3724 = vtanh.f32 %v308_v38 }
 0x11f   :  { %v4621_v27 = vpop.f32.mrf.mxu1  ;;  %v353_v45 = vadd.f32 %v3479_v26, %v4563_v16  ;;  %v3713_v51 = vpop.eup %3712  ;;  %v1050_v56 = vmul.f32 %v3711_v49, %v4578_v41 }
 0x120   :  { %v4624_v30 = vpop.f32.mrf.mxu0  ;;  %v1047_v61 = vmul.f32 %v3713_v51, %v4578_v41 }
 0x121   :  { %v667_v31 = vpop.f32.mrf.mxu1  ;;  %1307 = vadd.xlane.f32.xlu0 %v1110_v23  ;;  %3726 = vtanh.f32 %v353_v45  ;;  %v638_v23 = vadd.f32 %v4563_v16, %v4596_v1  ;;  %v653_v1 = vadd.f32 %v4600_v5, %v4563_v16  ;;  %v328_v5 = vadd.f32 %v4563_v16, %v4604_v9 }
 0x122   :  { %1179 = vadd.xlane.f32.xlu1 %v1046_v25  ;;  %v3482_v35 = vpop.f32.mrf.mxu0  ;;  %v668_v55 = vadd.f32 %v4563_v16, %v667_v31  ;;  %v3715_v60 = vpop.eup %3714  ;;  %3728 = vtanh.f32 %v628_v50 }
 0x123   :  { %v4627_v36 = vpop.f32.mrf.mxu1  ;;  %v3717_v62 = vpop.eup %3716  ;;  %v363_v3 = vadd.f32 %v3482_v35, %v4563_v16  ;;  %v1052_v4 = vmul.f32 %v3715_v60, %v4578_v41 }
 0x124   :  { %v4633_v42 = vpop.f32.mrf.mxu0  ;;  %3730 = vtanh.f32 %v668_v55  ;;  %v1111_v11 = vmul.f32 %v3717_v62, %v4578_v41 }
 0x125   :  { %v4635_v43 = vpop.f32.mrf.mxu1  ;;  %1177 = vadd.xlane.f32.xlu0 %v1045_v39  ;;  %3732 = vtanh.f32 %v643_v54 }
 0x126   :  { %1305 = vadd.xlane.f32.xlu1 %v1109_v40  ;;  %v3485_v47 = vpop.f32.mrf.mxu0  ;;  %v3719_v8 = vpop.eup %3718  ;;  %3734 = vtanh.f32 %v363_v3 }
 0x127   :  { %v3581_v48 = vpop.f32.mrf.mxu1  ;;  %v3721_v12 = vpop.eup %3720  ;;  %v373_v17 = vadd.f32 %v3485_v47, %v4563_v16  ;;  %v1054_v18 = vmul.f32 %v3719_v8, %v4578_v41  ;;  %3736 = vtanh.f32 %v318_v59 }
 0x128   :  { %v4642_v52 = vpop.f32.mrf.mxu0  ;;  %v1114_v24 = vmul.f32 %v3721_v12, %v4578_v41  ;;  %v693_v29 = vadd.f32 %v3581_v48, %v4563_v16  ;;  %v663_v12 = vadd.f32 %v4609_v15, %v4563_v16 }
 0x129   :  { %v4644_v53 = vpop.f32.mrf.mxu1  ;;  %1311 = vadd.xlane.f32.xlu0 %v1112_v44  ;;  %3738 = vtanh.f32 %v373_v17 }
 0x12a   :  { %1183 = vadd.xlane.f32.xlu1 %v1048_v46  ;;  %v4648_v57 = vpop.f32.mrf.mxu0  ;;  %v3723_v0 = vpop.eup %3722  ;;  %3740 = vtanh.f32 %v638_v23  ;;  %v688_v49 = vadd.f32 %v4563_v16, %v4644_v53  ;;  %v648_v53 = vadd.f32 %v4563_v16, %v4606_v10 }
 0x12b   :  { %v4650_v58 = vpop.f32.mrf.mxu1  ;;  %v3725_v25 = vpop.eup %3724  ;;  %v1056_v31 = vmul.f32 %v3723_v0, %v4578_v41  ;;  %3742 = vtanh.f32 %v693_v29  ;;  %v383_v55 = vadd.f32 %v4648_v57, %v4563_v16  ;;  %v338_v29 = vadd.f32 %v4563_v16, %v4614_v21 }
 0x12c   :  { %v4655_v63 = vpop.f32.mrf.mxu0  ;;  %v1049_v35 = vmul.f32 %v3725_v25, %v4578_v41  ;;  %3744 = vtanh.f32 %v653_v1  ;;  %v703_v57 = vadd.f32 %v4650_v58, %v4563_v16  ;;  %v658_v21 = vadd.f32 %v4563_v16, %v4616_v22 }
 0x12d   :  { %v4657_v2 = vpop.f32.mrf.mxu1  ;;  %1181 = vadd.xlane.f32.xlu0 %v1047_v61  ;;  %3746 = vtanh.f32 %v328_v5  ;;  %v348_v22 = vadd.f32 %v4563_v16, %v4624_v30  ;;  %v678_v30 = vadd.f32 %v4563_v16, %v4635_v43  ;;  %v378_v43 = vadd.f32 %v4563_v16, %v4655_v63 }
 0x12e   :  { %1187 = vadd.xlane.f32.xlu1 %v1050_v56  ;;  %v4661_v6 = vpop.f32.mrf.mxu0  ;;  %v3727_v34 = vpop.eup %3726  ;;  %3748 = vtanh.f32 %v688_v49  ;;  %v698_v1 = vadd.f32 %v4563_v16, %v4657_v2  ;;  %v673_v49 = vadd.f32 %v4621_v27, %v4563_v16 }
 0x12f   :  { %v4663_v7 = vpop.f32.mrf.mxu1  ;;  %v3729_v37 = vpop.eup %3728  ;;  %v1058_v40 = vmul.f32 %v3727_v34, %v4578_v41  ;;  %3750 = vtanh.f32 %v383_v55 }
 0x130   :  { %v4668_v13 = vpop.f32.mrf.mxu0  ;;  %v1113_v47 = vmul.f32 %v3729_v37, %v4578_v41  ;;  %3752 = vtanh.f32 %v648_v53  ;;  %v393_v37 = vadd.f32 %v4661_v6, %v4563_v16  ;;  %v713_v6 = vadd.f32 %v4663_v7, %v4563_v16 }
 0x131   :  { %v4670_v14 = vpop.f32.mrf.mxu1  ;;  %1309 = vadd.xlane.f32.xlu0 %v1111_v11  ;;  %v3731_v46 = vpop.eup %3730  ;;  %3754 = vtanh.f32 %v703_v57  ;;  %v358_v7 = vadd.f32 %v4563_v16, %v4633_v42 }
 0x132   :  { %1191 = vadd.xlane.f32.xlu1 %v1052_v4  ;;  %v4674_v19 = vpop.f32.mrf.mxu0  ;;  %v3733_v48 = vpop.eup %3732  ;;  %v1121_v56 = vmul.f32 %v3731_v46, %v4578_v41  ;;  %3756 = vtanh.f32 %v663_v12  ;;  %v708_v42 = vadd.f32 %v4563_v16, %v4670_v14 }
 0x133   :  { %v4676_v20 = vpop.f32.mrf.mxu1  ;;  %v3735_v54 = vpop.eup %3734  ;;  %v1116_v61 = vmul.f32 %v3733_v48, %v4578_v41  ;;  %3758 = vtanh.f32 %v338_v29 }
 0x134   :  { %v4681_v26 = vpop.f32.mrf.mxu0  ;;  %v3737_v62 = vpop.eup %3736  ;;  %v1060_v8 = vmul.f32 %v3735_v54, %v4578_v41  ;;  %3760 = vtanh.f32 %v698_v1  ;;  %v723_v63 = vadd.f32 %v4676_v20, %v4563_v16 }
 0x135   :  { %v4683_v28 = vpop.f32.mrf.mxu1  ;;  %1315 = vadd.xlane.f32.xlu0 %v1114_v24  ;;  %v1051_v17 = vmul.f32 %v3737_v62, %v4578_v41  ;;  %3762 = vtanh.f32 %v393_v37 }
 0x136   :  { %1195 = vadd.xlane.f32.xlu1 %v1054_v18  ;;  %v4687_v32 = vpop.f32.mrf.mxu0  ;;  %v3739_v10 = vpop.eup %3738  ;;  %3764 = vtanh.f32 %v658_v21 }
 0x137   :  { %v4689_v33 = vpop.f32.mrf.mxu1  ;;  %v3741_v18 = vpop.eup %3740  ;;  %v1062_v58 = vmul.f32 %v3739_v10, %v4578_v41  ;;  %3766 = vtanh.f32 %v673_v49  ;;  %v413_v20 = vadd.f32 %v4687_v32, %v4563_v16 }
 0x138   :  { %v4694_v38 = vpop.f32.mrf.mxu0  ;;  %v3743_v25 = vpop.eup %3742  ;;  %v1115_v15 = vmul.f32 %v3741_v18, %v4578_v41  ;;  %3768 = vtanh.f32 %v713_v6 }
 0x139   :  { %v4696_v39 = vpop.f32.mrf.mxu1  ;;  %1185 = vadd.xlane.f32.xlu0 %v1049_v35  ;;  %v3745_v34 = vpop.eup %3744  ;;  %3770 = vtanh.f32 %v348_v22 }
 0x13a   :  { %1199 = vadd.xlane.f32.xlu1 %v1056_v31  ;;  %v4699_v44 = vpop.f32.mrf.mxu0  ;;  %v1118_v46 = vmul.f32 %v3745_v34, %v4578_v41  ;;  %v728_v6 = vadd.f32 %v4563_v16, %v4696_v39 }
 0x13b   :  { %v4701_v45 = vpop.f32.mrf.mxu1 }
 0x13c   :  { %v4708_v50 = vpop.f32.mrf.mxu0 }
 0x13d   :  { %v4710_v51 = vpop.f32.mrf.mxu1  ;;  %1313 = vadd.xlane.f32.xlu0 %v1113_v47  ;;  %v3747_v47 = vpop.eup %3746  ;;  %v418_v39 = vadd.f32 %v4563_v16, %v4708_v50 }
 0x13e   :  { %1203 = vadd.xlane.f32.xlu1 %v1058_v40  ;;  %v4715_v60 = vpop.f32.mrf.mxu0  ;;  %v1126_v40 = vmul.f32 %v3743_v25, %v4578_v41  ;;  %v3749_v48 = vpop.eup %3748  ;;  %v388_v25 = vadd.f32 %v4563_v16, %v4668_v13  ;;  %v718_v13 = vadd.f32 %v4563_v16, %v4683_v28  ;;  %v408_v28 = vadd.f32 %v4563_v16, %v4694_v38 }
 0x13f   :  { %v4717_v9 = vpop.f32.mrf.mxu1  ;;  %v3751_v55 = vpop.eup %3750  ;;  %v1125_v27 = vmul.f32 %v3749_v48, %v4578_v41  ;;  %v743_v38 = vadd.f32 %v4701_v45, %v4563_v16 }
 0x140   :  { %v4722_v3 = vpop.f32.mrf.mxu0  ;;  %v3753_v53 = vpop.eup %3752  ;;  %v1064_v57 = vmul.f32 %v3751_v55, %v4578_v41  ;;  %v753_v50 = vadd.f32 %v4717_v9, %v4563_v16 }
 0x141   :  { %v4724_v4 = vpop.f32.mrf.mxu1  ;;  %1319 = vadd.xlane.f32.xlu0 %v1116_v61  ;;  %v683_v61 = vadd.f32 %v4627_v36, %v4563_v16  ;;  %v368_v36 = vadd.f32 %v4563_v16, %v4642_v52  ;;  %v1117_v10 = vmul.f32 %v3753_v53, %v4578_v41  ;;  %v403_v52 = vadd.f32 %v4674_v19, %v4563_v16 }
 0x142   :  { %1329 = vadd.xlane.f32.xlu1 %v1121_v56  ;;  %v4729_v59 = vpop.f32.mrf.mxu0  ;;  %v1053_v56 = vmul.f32 %v3747_v47, %v4578_v41  ;;  %v398_v19 = vadd.f32 %v4563_v16, %v4681_v26  ;;  %v733_v26 = vadd.f32 %v4689_v33, %v4563_v16  ;;  %v423_v33 = vadd.f32 %v4699_v44, %v4563_v16 }
 0x143   :  { %v4731_v11 = vpop.f32.mrf.mxu1  ;;  %3772 = vtanh.f32 %v683_v61  ;;  %v738_v44 = vadd.f32 %v4563_v16, %v4710_v51  ;;  %v428_v51 = vadd.f32 %v4563_v16, %v4722_v3  ;;  %v443_v9 = vadd.f32 %v4729_v59, %v4563_v16 }
 0x144   :  { %v4736_v0 = vpop.f32.mrf.mxu0  ;;  %3774 = vtanh.f32 %v358_v7 }
 0x145   :  { %1189 = vadd.xlane.f32.xlu0 %v1051_v17  ;;  %v4738_v23 = vpop.f32.mrf.mxu1  ;;  %3776 = vtanh.f32 %v678_v30 }
 0x146   :  { %1207 = vadd.xlane.f32.xlu1 %v1060_v8  ;;  %v4741_v24 = vpop.f32.mrf.mxu0  ;;  %v3755_v8 = vpop.eup %3754  ;;  %3778 = vtanh.f32 %v368_v36 }
 0x147   :  { %v4746_v31 = vpop.f32.mrf.mxu1  ;;  %v3757_v17 = vpop.eup %3756  ;;  %3780 = vtanh.f32 %v708_v42 }
 0x148   :  { %v4750_v35 = vpop.f32.mrf.mxu0  ;;  %v1120_v14 = vmul.f32 %v3757_v17, %v4578_v41  ;;  %3782 = vtanh.f32 %v378_v43 }
 0x149   :  { %1317 = vadd.xlane.f32.xlu0 %v1115_v15  ;;  %v4758_v5 = vpop.f32.mrf.mxu1  ;;  %v3759_v15 = vpop.eup %3758  ;;  %3784 = vtanh.f32 %v403_v52 }
 0x14a   :  { %1211 = vadd.xlane.f32.xlu1 %v1062_v58  ;;  %v4760_v2 = vpop.f32.mrf.mxu0  ;;  %v1128_v58 = vmul.f32 %v3755_v8, %v4578_v41  ;;  %v3761_v1 = vpop.eup %3760  ;;  %3786 = vtanh.f32 %v388_v25  ;;  %v433_v8 = vadd.f32 %v4715_v60, %v4563_v16  ;;  %v748_v60 = vadd.f32 %v4563_v16, %v4724_v4 }
 0x14b   :  { %v4769_v54 = vpop.f32.mrf.mxu1  ;;  %v3763_v37 = vpop.eup %3762  ;;  %3788 = vtanh.f32 %v723_v63  ;;  %v1127_v47 = vmul.f32 %v3761_v1, %v4578_v41  ;;  %v438_v1 = vadd.f32 %v4563_v16, %v4736_v0  ;;  %v773_v0 = vadd.f32 %v4746_v31, %v4563_v16 }
 0x14c   :  { %v4774_v62 = vpop.f32.mrf.mxu0  ;;  %3790 = vtanh.f32 %v398_v19  ;;  %v1066_v32 = vmul.f32 %v3763_v37, %v4578_v41 }
 0x14d   :  { %1323 = vadd.xlane.f32.xlu0 %v1118_v46  ;;  %v4784_v12 = vpop.f32.mrf.mxu1  ;;  %v3765_v46 = vpop.eup %3764  ;;  %3792 = vtanh.f32 %v718_v13  ;;  %v758_v13 = vadd.f32 %v4563_v16, %v4738_v23  ;;  %v448_v23 = vadd.f32 %v4563_v16, %v4750_v35 }
 0x14e   :  { %1339 = vadd.xlane.f32.xlu1 %v1126_v40  ;;  %v4788_v18 = vpop.f32.mrf.mxu0  ;;  %v1055_v40 = vmul.f32 %v3759_v15, %v4578_v41  ;;  %v3767_v49 = vpop.eup %3766  ;;  %v1119_v22 = vmul.f32 %v3765_v46, %v4578_v41  ;;  %3794 = vtanh.f32 %v413_v20  ;;  %v763_v15 = vadd.f32 %v4731_v11, %v4563_v16 }
 0x14f   :  { %v4798_v29 = vpop.f32.mrf.mxu1  ;;  %v3769_v55 = vpop.eup %3768  ;;  %3796 = vtanh.f32 %v733_v26  ;;  %v1122_v45 = vmul.f32 %v3767_v49, %v4578_v41  ;;  %v768_v49 = vadd.f32 %v4563_v16, %v4758_v5  ;;  %v458_v5 = vadd.f32 %v4563_v16, %v4774_v62 }
 0x150   :  { %v4802_v34 = vpop.f32.mrf.mxu0  ;;  %v3771_v53 = vpop.eup %3770  ;;  %3798 = vtanh.f32 %v408_v28  ;;  %v1130_v30 = vmul.f32 %v3769_v55, %v4578_v41 }
 0x151   :  { %1193 = vadd.xlane.f32.xlu0 %v1053_v56  ;;  %v4811_v21 = vpop.f32.mrf.mxu1  ;;  %3800 = vtanh.f32 %v728_v6  ;;  %v463_v6 = vadd.f32 %v4760_v2, %v4563_v16  ;;  %v778_v2 = vadd.f32 %v4563_v16, %v4784_v12  ;;  %v793_v12 = vadd.f32 %v4798_v29, %v4563_v16 }
 0x152   :  { %1337 = vadd.xlane.f32.xlu1 %v1125_v27  ;;  %v4816_v48 = vpop.f32.mrf.mxu0  ;;  %v3773_v27 = vpop.eup %3772  ;;  %3802 = vtanh.f32 %v423_v33 }
 0x153   :  { %v4826_v56 = vpop.f32.mrf.mxu1  ;;  %v3775_v7 = vpop.eup %3774  ;;  %3804 = vtanh.f32 %v743_v38  ;;  %v1124_v11 = vmul.f32 %v3773_v27, %v4578_v41 }
 0x154   :  { %v4830_v61 = vpop.f32.mrf.mxu0  ;;  %3806 = vtanh.f32 %v418_v39  ;;  %v1059_v31 = vmul.f32 %v3775_v7, %v4578_v41  ;;  %v473_v7 = vadd.f32 %v4788_v18, %v4563_v16 }
 0x155   :  { %1321 = vadd.xlane.f32.xlu0 %v1117_v10  ;;  %v4842_v36 = vpop.f32.mrf.mxu1 }
 0x156   :  { %1215 = vadd.xlane.f32.xlu1 %v1064_v57  ;;  %v4837_v57 = vpop.eup %3776  ;;  %v4848_v17 = vpop.f32.mrf.mxu0  ;;  %3808 = vtanh.f32 %v738_v44 }
 0x157   :  { %v4844_v10 = vpop.eup %3778  ;;  %3810 = vtanh.f32 %v433_v8  ;;  %v4859_v25 = vpop.f32.mrf.mxu1 }
 0x158   :  { %v3781_v42 = vpop.eup %3780  ;;  %3812 = vtanh.f32 %v753_v50  ;;  %v4866_v63 = vpop.f32.mrf.mxu0 }
 0x159   :  { %1327 = vadd.xlane.f32.xlu0 %v1120_v14  ;;  %v4852_v43 = vpop.eup %3782  ;;  %v1129_v3 = vmul.f32 %v3781_v42, %v4578_v41  ;;  %3814 = vtanh.f32 %v428_v51  ;;  %v4878_v20 = vpop.f32.mrf.mxu1  ;;  %v788_v42 = vadd.f32 %v4563_v16, %v4811_v21 }
 0x15a   :  { %1343 = vadd.xlane.f32.xlu1 %v1128_v58  ;;  %v3785_v52 = vpop.eup %3784  ;;  %v1057_v58 = vmul.f32 %v3771_v53, %v4578_v41  ;;  %3816 = vtanh.f32 %v748_v60  ;;  %v1061_v60 = vmul.f32 %v4844_v10, %v4578_v41 }
 0x15b   :  { %v4861_v14 = vpop.eup %3786  ;;  %v1068_v59 = vmul.f32 %v3785_v52, %v4578_v41  ;;  %3818 = vtanh.f32 %v443_v9  ;;  %v4896_v55 = vpop.f32.mrf.mxu1 }
 0x15c   :  { %v3789_v4 = vpop.eup %3788  ;;  %3820 = vtanh.f32 %v763_v15 }
 0x15d   :  { %1197 = vadd.xlane.f32.xlu0 %v1055_v40  ;;  %v4870_v19 = vpop.eup %3790  ;;  %v453_v40 = vadd.f32 %v4741_v24, %v4563_v16  ;;  %3822 = vtanh.f32 %v438_v1  ;;  %v1132_v24 = vmul.f32 %v3789_v4, %v4578_v41  ;;  %v798_v4 = vadd.f32 %v4563_v16, %v4842_v36 }
 0x15e   :  { %1341 = vadd.xlane.f32.xlu1 %v1127_v47  ;;  %v3793_v37 = vpop.eup %3792  ;;  %v4882_v47 = vpop.f32.mrf.mxu0  ;;  %3824 = vtanh.f32 %v758_v13  ;;  %v1063_v1 = vmul.f32 %v4852_v43, %v4578_v41  ;;  %v488_v36 = vadd.f32 %v4563_v16, %v4866_v63 }
 0x15f   :  { %v3795_v46 = vpop.eup %3794  ;;  %3826 = vtanh.f32 %v453_v40  ;;  %v1131_v44 = vmul.f32 %v3793_v37, %v4578_v41  ;;  %v813_v37 = vadd.f32 %v4859_v25, %v4563_v16  ;;  %v1065_v25 = vmul.f32 %v4861_v14, %v4578_v41 }
 0x160   :  { %v3797_v26 = vpop.eup %3796  ;;  %3828 = vtanh.f32 %v773_v0  ;;  %v4902_v33 = vpop.f32.mrf.mxu0  ;;  %v1070_v50 = vmul.f32 %v3795_v46, %v4578_v41 }
 0x161   :  { %1325 = vadd.xlane.f32.xlu0 %v1119_v22  ;;  %v4886_v28 = vpop.eup %3798  ;;  %v783_v22 = vadd.f32 %v4769_v54, %v4563_v16  ;;  %3830 = vtanh.f32 %v448_v23  ;;  %v1123_v54 = vmul.f32 %v4837_v57, %v4578_v41  ;;  %v468_v57 = vadd.f32 %v4563_v16, %v4802_v34 }
 0x162   :  { %1219 = vadd.xlane.f32.xlu1 %v1066_v32  ;;  %v4891_v32 = vpop.eup %3800  ;;  %3832 = vtanh.f32 %v768_v49  ;;  %v4912_v27 = vpop.f32.mrf.mxu0  ;;  %v483_v34 = vadd.f32 %v4816_v48, %v4563_v16  ;;  %v1134_v48 = vmul.f32 %v3797_v26, %v4578_v41  ;;  %v503_v26 = vadd.f32 %v4882_v47, %v4563_v16 }
 0x163   :  { %v4898_v35 = vpop.eup %3802  ;;  %3834 = vtanh.f32 %v463_v6  ;;  %v1133_v63 = vmul.f32 %v4891_v32, %v4578_v41  ;;  %v498_v14 = vadd.f32 %v4563_v16, %v4902_v33  ;;  %v513_v33 = vadd.f32 %v4912_v27, %v4563_v16 }
 0x164   :  { %v4904_v53 = vpop.eup %3804  ;;  %3836 = vtanh.f32 %v783_v22  ;;  %v4938_v51 = vpop.f32.mrf.mxu0  ;;  %v1072_v47 = vmul.f32 %v4898_v35, %v4578_v41 }
 0x165   :  { %1331 = vadd.xlane.f32.xlu0 %v1122_v45  ;;  %v4908_v38 = vpop.eup %3806  ;;  %3838 = vtanh.f32 %v458_v5  ;;  %v1067_v5 = vmul.f32 %v4870_v19, %v4578_v41 }
 0x166   :  { %1347 = vadd.xlane.f32.xlu1 %v1130_v30  ;;  %v4914_v39 = vpop.eup %3808  ;;  %v4920_v30 = vpop.f32.mrf.mxu1  ;;  %3840 = vtanh.f32 %v778_v2 }
 0x167   :  { %v4922_v62 = vpop.eup %3810  ;;  %3842 = vtanh.f32 %v473_v7  ;;  %v4950_v9 = vpop.f32.mrf.mxu0  ;;  %v818_v32 = vadd.f32 %v4563_v16, %v4920_v30  ;;  %v508_v30 = vadd.f32 %v4563_v16, %v4938_v51  ;;  %v1135_v27 = vmul.f32 %v4914_v39, %v4578_v41 }
 0x168   :  { %v4927_v45 = vpop.eup %3812  ;;  %v4931_v8 = vpop.f32.mrf.mxu1  ;;  %3844 = vtanh.f32 %v793_v12 }
 0x169   :  { %1201 = vadd.xlane.f32.xlu0 %v1057_v58  ;;  %v4933_v18 = vpop.eup %3814  ;;  %v803_v58 = vadd.f32 %v4826_v56, %v4563_v16  ;;  %3846 = vtanh.f32 %v468_v57  ;;  %v833_v35 = vadd.f32 %v4931_v8, %v4563_v16  ;;  %v1069_v8 = vmul.f32 %v4886_v28, %v4578_v41 }
 0x16a   :  { %1345 = vadd.xlane.f32.xlu1 %v1129_v3  ;;  %v4940_v29 = vpop.eup %3816  ;;  %v478_v3 = vadd.f32 %v4563_v16, %v4830_v61  ;;  %v827_v10 = vpop.f32.mrf.mxu1  ;;  %3848 = vtanh.f32 %v788_v42 }
 0x16b   :  { %v4946_v52 = vpop.eup %3818  ;;  %3850 = vtanh.f32 %v483_v34  ;;  %v828_v12 = vadd.f32 %v4563_v16, %v827_v10 }
 0x16c   :  { %v4952_v21 = vpop.eup %3820  ;;  %v3626_v61 = vpop.f32.mrf.mxu1  ;;  %3852 = vtanh.f32 %v803_v58 }
 0x16d   :  { %1335 = vadd.xlane.f32.xlu0 %v1124_v11  ;;  %v4956_v15 = vpop.eup %3822  ;;  %v517_v11 = vpop.f32.mrf.mxu0  ;;  %3854 = vtanh.f32 %v478_v3  ;;  %v1074_v3 = vmul.f32 %v4922_v62, %v4578_v41 }
 0x16e   :  { %1223 = vadd.xlane.f32.xlu1 %v1068_v59  ;;  %v4961_v56 = vpop.eup %3824  ;;  %v493_v59 = vadd.f32 %v4848_v17, %v4563_v16  ;;  %3856 = vtanh.f32 %v798_v4  ;;  %v808_v17 = vadd.f32 %v4563_v16, %v4878_v20  ;;  %v837_v23 = vpop.f32.mrf.mxu1  ;;  %v823_v20 = vadd.f32 %v4896_v55, %v4563_v16 }
 0x16f   :  { %v4967_v13 = vpop.eup %3826  ;;  %v3533_v46 = vpop.f32.mrf.mxu0  ;;  %v1136_v4 = vmul.f32 %v4904_v53, %v4578_v41  ;;  %v5058_v41 = vld [vmem:[%s5967_s3] ss:$0 sm:$0xff] }
 0x170   :  { %v4971_v40 = vpop.eup %3828  ;;  %3858 = vtanh.f32 %v493_v59  ;;  %v1137_v53 = vmul.f32 %v5058_v41, %v4940_v29 }
 0x171   :  { %1205 = vadd.xlane.f32.xlu0 %v1059_v31  ;;  %v4975_v43 = vpop.eup %3830  ;;  %3860 = vtanh.f32 %v813_v37  ;;  %v3629_v31 = vpop.f32.mrf.mxu1 }
 0x172   :  { %1351 = vadd.xlane.f32.xlu1 %v1132_v24  ;;  %v4979_v0 = vpop.eup %3832  ;;  %3862 = vtanh.f32 %v488_v36  ;;  %v527_v22 = vpop.f32.mrf.mxu0 }
 0x173   :  { %v4985_v24 = vpop.eup %3834  ;;  %3864 = vtanh.f32 %v808_v17 }
 0x174   :  { %v4991_v49 = vpop.eup %3836  ;;  %3866 = vtanh.f32 %v503_v26 }
 0x175   :  { %1333 = vadd.xlane.f32.xlu0 %v1123_v54  ;;  %v4995_v6 = vpop.eup %3838  ;;  %3868 = vtanh.f32 %v823_v20  ;;  %v3536_v54 = vpop.f32.mrf.mxu0 }
 0x176   :  { %1349 = vadd.xlane.f32.xlu1 %v1131_v44  ;;  %v5001_v55 = vpop.eup %3840  ;;  %3870 = vtanh.f32 %v498_v14  ;;  %v847_v44 = vpop.f32.mrf.mxu1 }
 0x177   :  { %v5007_v2 = vpop.eup %3842  ;;  %3872 = vtanh.f32 %v818_v32  ;;  %v537_v39 = vpop.f32.mrf.mxu0 }
 0x178   :  { %v5011_v7 = vpop.eup %3844  ;;  %3874 = vtanh.f32 %v513_v33  ;;  %v3632_v51 = vpop.f32.mrf.mxu1 }
 0x179   :  { %1209 = vadd.xlane.f32.xlu0 %v1061_v60  ;;  %v5015_v19 = vpop.eup %3846  ;;  %3876 = vtanh.f32 %v833_v35  ;;  %v3539_v10 = vpop.f32.mrf.mxu0  ;;  %v1138_v35 = vmul.f32 %v5058_v41, %v4927_v45  ;;  %v1139_v45 = vmul.f32 %v5058_v41, %v4961_v56 }
 0x17a   :  { %1227 = vadd.xlane.f32.xlu1 %v1070_v50  ;;  %v5020_v57 = vpop.eup %3848  ;;  %v5027_v50 = vld [vmem:[%s5966_s2] ss:$0 sm:$0xff]  ;;  %3878 = vtanh.f32 %v508_v30  ;;  %v857_v59 = vpop.f32.mrf.mxu1 }
 0x17b   :  { %v523_v42 = vadd.f32 %v5027_v50, %v4950_v9  ;;  %v5031_v60 = vpop.eup %3850  ;;  %v843_v16 = vadd.f32 %v5027_v50, %v3626_v61  ;;  %v518_v28 = vadd.f32 %v5027_v50, %v517_v11  ;;  %3880 = vtanh.f32 %v828_v12 }
 0x17c   :  { %v5034_v34 = vpop.eup %3852  ;;  %v838_v9 = vadd.f32 %v5027_v50, %v837_v23  ;;  %v853_v37 = vadd.f32 %v5027_v50, %v3629_v31  ;;  %v528_v62 = vadd.f32 %v5027_v50, %v527_v22  ;;  %v3635_v36 = vpop.f32.mrf.mxu1  ;;  %v1071_v23 = vmul.f32 %v5058_v41, %v4908_v38 }
 0x17d   :  { %1213 = vadd.xlane.f32.xlu0 %v1063_v1  ;;  %v5037_v58 = vpop.eup %3854  ;;  %3882 = vtanh.f32 %v523_v42  ;;  %v533_v1 = vadd.f32 %v5027_v50, %v3533_v46  ;;  %v848_v46 = vadd.f32 %v5027_v50, %v847_v44  ;;  %v863_v14 = vadd.f32 %v5027_v50, %v3632_v51 }
 0x17e   :  { %1355 = vadd.xlane.f32.xlu1 %v1134_v48  ;;  %v5042_v48 = vpop.eup %3856  ;;  %3884 = vtanh.f32 %v843_v16  ;;  %v538_v29 = vadd.f32 %v5027_v50, %v537_v39  ;;  %v867_v32 = vpop.f32.mrf.mxu1  ;;  %v1076_v38 = vmul.f32 %v5058_v41, %v4946_v52 }
 0x17f   :  { %v5047_v61 = vpop.eup %3858  ;;  %3886 = vtanh.f32 %v518_v28  ;;  %v868_v51 = vadd.f32 %v5027_v50, %v867_v32  ;;  %v1073_v28 = vmul.f32 %v5058_v41, %v4933_v18 }
 0x180   :  { %v5050_v11 = vpop.eup %3860  ;;  %3888 = vtanh.f32 %v838_v9  ;;  %v3638_v30 = vpop.f32.mrf.mxu1 }
 0x181   :  { %1217 = vadd.xlane.f32.xlu0 %v1065_v25  ;;  %v5053_v17 = vpop.eup %3862  ;;  %v547_v25 = vpop.f32.mrf.mxu0  ;;  %3890 = vtanh.f32 %v533_v1  ;;  %v883_v56 = vadd.f32 %v5027_v50, %v3638_v30 }
 0x182   :  { %1353 = vadd.xlane.f32.xlu1 %v1133_v63  ;;  %v5063_v26 = vpop.eup %3864  ;;  %v543_v63 = vadd.f32 %v5027_v50, %v3536_v54  ;;  %3892 = vtanh.f32 %v853_v37  ;;  %v553_v54 = vadd.f32 %v5027_v50, %v3539_v10  ;;  %v548_v52 = vadd.f32 %v5027_v50, %v547_v25  ;;  %v877_v9 = vpop.f32.mrf.mxu1 }
 0x183   :  { %v5068_v20 = vpop.eup %3866  ;;  %v3542_v31 = vpop.f32.mrf.mxu0  ;;  %3894 = vtanh.f32 %v528_v62 }
 0x184   :  { %3896 = vtanh.f32 %v848_v46 }
 0x185   :  { %1221 = vadd.xlane.f32.xlu0 %v1067_v5  ;;  %v858_v5 = vadd.f32 %v5027_v50, %v857_v59  ;;  %3898 = vtanh.f32 %v543_v63  ;;  %v557_v12 = vpop.f32.mrf.mxu0  ;;  %v3641_v59 = vpop.f32.mrf.mxu1 }
 0x186   :  { %1231 = vadd.xlane.f32.xlu1 %v1072_v47  ;;  %v5071_v47 = vpop.eup %3868  ;;  %3900 = vtanh.f32 %v863_v14  ;;  %v558_v18 = vadd.f32 %v5027_v50, %v557_v12  ;;  %v1140_v14 = vmul.f32 %v5058_v41, %v4952_v21  ;;  %v1080_v21 = vmul.f32 %v5058_v41, %v4985_v24 }
 0x187   :  { %v5074_v22 = vpop.eup %3870  ;;  %3902 = vtanh.f32 %v538_v29  ;;  %v3545_v16 = vpop.f32.mrf.mxu0 }
 0x188   :  { %v5079_v33 = vpop.eup %3872  ;;  %3904 = vtanh.f32 %v858_v5  ;;  %v887_v5 = vpop.f32.mrf.mxu1 }
 0x189   :  { %1225 = vadd.xlane.f32.xlu0 %v1069_v8  ;;  %v5084_v44 = vpop.eup %3874  ;;  %3906 = vtanh.f32 %v553_v54  ;;  %v567_v46 = vpop.f32.mrf.mxu0 }
 0x18a   :  { %1357 = vadd.xlane.f32.xlu1 %v1135_v27  ;;  %v873_v27 = vadd.f32 %v5027_v50, %v3635_v36  ;;  %v5087_v8 = vpop.eup %3876  ;;  %v1078_v36 = vmul.f32 %v5058_v41, %v4967_v13 }
 0x18b   :  { %v5090_v42 = vpop.eup %3878  ;;  %v3548_v12 = vpop.f32.mrf.mxu0 }
 0x18c   :  { %v5095_v39 = vpop.eup %3880  ;;  %3908 = vtanh.f32 %v873_v27  ;;  %v573_v27 = vadd.f32 %v5027_v50, %v3545_v16  ;;  %v888_v16 = vadd.f32 %v5027_v50, %v887_v5 }
 0x18d   :  { %1359 = vadd.xlane.f32.xlu0 %v1136_v4  ;;  %v5100_v10 = vpop.eup %3882  ;;  %v5105_v4 = vstv %s5968_s4  ;;  %3910 = vtanh.f32 %v548_v52 }
 0x18e   :  { %1235 = vadd.xlane.f32.xlu1 %v1074_v3  ;;  %v563_v3 = vadd.f32 %v5027_v50, %v3542_v31  ;;  %v5108_v1 = vpop.eup %3884  ;;  %3912 = vtanh.f32 %v868_v51 }
 0x18f   :  { %v5111_v37 = vpop.eup %3886 }
 0x190   :  { %v5116_v25 = vpop.eup %3888  ;;  %3914 = vtanh.f32 %v563_v3 }
 0x191   :  { %1229 = vadd.xlane.f32.xlu0 %v1071_v23  ;;  %v5121_v31 = vpop.eup %3890  ;;  %3916 = vtanh.f32 %v883_v56 }
 0x192   :  { %1361 = vadd.xlane.f32.xlu1 %v1137_v53  ;;  %v878_v53 = vadd.f32 %v5027_v50, %v877_v9  ;;  %v5124_v32 = vpop.eup %3892  ;;  %3918 = vtanh.f32 %v558_v18 }
 0x194   :  { %3920 = vtanh.f32 %v878_v53  ;;  %v577_v53 = vpop.f32.mrf.mxu0 }
 0x195   :  { %1363 = vadd.xlane.f32.xlu0 %v1138_v35  ;;  %v5127_v35 = vpop.eup %3894 }
 0x196   :  { %1239 = vadd.xlane.f32.xlu1 %v1076_v38  ;;  %v893_v38 = vadd.f32 %v5027_v50, %v3641_v59  ;;  %v5132_v52 = vpop.eup %3896 }
 0x197   :  { %v5137_v3 = vpop.eup %3898 }
 0x198   :  { %v5140_v56 = vpop.eup %3900 }
 0x199   :  { %1233 = vadd.xlane.f32.xlu0 %v1073_v28  ;;  %v1075_v28 = vmul.f32 %v5058_v41, %v4956_v15  ;;  %v5143_v18 = vpop.eup %3902  ;;  %v1082_v15 = vmul.f32 %v5058_v41, %v5007_v2 }
 0x19a   :  { %1365 = vadd.xlane.f32.xlu1 %v1139_v45  ;;  %v1172_v62 = vpop.xlane.xlu0 %1171 }
 0x19b   :  { %v1300_v23 = vpop.xlane.xlu1 %1299  ;;  %v1428_v63 = vadd.f32 %v5105_v4, %v1172_v62 }
 0x19c   :  { %v1492_v29 = vadd.f32 %v5105_v4, %v1300_v23  ;;  %v5148_v23 = vpop.eup %3904 }
 0x19d   :  { %v3150_v13 = vmul.f32 -1.442695, %v1428_v63  ;;  %1367 = vadd.xlane.f32.xlu0 %v1140_v14 }
 0x19e   :  { %v3214_v54 = vmul.f32 -1.442695, %v1492_v29  ;;  %1243 = vadd.xlane.f32.xlu1 %v1078_v36  ;;  %v1170_v30 = vpop.xlane.xlu0 %1169  ;;  %v568_v36 = vadd.f32 %v5027_v50, %v567_v46  ;;  %v1142_v29 = vmul.f32 %v5058_v41, %v4971_v40  ;;  %v583_v46 = vadd.f32 %v5027_v50, %v3548_v12 }
 0x19f   :  { %3922 = vpow2.f32 %v3150_v13  ;;  %v1176_v45 = vpop.xlane.xlu1 %1175  ;;  %v1427_v51 = vadd.f32 %v5105_v4, %v1170_v30  ;;  %v3644_v13 = vpop.f32.mrf.mxu1  ;;  %v1084_v40 = vmul.f32 %v5058_v41, %v5031_v60  ;;  %v1077_v12 = vmul.f32 %v5058_v41, %v4975_v43 }
 0x1a0   :  { %3924 = vpow2.f32 %v3214_v54  ;;  %v1430_v9 = vadd.f32 %v5105_v4, %v1176_v45  ;;  %v578_v45 = vadd.f32 %v5027_v50, %v577_v53  ;;  %v1086_v43 = vmul.f32 %v5058_v41, %v5047_v61 }
 0x1a1   :  { %v3149_v24 = vmul.f32 -1.442695, %v1427_v51  ;;  %1237 = vadd.xlane.f32.xlu0 %v1075_v28  ;;  %3926 = vtanh.f32 %v893_v38  ;;  %v5153_v38 = vpop.eup %3906  ;;  %v2451_v28 = vlaneseq }
 0x1a2   :  { %v3152_v59 = vmul.f32 -1.442695, %v1430_v9  ;;  %1247 = vadd.xlane.f32.xlu1 %v1080_v21  ;;  %v1298_v62 = vpop.xlane.xlu0 %1297  ;;  %3928 = vtanh.f32 %v573_v27  ;;  %v5156_v2 = vpop.eup %3908 }
 0x1a3   :  { %3930 = vpow2.f32 %v3149_v24  ;;  %v1304_v63 = vpop.xlane.xlu1 %1303  ;;  %v1491_v14 = vadd.f32 %v5105_v4, %v1298_v62  ;;  %v5159_v30 = vpop.eup %3910  ;;  %v5188_v61 = vshrl.u32 %v2451_v28, 7 }
 0x1a4   :  { %3932 = vpow2.f32 %v3152_v59  ;;  %v1494_v5 = vadd.f32 %v5105_v4, %v1304_v63  ;;  %v5164_v51 = vpop.eup %3912 }
 0x1a5   :  { %v3213_v54 = vmul.f32 -1.442695, %v1491_v14  ;;  %1371 = vadd.xlane.f32.xlu0 %v1142_v29  ;;  %3934 = vtanh.f32 %v888_v16  ;;  %v897_v16 = vpop.f32.mrf.mxu1  ;;  %v5169_v59 = vpop.eup %3914 }
 0x1a6   :  { %v3216_v21 = vmul.f32 -1.442695, %v1494_v5  ;;  %1251 = vadd.xlane.f32.xlu1 %v1082_v15  ;;  %v1302_v27 = vpop.xlane.xlu0 %1301  ;;  %3936 = vtanh.f32 %v568_v36  ;;  %v5172_v60 = vpop.eup %3916  ;;  %v903_v36 = vadd.f32 %v5027_v50, %v3644_v13  ;;  %v898_v29 = vadd.f32 %v5027_v50, %v897_v16 }
 0x1a7   :  { %3938 = vpow2.f32 %v3213_v54  ;;  %v1174_v9 = vpop.xlane.xlu1 %1173  ;;  %v1493_v24 = vadd.f32 %v5105_v4, %v1302_v27  ;;  %v5175_v53 = vpop.eup %3918  ;;  %v5182_v54 = vand.u32 127, %v2451_v28  ;;  %v1141_v13 = vmul.f32 %v5058_v41, %v4979_v0 }
 0x1a8   :  { %3940 = vpow2.f32 %v3216_v21  ;;  %v1429_v62 = vadd.f32 %v5105_v4, %v1174_v9  ;;  %v5180_v5 = vpop.eup %3920  ;;  %v1088_v50 = vmul.f32 %v5058_v41, %v5068_v20  ;;  %v1144_v20 = vmul.f32 %v5058_v41, %v4991_v49 }
 0x1a9   :  { %v3215_v15 = vmul.f32 -1.442695, %v1493_v24  ;;  %1241 = vadd.xlane.f32.xlu0 %v1077_v12  ;;  %3942 = vtanh.f32 %v583_v46 }
 0x1aa   :  { %v3151_v63 = vmul.f32 -1.442695, %v1429_v62  ;;  %1255 = vadd.xlane.f32.xlu1 %v1084_v40  ;;  %v1308_v14 = vpop.xlane.xlu0 %1307  ;;  %3944 = vtanh.f32 %v578_v45 }
 0x1ab   :  { %3946 = vpow2.f32 %v3215_v15  ;;  %v1180_v21 = vpop.xlane.xlu1 %1179  ;;  %v1496_v46 = vadd.f32 %v5105_v4, %v1308_v14 }
 0x1ac   :  { %v3923_v27 = vpop.eup %3922  ;;  %3948 = vpow2.f32 %v3151_v63  ;;  %v1432_v40 = vadd.f32 %v5105_v4, %v1180_v21  ;;  %v2457_v63 = vadd.s32 4294967288, %v5182_v54  ;;  %v2471_v21 = vadd.s32 4294967272, %v5182_v54 }
 0x1ad   :  { %v3925_v9 = vpop.eup %3924  ;;  %v1940_v45 = vadd.f32 1.0, %v3923_v27  ;;  %1369 = vadd.xlane.f32.xlu0 %v1141_v13  ;;  %3950 = vtanh.f32 %v903_v36  ;;  %v3218_v62 = vmul.f32 -1.442695, %v1496_v46 }
 0x1ae   :  { %v5192_v24 = vpop.eup %3926  ;;  %v2004_v12 = vadd.f32 1.0, %v3925_v9  ;;  %v3154_v16 = vmul.f32 -1.442695, %v1432_v40  ;;  %1259 = vadd.xlane.f32.xlu1 %v1086_v43  ;;  %v1178_v0 = vpop.xlane.xlu0 %1177  ;;  %3952 = vtanh.f32 %v898_v29  ;;  %v1152_v29 = vmul.f32 %v5058_v41, %v5071_v47 }
 0x1af   :  { %v5194_v15 = vpop.eup %3928  ;;  %3954 = vrcp.f32 %v1940_v45  ;;  %v1306_v28 = vpop.xlane.xlu1 %1305  ;;  %v1431_v14 = vadd.f32 %v5105_v4, %v1178_v0  ;;  %v5209_v0 = vsub.s32 %v2457_v63, %v5188_v61  ;;  %v1079_v47 = vmul.f32 %v5058_v41, %v4995_v6 }
 0x1b0   :  { %5970 = vst [vmem:[#allocation12_spill] sm:$0xff] %v5194_v15  ;;  %v3931_v36 = vpop.eup %3930  ;;  %3956 = vrcp.f32 %v2004_v12  ;;  %v1495_v46 = vadd.f32 %v5105_v4, %v1306_v28 }
 0x1b1   :  { %v3933_v43 = vpop.eup %3932  ;;  %v1939_v13 = vadd.f32 1.0, %v3931_v36  ;;  %3958 = vpow2.f32 %v3154_v16  ;;  %1375 = vadd.xlane.f32.xlu0 %v1144_v20  ;;  %v3153_v45 = vmul.f32 -1.442695, %v1431_v14  ;;  %v5215_v36 = vsub.s32 %v2471_v21, %v5188_v61 }
 0x1b2   :  { %v5204_v27 = vpop.eup %3934  ;;  %v1942_v40 = vadd.f32 1.0, %v3933_v43  ;;  %3960 = vpow2.f32 %v3218_v62  ;;  %v3217_v9 = vmul.f32 -1.442695, %v1495_v46  ;;  %1263 = vadd.xlane.f32.xlu1 %v1088_v50  ;;  %v1312_v49 = vpop.xlane.xlu0 %1311  ;;  %v5219_v50 = vsub.s32 %v5182_v54, %v5188_v61 }
 0x1b3   :  { %5971 = vst [vmem:[#allocation13_spill] sm:$0xff] %v5204_v27  ;;  %v5206_v12 = vpop.eup %3936  ;;  %3962 = vrcp.f32 %v1939_v13  ;;  %v1184_v28 = vpop.xlane.xlu1 %1183  ;;  %v1498_v16 = vadd.f32 %v5105_v4, %v1312_v49  ;;  %v2464_v46 = vadd.s32 4294967280, %v5182_v54  ;;  %v2485_v43 = vadd.s32 4294967256, %v5182_v54 }
 0x1b4   :  { %5972 = vst [vmem:[#allocation14_spill] sm:$0xff] %v5206_v12  ;;  %v3939_v20 = vpop.eup %3938  ;;  %3964 = vrcp.f32 %v1942_v40  ;;  %v1434_v62 = vadd.f32 %v5105_v4, %v1184_v28  ;;  %v2478_v28 = vadd.s32 4294967264, %v5182_v54 }
 0x1b5   :  { %v3941_v63 = vpop.eup %3940  ;;  %v2003_v14 = vadd.f32 1.0, %v3939_v20  ;;  %3966 = vpow2.f32 %v3217_v9  ;;  %1245 = vadd.xlane.f32.xlu0 %v1079_v47  ;;  %v3220_v40 = vmul.f32 -1.442695, %v1498_v16  ;;  %v1143_v9 = vmul.f32 %v5058_v41, %v5001_v55 }
 0x1b6   :  { %v5224_v6 = vpop.eup %3942  ;;  %v2006_v13 = vadd.f32 1.0, %v3941_v63  ;;  %3968 = vpow2.f32 %v3153_v45  ;;  %v3156_v21 = vmul.f32 -1.442695, %v1434_v62  ;;  %1391 = vadd.xlane.f32.xlu1 %v1152_v29  ;;  %v1182_v49 = vpop.xlane.xlu0 %1181  ;;  %v2499_v45 = vadd.s32 4294967240, %v5182_v54 }
 0x1b7   :  { %5973 = vst [vmem:[#allocation15_spill] sm:$0xff] %v5224_v6  ;;  %v5226_v27 = vpop.eup %3944  ;;  %3970 = vrcp.f32 %v2003_v14  ;;  %v1188_v20 = vpop.xlane.xlu1 %1187  ;;  %v1433_v12 = vadd.f32 %v5105_v4, %v1182_v49  ;;  %v1151_v29 = vmul.f32 %v5058_v41, %v5079_v33  ;;  %v2513_v14 = vadd.s32 4294967224, %v5182_v54 }
 0x1b8   :  { %5974 = vst [vmem:[#allocation16_spill] sm:$0xff] %v5226_v27  ;;  %v3947_v47 = vpop.eup %3946  ;;  %3972 = vrcp.f32 %v2006_v13  ;;  %v1436_v16 = vadd.f32 %v5105_v4, %v1188_v20  ;;  %v1090_v49 = vmul.f32 %v5058_v41, %v5084_v44  ;;  %v5244_v33 = vsub.s32 %v2464_v46, %v5188_v61 }
 0x1b9   :  { %v3949_v62 = vpop.eup %3948  ;;  %v2005_v63 = vadd.f32 1.0, %v3947_v47  ;;  %3974 = vpow2.f32 %v3156_v21  ;;  %1373 = vadd.xlane.f32.xlu0 %v1143_v9  ;;  %v3155_v6 = vmul.f32 -1.442695, %v1433_v12  ;;  %v1146_v44 = vmul.f32 %v5058_v41, %v5011_v7 }
 0x1ba   :  { %v5239_v55 = vpop.eup %3950  ;;  %v1941_v27 = vadd.f32 1.0, %v3949_v62  ;;  %3976 = vpow2.f32 %v3220_v40  ;;  %v3158_v13 = vmul.f32 -1.442695, %v1436_v16  ;;  %1389 = vadd.xlane.f32.xlu1 %v1151_v29  ;;  %v1310_v20 = vpop.xlane.xlu0 %1309  ;;  %v5250_v40 = vsub.s32 %v2485_v43, %v5188_v61 }
 0x1bb   :  { %5975 = vst [vmem:[#allocation17_spill] sm:$0xff] %v5239_v55  ;;  %v5241_v15 = vpop.eup %3952  ;;  %3978 = vrcp.f32 %v2005_v63  ;;  %v1192_v21 = vpop.xlane.xlu1 %1191  ;;  %v1497_v9 = vadd.f32 %v5105_v4, %v1310_v20  ;;  %v2492_v12 = vadd.s32 4294967248, %v5182_v54  ;;  %v5257_v46 = vsub.s32 %v2478_v28, %v5188_v61 }
 0x1bc   :  { %5976 = vst [vmem:[#allocation18_spill] sm:$0xff] %v5241_v15  ;;  %v3955_v47 = vpop.eup %3954  ;;  %3980 = vrcp.f32 %v1941_v27  ;;  %v1438_v16 = vadd.f32 %v5105_v4, %v1192_v21  ;;  %v5260_v62 = vsub.s32 %v2499_v45, %v5188_v61  ;;  %v5263_v27 = vsub.s32 %v2513_v14, %v5188_v61 }
 0x1bd   :  { %v5254_v29 = vpop.eup %3956  ;;  %3982 = vpow2.f32 %v3158_v13  ;;  %v3219_v63 = vmul.f32 -1.442695, %v1497_v9  ;;  %1379 = vadd.xlane.f32.xlu0 %v1146_v44  ;;  %v1154_v21 = vmul.f32 %v5058_v41, %v5087_v8  ;;  %v1081_v13 = vmul.f32 %v5058_v41, %v5015_v19 }
 0x1be   :  { %v3959_v7 = vpop.eup %3958  ;;  %3984 = vpow2.f32 %v3155_v6  ;;  %v3160_v43 = vmul.f32 -1.442695, %v1438_v16  ;;  %1267 = vadd.xlane.f32.xlu1 %v1090_v49  ;;  %v1316_v20 = vpop.xlane.xlu0 %1315  ;;  %v5271_v6 = vsub.s32 %v2492_v12, %v5188_v61  ;;  %v2461_v8 = vrot.slane %v3955_v47, %v5209_v0 }
 0x1bf   :  { %v3961_v55 = vpop.eup %3960  ;;  %v1944_v28 = vadd.f32 1.0, %v3959_v7  ;;  %3986 = vpow2.f32 %v3219_v63  ;;  %v1196_v15 = vpop.xlane.xlu1 %1195  ;;  %v1500_v45 = vadd.f32 %v5105_v4, %v1316_v20  ;;  %v1092_v12 = vmul.f32 %v5058_v41, %v5100_v10 }
 0x1c0   :  { %v3963_v9 = vpop.eup %3962  ;;  %v2008_v14 = vadd.f32 1.0, %v3961_v55  ;;  %3988 = vpow2.f32 %v3160_v43  ;;  %v1440_v49 = vadd.f32 %v5105_v4, %v1196_v15  ;;  %v1145_v15 = vmul.f32 %v5058_v41, %v5020_v57 }
 0x1c1   :  { %v5274_v44 = vpop.eup %3964  ;;  %v2456_v16 = vrot.slane %v3963_v9, %v5219_v50  ;;  %3990 = vrcp.f32 %v1944_v28  ;;  %v3222_v63 = vmul.f32 -1.442695, %v1500_v45  ;;  %1249 = vadd.xlane.f32.xlu0 %v1081_v13  ;;  %v2806_v57 = vrot.slane %v5254_v29, %v5209_v0 }
 0x1c2   :  { %v3967_v19 = vpop.eup %3966  ;;  %3992 = vrcp.f32 %v2008_v14  ;;  %v3162_v7 = vmul.f32 -1.442695, %v1440_v49  ;;  %1395 = vadd.xlane.f32.xlu1 %v1154_v21  ;;  %v1186_v55 = vpop.xlane.xlu0 %1185  ;;  %v5285_v14 = vadd.s32 4294967208, %v5182_v54 }
 0x1c3   :  { %v3969_v43 = vpop.eup %3968  ;;  %v2463_v47 = vsel %vm2462_vm0, %v2461_v8, %v2456_v16  ;;  %v2007_v20 = vadd.f32 1.0, %v3967_v19  ;;  %3994 = vpow2.f32 %v3222_v63  ;;  %v1200_v28 = vpop.xlane.xlu1 %1199  ;;  %v1435_v45 = vadd.f32 %v5105_v4, %v1186_v55 }
 0x1c4   :  { %v3971_v13 = vpop.eup %3970  ;;  %v1943_v9 = vadd.f32 1.0, %v3969_v43  ;;  %3996 = vpow2.f32 %v3162_v7  ;;  %v1442_v21 = vadd.f32 %v5105_v4, %v1200_v28  ;;  %v1156_v55 = vmul.f32 %v5058_v41, %v5108_v1 }
 0x1c5   :  { %v3973_v10 = vpop.eup %3972  ;;  %v2802_v49 = vrot.slane %v3971_v13, %v5219_v50  ;;  %3998 = vrcp.f32 %v2007_v20  ;;  %v3157_v8 = vmul.f32 -1.442695, %v1435_v45  ;;  %1377 = vadd.xlane.f32.xlu0 %v1145_v15  ;;  %v1148_v7 = vmul.f32 %v5058_v41, %v5034_v34 }
 0x1c6   :  { %v3975_v16 = vpop.eup %3974  ;;  %4000 = vrcp.f32 %v1943_v9  ;;  %v3164_v63 = vmul.f32 -1.442695, %v1442_v21  ;;  %1271 = vadd.xlane.f32.xlu1 %v1092_v12  ;;  %v1314_v19 = vpop.xlane.xlu0 %1313  ;;  %v1083_v9 = vmul.f32 %v5058_v41, %v5037_v58 }
 0x1c7   :  { %v3977_v43 = vpop.eup %3976  ;;  %v2807_v28 = vsel %vm2462_vm0, %v2806_v57, %v2802_v49  ;;  %v1946_v29 = vadd.f32 1.0, %v3975_v16  ;;  %4002 = vpow2.f32 %v3157_v8  ;;  %v1204_v13 = vpop.xlane.xlu1 %1203  ;;  %v1499_v20 = vadd.f32 %v5105_v4, %v1314_v19 }
 0x1c8   :  { %v3979_v15 = vpop.eup %3978  ;;  %v2010_v45 = vadd.f32 1.0, %v3977_v43  ;;  %4004 = vpow2.f32 %v3164_v63  ;;  %v1444_v12 = vadd.f32 %v5105_v4, %v1204_v13  ;;  %v1155_v57 = vmul.f32 %v5058_v41, %v5116_v25 }
 0x1c9   :  { %v3981_v1 = vpop.eup %3980  ;;  %v2811_v21 = vrot.slane %v3979_v15, %v5244_v33  ;;  %4006 = vrcp.f32 %v1946_v29  ;;  %v3221_v34 = vmul.f32 -1.442695, %v1499_v20  ;;  %1383 = vadd.xlane.f32.xlu0 %v1148_v7  ;;  %v2816_v8 = vrot.slane %v3973_v10, %v5215_v36 }
 0x1ca   :  { %v3983_v49 = vpop.eup %3982  ;;  %v2468_v16 = vrot.slane %v3981_v1, %v5244_v33  ;;  %4008 = vrcp.f32 %v2010_v45  ;;  %v3166_v63 = vmul.f32 -1.442695, %v1444_v12  ;;  %1399 = vadd.xlane.f32.xlu1 %v1156_v55  ;;  %v1320_v19 = vpop.xlane.xlu0 %1319  ;;  %v2475_v43 = vrot.slane %v5274_v44, %v5215_v36 }
 0x1cb   :  { %v3985_v58 = vpop.eup %3984  ;;  %v2812_v29 = vsel %vm2469_vm1, %v2811_v21, %v2807_v28  ;;  %4010 = vpow2.f32 %v3221_v34  ;;  %v1330_v7 = vpop.xlane.xlu1 %1329  ;;  %v1502_v25 = vadd.f32 %v5105_v4, %v1320_v19  ;;  %v1948_v15 = vadd.f32 1.0, %v3983_v49 }
 0x1cc   :  { %v3987_v13 = vpop.eup %3986  ;;  %v2470_v10 = vsel %vm2469_vm1, %v2468_v16, %v2463_v47  ;;  %v2817_v20 = vsel %vm2476_vm2, %v2816_v8, %v2812_v29  ;;  %v1945_v45 = vadd.f32 1.0, %v3985_v58  ;;  %4012 = vpow2.f32 %v3166_v63 }
 0x1cd   :  { %v3989_v55 = vpop.eup %3988  ;;  %v2477_v12 = vsel %vm2476_vm2, %v2475_v43, %v2470_v10  ;;  %v2009_v1 = vadd.f32 1.0, %v3987_v13  ;;  %v1507_v44 = vadd.f32 %v5105_v4, %v1330_v7  ;;  %1253 = vadd.xlane.f32.xlu0 %v1083_v9  ;;  %v3224_v21 = vmul.f32 -1.442695, %v1502_v25 }
 0x1ce   :  { %v3991_v28 = vpop.eup %3990  ;;  %4014 = vrcp.f32 %v1945_v45  ;;  %1397 = vadd.xlane.f32.xlu1 %v1155_v57  ;;  %v1190_v34 = vpop.xlane.xlu0 %1189  ;;  %v1094_v47 = vmul.f32 %v5058_v41, %v5121_v31  ;;  %v1147_v49 = vmul.f32 %v5058_v41, %v5042_v48  ;;  %v1950_v16 = vadd.f32 1.0, %v3989_v55 }
 0x1cf   :  { %v3993_v8 = vpop.eup %3992  ;;  %4016 = vrcp.f32 %v2009_v1  ;;  %v3229_v19 = vmul.f32 -1.442695, %v1507_v44  ;;  %v1208_v58 = vpop.xlane.xlu1 %1207  ;;  %v1437_v63 = vadd.f32 %v5105_v4, %v1190_v34  ;;  %v5320_v9 = vsub.s32 %v5285_v14, %v5188_v61 }
 0x1d0   :  { %v3995_v43 = vpop.eup %3994  ;;  %4018 = vrcp.f32 %v1948_v15  ;;  %v5323_v57 = vadd.s32 4294967192, %v5182_v54  ;;  %v1446_v31 = vadd.f32 %v5105_v4, %v1208_v58  ;;  %v1150_v7 = vmul.f32 %v5058_v41, %v5050_v11 }
 0x1d1   :  { %v3997_v29 = vpop.eup %3996  ;;  %v2012_v48 = vadd.f32 1.0, %v3995_v43  ;;  %4020 = vpow2.f32 %v3229_v19  ;;  %1381 = vadd.xlane.f32.xlu0 %v1147_v49  ;;  %v1085_v25 = vmul.f32 %v5058_v41, %v5053_v17  ;;  %v3159_v14 = vmul.f32 -1.442695, %v1437_v63 }
 0x1d2   :  { %v3999_v13 = vpop.eup %3998  ;;  %4022 = vpow2.f32 %v3224_v21  ;;  %v3168_v10 = vmul.f32 -1.442695, %v1446_v31  ;;  %1275 = vadd.xlane.f32.xlu1 %v1094_v47  ;;  %v1318_v15 = vpop.xlane.xlu0 %1317  ;;  %v1158_v45 = vmul.f32 %v5058_v41, %v5124_v32  ;;  %v2826_v1 = vrot.slane %v3993_v8, %v5250_v40 }
 0x1d3   :  { %v4001_v55 = vpop.eup %4000  ;;  %v2821_v44 = vrot.slane %v3999_v13, %v5257_v46  ;;  %4024 = vrcp.f32 %v1950_v16  ;;  %v1212_v11 = vpop.xlane.xlu1 %1211  ;;  %v1501_v34 = vadd.f32 %v5105_v4, %v1318_v15  ;;  %v1952_v49 = vadd.f32 1.0, %v3997_v29 }
 0x1d4   :  { %v4003_v17 = vpop.eup %4002  ;;  %v2482_v21 = vrot.slane %v4001_v55, %v5257_v46  ;;  %4026 = vrcp.f32 %v2012_v48  ;;  %v1448_v47 = vadd.f32 %v5105_v4, %v1212_v11  ;;  %v2489_v32 = vrot.slane %v3991_v28, %v5250_v40 }
 0x1d5   :  { %v4005_v19 = vpop.eup %4004  ;;  %v2822_v8 = vsel %vm2483_vm3, %v2821_v44, %v2817_v20  ;;  %v1947_v58 = vadd.f32 1.0, %v4003_v17  ;;  %4028 = vpow2.f32 %v3168_v10  ;;  %1387 = vadd.xlane.f32.xlu0 %v1150_v7  ;;  %v3223_v31 = vmul.f32 -1.442695, %v1501_v34 }
 0x1d6   :  { %v4007_v16 = vpop.eup %4006  ;;  %v2484_v63 = vsel %vm2483_vm3, %v2482_v21, %v2477_v12  ;;  %v2827_v43 = vsel %vm2490_vm4, %v2826_v1, %v2822_v8  ;;  %4030 = vpow2.f32 %v3159_v14  ;;  %1403 = vadd.xlane.f32.xlu1 %v1158_v45  ;;  %v1324_v29 = vpop.xlane.xlu0 %1323  ;;  %v3170_v15 = vmul.f32 -1.442695, %v1448_v47 }
 0x1d7   :  { %v4009_v48 = vpop.eup %4008  ;;  %v2491_v13 = vsel %vm2490_vm4, %v2489_v32, %v2484_v63  ;;  %4032 = vrcp.f32 %v1947_v58  ;;  %v1340_v28 = vpop.xlane.xlu1 %1339  ;;  %v1157_v20 = vmul.f32 %v5058_v41, %v5132_v52  ;;  %v1954_v7 = vadd.f32 1.0, %v4005_v19 }
 0x1d8   :  { %v4011_v10 = vpop.eup %4010  ;;  %4034 = vrcp.f32 %v1952_v49  ;;  %v1512_v12 = vadd.f32 %v5105_v4, %v1340_v28  ;;  %v1504_v55 = vadd.f32 %v5105_v4, %v1324_v29  ;;  %v2506_v14 = vadd.s32 4294967232, %v5182_v54 }
 0x1d9   :  { %v2011_v45 = vadd.f32 1.0, %v4011_v10  ;;  %4036 = vpow2.f32 %v3170_v15  ;;  %1257 = vadd.xlane.f32.xlu0 %v1085_v25  ;;  %v1149_v1 = vmul.f32 %v5058_v41, %v5063_v26  ;;  %v4013_v44 = vpop.eup %4012  ;;  %v1096_v17 = vmul.f32 %v5058_v41, %v5137_v3 }
 0x1da   :  { %4038 = vpow2.f32 %v3223_v31  ;;  %v3234_v11 = vmul.f32 -1.442695, %v1512_v12  ;;  %v3226_v34 = vmul.f32 -1.442695, %v1504_v55  ;;  %1401 = vadd.xlane.f32.xlu1 %v1157_v20  ;;  %v1194_v52 = vpop.xlane.xlu0 %1193  ;;  %v1160_v25 = vmul.f32 %v5058_v41, %v5140_v56 }
 0x1db   :  { %v4015_v21 = vpop.eup %4014  ;;  %4040 = vrcp.f32 %v2011_v45  ;;  %v1338_v49 = vpop.xlane.xlu1 %1337  ;;  %v1439_v47 = vadd.f32 %v5105_v4, %v1194_v52  ;;  %v1087_v26 = vmul.f32 %v5058_v41, %v5074_v22  ;;  %v2503_v32 = vrot.slane %v4007_v16, %v5260_v62 }
 0x1dc   :  { %v4017_v19 = vpop.eup %4016  ;;  %v2496_v8 = vrot.slane %v4015_v21, %v5271_v6  ;;  %4042 = vrcp.f32 %v1954_v7  ;;  %v1511_v58 = vadd.f32 %v5105_v4, %v1338_v49  ;;  %v1956_v31 = vadd.f32 1.0, %v4013_v44 }
 0x1dd   :  { %v5359_v3 = vpop.eup %4018  ;;  %v2831_v63 = vrot.slane %v4017_v19, %v5271_v6  ;;  %4044 = vpow2.f32 %v3234_v11  ;;  %v3161_v29 = vmul.f32 -1.442695, %v1439_v47  ;;  %1385 = vadd.xlane.f32.xlu0 %v1149_v1  ;;  %v2836_v15 = vrot.slane %v4009_v48, %v5260_v62 }
 0x1de   :  { %v4021_v56 = vpop.eup %4020  ;;  %v2498_v22 = vsel %vm2497_vm5, %v2496_v8, %v2491_v13  ;;  %4046 = vpow2.f32 %v3226_v34  ;;  %v3233_v16 = vmul.f32 -1.442695, %v1511_v58  ;;  %1279 = vadd.xlane.f32.xlu1 %v1096_v17  ;;  %v1322_v28 = vpop.xlane.xlu0 %1321  ;;  %v5375_v11 = vsub.s32 %v2506_v14, %v5188_v61 }
 0x1df   :  { %v4023_v20 = vpop.eup %4022  ;;  %v2832_v10 = vsel %vm2497_vm5, %v2831_v63, %v2827_v43  ;;  %v2505_v7 = vsel %vm2504_vm6, %v2503_v32, %v2498_v22  ;;  %v2019_v12 = vadd.f32 1.0, %v4021_v56  ;;  %4048 = vpow2.f32 %v3161_v29  ;;  %v1216_v55 = vpop.xlane.xlu1 %1215 }
 0x1e0   :  { %v5366_v45 = vpop.eup %4024  ;;  %v5369_v1 = vsel %vm2504_vm6, %v2836_v15, %v2832_v10  ;;  %v2014_v48 = vadd.f32 1.0, %v4023_v20  ;;  %4050 = vpow2.f32 %v3233_v16  ;;  %v1450_v13 = vadd.f32 %v5105_v4, %v1216_v55 }
 0x1e1   :  { %v5372_v44 = vpop.eup %4026  ;;  %4052 = vrcp.f32 %v1956_v31  ;;  %v1503_v43 = vadd.f32 %v5105_v4, %v1322_v28  ;;  %1261 = vadd.xlane.f32.xlu0 %v1087_v26  ;;  %v1089_v21 = vmul.f32 %v5058_v41, %v5090_v42  ;;  %v1159_v63 = vmul.f32 %v5058_v41, %v5148_v23 }
 0x1e2   :  { %v4029_v34 = vpop.eup %4028  ;;  %4054 = vrcp.f32 %v2019_v12  ;;  %v3172_v52 = vmul.f32 -1.442695, %v1450_v13  ;;  %1407 = vadd.xlane.f32.xlu1 %v1160_v25  ;;  %v1328_v17 = vpop.xlane.xlu0 %1327  ;;  %v5388_v42 = vadd.s32 4294967216, %v5182_v54  ;;  %v1153_v29 = vmul.f32 %v5058_v41, %v5095_v39 }
 0x1e3   :  { %v4031_v49 = vpop.eup %4030  ;;  %4056 = vrcp.f32 %v2014_v48  ;;  %v1958_v47 = vadd.f32 1.0, %v4029_v34  ;;  %v3225_v19 = vmul.f32 -1.442695, %v1503_v43  ;;  %v1344_v14 = vpop.xlane.xlu1 %1343  ;;  %v1506_v32 = vadd.f32 %v5105_v4, %v1328_v17 }
 0x1e4   :  { %v4033_v8 = vpop.eup %4032  ;;  %v1949_v58 = vadd.f32 1.0, %v4031_v49  ;;  %4058 = vpow2.f32 %v3172_v52  ;;  %v1514_v26 = vadd.f32 %v5105_v4, %v1344_v14  ;;  %v2517_v15 = vrot.slane %v5359_v3, %v5263_v27 }
 0x1e5   :  { %v5384_v25 = vpop.eup %4034  ;;  %v2510_v31 = vrot.slane %v4033_v8, %v5375_v11  ;;  %4060 = vrcp.f32 %v1958_v47  ;;  %1265 = vadd.xlane.f32.xlu0 %v1089_v21  ;;  %v1098_v16 = vmul.f32 %v5058_v41, %v5153_v38  ;;  %v3228_v12 = vmul.f32 -1.442695, %v1506_v32  ;;  %v5408_v38 = vld [vmem:[%s5967_s3] ss:$0 sm:$0xff]  ;;  %s4523_s3 = smov [#allocation8]  }
 0x1e6   :  { %v4037_v56 = vpop.eup %4036  ;;  %4062 = vrcp.f32 %v1949_v58  ;;  %v3236_v22 = vmul.f32 -1.442695, %v1514_v26  ;;  %1405 = vadd.xlane.f32.xlu1 %v1159_v63  ;;  %v1198_v23 = vpop.xlane.xlu0 %1197  ;;  %v2846_v17 = vrot.slane %v5372_v44, %v5263_v27  ;;  %v1162_v47 = vmul.f32 %v5408_v38, %v5156_v2  ;;  %s3137_s13 = sshll.u32 %s4523_s3, 4  ;;  %s3138_s13 = int_to_ptr.vmem [resolvable:$true] %s3137_s13 }
 0x1e7   :  { %v4039_v28 = vpop.eup %4038  ;;  %v2512_v20 = vsel %vm2511_vm7, %v2510_v31, %v2505_v7  ;;  %v1960_v10 = vadd.f32 1.0, %v4037_v56  ;;  %4064 = vpow2.f32 %v3225_v19  ;;  %v1342_v55 = vpop.xlane.xlu1 %1341  ;;  %v1441_v41 = vadd.f32 %v5105_v4, %v1198_v23  ;;  %s4493_s14 = scalar_lea.vmem %s3138_s13, 128  ;;  %p4498_p11 = scmp.lt.s32.totalorder %s3138_s13, %s3138_s13 }
 0x1e8   :  { %v4041_v48 = vpop.eup %4040  ;;  %v5398_v39 = vsel %vm2518_vm8, %v2517_v15, %v2512_v20  ;;  %v2013_v13 = vadd.f32 1.0, %v4039_v28  ;;  %4066 = vpow2.f32 %v3236_v22  ;;  %v1513_v3 = vadd.f32 %v5105_v4, %v1342_v55  ;;  %p4494_p10 = scmp.ne.s32.totalorder %s3138_s13, %s4493_s14  ;;  %p4499_p12 = scmp.lt.s32.totalorder %s4493_s14, %s4493_s14 }
 0x1e9   :  { %v5401_v43 = vpop.eup %4042  ;;  %v2841_v34 = vrot.slane %v4041_v48, %v5375_v11  ;;  %4068 = vrcp.f32 %v1960_v10  ;;  %1393 = vadd.xlane.f32.xlu0 %v1153_v29  ;;  %v1091_v7 = vmul.f32 %v5408_v38, %v5111_v37  ;;  %v5425_v2 = vsub.s32 %v5323_v57, %v5188_v61 }
 0x1ea   :  { %v4045_v52 = vpop.eup %4044  ;;  %4070 = vrcp.f32 %v2013_v13  ;;  %v3235_v21 = vmul.f32 -1.442695, %v1513_v3  ;;  %1283 = vadd.xlane.f32.xlu1 %v1098_v16  ;;  %v1326_v49 = vpop.xlane.xlu0 %1325  ;;  %v3163_v29 = vmul.f32 -1.442695, %v1441_v41  ;;  %v1093_v16 = vmul.f32 %v5408_v38, %v5127_v35  ;;  %p4500_p13 = por %p4499_p12, %p4498_p11 }
 0x1eb   :  { %v4047_v19 = vpop.eup %4046  ;;  %v2842_v14 = vsel %vm2511_vm7, %v2841_v34, %v5369_v1  ;;  %v2024_v32 = vadd.f32 1.0, %v4045_v52  ;;  %4072 = vpow2.f32 %v3228_v12  ;;  %v1220_v8 = vpop.xlane.xlu1 %1219  ;;  %v1505_v37 = vadd.f32 %v5105_v4, %v1326_v49 }
 0x1ec   :  { %v4049_v58 = vpop.eup %4048  ;;  %v2016_v26 = vadd.f32 1.0, %v4047_v19  ;;  %4074 = vpow2.f32 %v3235_v21  ;;  %v1452_v44 = vadd.f32 %v5105_v4, %v1220_v8  ;;  %v5421_v63 = vsel %vm2518_vm8, %v2846_v17, %v2842_v14  ;;  %p4501_p0 = pnand %p4500_p13, %p4494_p10 }
 0x1ed   :  { %v4051_v31 = vpop.eup %4050  ;;  %4076 = vrcp.f32 %v2024_v32  ;;  %v1951_v1 = vadd.f32 1.0, %v4049_v58  ;;  %1269 = vadd.xlane.f32.xlu0 %v1091_v7  ;;  %v2534_v20 = vadd.s32 4294967200, %v5182_v54  ;;  %v3227_v57 = vmul.f32 -1.442695, %v1505_v37 }
 0x1ee   :  { %v5427_v56 = vpop.eup %4052  ;;  %4078 = vrcp.f32 %v2016_v26  ;;  %v2023_v15 = vadd.f32 1.0, %v4051_v31  ;;  %v3174_v22 = vmul.f32 -1.442695, %v1452_v44  ;;  %1411 = vadd.xlane.f32.xlu1 %v1162_v47  ;;  %v1332_v23 = vpop.xlane.xlu0 %1331  ;;  %v5439_v48 = vsub.s32 %v5388_v42, %v5188_v61 }
 0x1ef   :  { %v5431_v28 = vpop.eup %4054  ;;  %4080 = vrcp.f32 %v1951_v1  ;;  %v1348_v10 = vpop.xlane.xlu1 %1347  ;;  %v1508_v12 = vadd.f32 %v5105_v4, %v1332_v23  ;;  %v1161_v35 = vmul.f32 %v5408_v38, %v5164_v51  ;;  %v1100_v34 = vmul.f32 %v5408_v38, %v5169_v59 }
 0x1f0   :  { %v5435_v55 = vpop.eup %4056  ;;  %4082 = vrcp.f32 %v2023_v15  ;;  %v1516_v13 = vadd.f32 %v5105_v4, %v1348_v10  ;;  %v5449_v49 = vsub.s32 %v2534_v20, %v5188_v61  ;;  %v1095_v19 = vmul.f32 %v5408_v38, %v5143_v18 }
 0x1f1   :  { %v4059_v3 = vpop.eup %4058  ;;  %4084 = vpow2.f32 %v3163_v29  ;;  %1273 = vadd.xlane.f32.xlu0 %v1093_v16  ;;  %v3230_v52 = vmul.f32 -1.442695, %v1508_v12  ;;  %v1164_v8 = vmul.f32 %v5408_v38, %v5172_v60  ;;  %v2531_v58 = vrot.slane %v5366_v45, %v5320_v9 }
 0x1f2   :  { %v5446_v41 = vpop.eup %4060  ;;  %v1962_v7 = vadd.f32 1.0, %v4059_v3  ;;  %4086 = vpow2.f32 %v3174_v22  ;;  %v3238_v42 = vmul.f32 -1.442695, %v1516_v13  ;;  %1409 = vadd.xlane.f32.xlu1 %v1161_v35  ;;  %v1202_v17 = vpop.xlane.xlu0 %1201  ;;  %v1097_v16 = vmul.f32 %v5408_v38, %v5159_v30 }
 0x1f3   :  { %v4063_v21 = vpop.eup %4062  ;;  %4088 = vpow2.f32 %v3227_v57  ;;  %v1346_v51 = vpop.xlane.xlu1 %1345  ;;  %v1443_v47 = vadd.f32 %v5105_v4, %v1202_v17  ;;  %v2856_v12 = vrot.slane %v5435_v55, %v5320_v9 }
 0x1f4   :  { %v4065_v59 = vpop.eup %4064  ;;  %v2524_v14 = vrot.slane %v4063_v21, %v5439_v48  ;;  %4090 = vrcp.f32 %v1962_v7  ;;  %v1515_v32 = vadd.f32 %v5105_v4, %v1346_v51  ;;  %v1099_v21 = vmul.f32 %v5408_v38, %v5175_v53 }
 0x1f5   :  { %v4067_v37 = vpop.eup %4066  ;;  %v2015_v26 = vadd.f32 1.0, %v4065_v59  ;;  %4092 = vpow2.f32 %v3238_v42  ;;  %v3165_v44 = vmul.f32 -1.442695, %v1443_v47  ;;  %1277 = vadd.xlane.f32.xlu0 %v1095_v19  ;;  %v1163_v59 = vmul.f32 %v5408_v38, %v5180_v5  ;;  %v5977_v5 = vld [vmem:[#allocation12_spill] sm:$0xff] }
 0x1f6   :  { %v5460_v31 = vpop.eup %4068  ;;  %v2526_v18 = vsel %vm2525_vm9, %v2524_v14, %v5398_v39  ;;  %v2026_v1 = vadd.f32 1.0, %v4067_v37  ;;  %4094 = vpow2.f32 %v3230_v52  ;;  %v3237_v29 = vmul.f32 -1.442695, %v1515_v32  ;;  %1287 = vadd.xlane.f32.xlu1 %v1100_v34  ;;  %v1336_v15 = vpop.xlane.xlu0 %1335 }
 0x1f7   :  { %v4071_v22 = vpop.eup %4070  ;;  %v2533_v60 = vsel %vm2532_vm10, %v2531_v58, %v2526_v18  ;;  %4096 = vrcp.f32 %v2015_v26  ;;  %v1224_v23 = vpop.xlane.xlu1 %1223  ;;  %v1510_v45 = vadd.f32 %v5105_v4, %v1336_v15  ;;  %v1166_v53 = vmul.f32 %v5408_v38, %v5192_v24 }
 0x1f8   :  { %v4073_v20 = vpop.eup %4072  ;;  %v2851_v57 = vrot.slane %v4071_v22, %v5439_v48  ;;  %4098 = vrcp.f32 %v2026_v1  ;;  %v1454_v39 = vadd.f32 %v5105_v4, %v1224_v23  ;;  %v2545_v37 = vrot.slane %v5384_v25, %v5425_v2 }
 0x1f9   :  { %v4075_v10 = vpop.eup %4074  ;;  %v2018_v13 = vadd.f32 1.0, %v4073_v20  ;;  %4100 = vpow2.f32 %v3237_v29  ;;  %v3232_v35 = vmul.f32 -1.442695, %v1510_v45  ;;  %1281 = vadd.xlane.f32.xlu0 %v1097_v16 }
 0x1fa   :  { %v5472_v3 = vpop.eup %4076  ;;  %v2025_v34 = vadd.f32 1.0, %v4075_v10  ;;  %4102 = vpow2.f32 %v3165_v44  ;;  %v3176_v30 = vmul.f32 -1.442695, %v1454_v39  ;;  %1415 = vadd.xlane.f32.xlu1 %v1164_v8  ;;  %v1206_v7 = vpop.xlane.xlu0 %1205  ;;  %v2852_v42 = vsel %vm2525_vm9, %v2851_v57, %v5421_v63 }
 0x1fb   :  { %v5476_v52 = vpop.eup %4078  ;;  %4104 = vrcp.f32 %v2018_v13  ;;  %v1352_v17 = vpop.xlane.xlu1 %1351  ;;  %v1445_v55 = vadd.f32 %v5105_v4, %v1206_v7  ;;  %v5482_v51 = vsel %vm2532_vm10, %v2856_v12, %v2852_v42  ;;  %v1102_v44 = vmul.f32 %v5408_v38, %v5977_v5  ;;  %v5978_v12 = vld [vmem:[#allocation14_spill] sm:$0xff] }
 0x1fc   :  { %v4081_v47 = vpop.eup %4080  ;;  %4106 = vrcp.f32 %v2025_v34  ;;  %v1518_v19 = vadd.f32 %v5105_v4, %v1352_v17  ;;  %v1101_v13 = vmul.f32 %v5408_v38, %v5978_v12 }
 0x1fd   :  { %v5487_v63 = vpop.eup %4082  ;;  %v2538_v14 = vrot.slane %v4081_v47, %v5449_v49  ;;  %4108 = vpow2.f32 %v3176_v30  ;;  %v3167_v32 = vmul.f32 -1.442695, %v1445_v55  ;;  %1285 = vadd.xlane.f32.xlu0 %v1099_v21  ;;  %v5979_v47 = vld [vmem:[#allocation13_spill] sm:$0xff] }
 0x1fe   :  { %v4085_v8 = vpop.eup %4084  ;;  %4110 = vpow2.f32 %v3232_v35  ;;  %v3240_v58 = vmul.f32 -1.442695, %v1518_v19  ;;  %1413 = vadd.xlane.f32.xlu1 %v1163_v59  ;;  %v1334_v26 = vpop.xlane.xlu0 %1333  ;;  %v1165_v19 = vmul.f32 %v5408_v38, %v5979_v47 }
 0x1ff   :  { %v4087_v18 = vpop.eup %4086  ;;  %v2540_v1 = vsel %vm2539_vm11, %v2538_v14, %v2533_v60  ;;  %v1953_v29 = vadd.f32 1.0, %v4085_v8  ;;  %4112 = vpow2.f32 %v3167_v32  ;;  %v1350_v15 = vpop.xlane.xlu1 %1349  ;;  %v1509_v22 = vadd.f32 %v5105_v4, %v1334_v26 }
 0x200   :  { %v4089_v24 = vpop.eup %4088  ;;  %v1964_v23 = vadd.f32 1.0, %v4087_v18  ;;  %4114 = vpow2.f32 %v3240_v58  ;;  %v1517_v25 = vadd.f32 %v5105_v4, %v1350_v15  ;;  %v5500_v45 = vsel %vm2546_vm12, %v2545_v37, %v2540_v1 }
 0x201   :  { %v5502_v16 = vpop.eup %4090  ;;  %4116 = vrcp.f32 %v1953_v29  ;;  %v2017_v20 = vadd.f32 1.0, %v4089_v24  ;;  %1419 = vadd.xlane.f32.xlu0 %v1166_v53  ;;  %v2555_v60 = vadd.s32 4294967176, %v5182_v54  ;;  %v3231_v30 = vmul.f32 -1.442695, %v1509_v22  ;;  %v5980_v53 = vld [vmem:[#allocation15_spill] sm:$0xff] }
 0x202   :  { %v4093_v57 = vpop.eup %4092  ;;  %4118 = vrcp.f32 %v1964_v23  ;;  %v3239_v39 = vmul.f32 -1.442695, %v1517_v25  ;;  %1291 = vadd.xlane.f32.xlu1 %v1102_v44  ;;  %v1210_v10 = vpop.xlane.xlu0 %1209  ;;  %v2548_v32 = vadd.s32 4294967184, %v5182_v54  ;;  %v1104_v8 = vmul.f32 %v5408_v38, %v5980_v53  ;;  %v5981_v44 = vld [vmem:[#allocation16_spill] sm:$0xff] }
 0x203   :  { %v4095_v35 = vpop.eup %4094  ;;  %4120 = vrcp.f32 %v2017_v20  ;;  %v2028_v34 = vadd.f32 1.0, %v4093_v57  ;;  %v1228_v7 = vpop.xlane.xlu1 %1227  ;;  %v1447_v42 = vadd.f32 %v5105_v4, %v1210_v10  ;;  %v2866_v58 = vrot.slane %v5476_v52, %v5425_v2 }
 0x204   :  { %v4097_v17 = vpop.eup %4096  ;;  %v2020_v55 = vadd.f32 1.0, %v4095_v35  ;;  %4122 = vpow2.f32 %v3239_v39  ;;  %v1456_v21 = vadd.f32 %v5105_v4, %v1228_v7  ;;  %v1103_v18 = vmul.f32 %v5408_v38, %v5981_v44 }
 0x205   :  { %v5511_v59 = vpop.eup %4098  ;;  %v2861_v14 = vrot.slane %v4097_v17, %v5449_v49  ;;  %4124 = vrcp.f32 %v2028_v34  ;;  %1289 = vadd.xlane.f32.xlu0 %v1101_v13  ;;  %v3169_v54 = vmul.f32 -1.442695, %v1447_v42  ;;  %v5533_v10 = vsub.s32 %v2555_v60, %v5188_v61  ;;  %v5982_v42 = vld [vmem:[#allocation18_spill] sm:$0xff] }
 0x206   :  { %v4101_v37 = vpop.eup %4100  ;;  %4126 = vrcp.f32 %v2020_v55  ;;  %v3178_v26 = vmul.f32 -1.442695, %v1456_v21  ;;  %1417 = vadd.xlane.f32.xlu1 %v1165_v19  ;;  %v1214_v5 = vpop.xlane.xlu0 %1213  ;;  %v1167_v17 = vmul.f32 %v5408_v38, %v5982_v42 }
 0x207   :  { %v4103_v1 = vpop.eup %4102  ;;  %v2027_v29 = vadd.f32 1.0, %v4101_v37  ;;  %4128 = vpow2.f32 %v3231_v30  ;;  %v1356_v15 = vpop.xlane.xlu1 %1355  ;;  %v2862_v22 = vsel %vm2539_vm11, %v2861_v14, %v5482_v51  ;;  %v1449_v57 = vadd.f32 %v5105_v4, %v1214_v5 }
 0x208   :  { %v5523_v24 = vpop.eup %4104  ;;  %v1955_v23 = vadd.f32 1.0, %v4103_v1  ;;  %4130 = vpow2.f32 %v3178_v26  ;;  %v1520_v52 = vadd.f32 %v5105_v4, %v1356_v15  ;;  %v5527_v25 = vsel %vm2546_vm12, %v2866_v58, %v2862_v22 }
 0x209   :  { %v5529_v20 = vpop.eup %4106  ;;  %4132 = vrcp.f32 %v2027_v29  ;;  %1293 = vadd.xlane.f32.xlu0 %v1103_v18  ;;  %v5536_v51 = vsub.s32 %v2548_v32, %v5188_v61  ;;  %v5983_v61 = vld [vmem:[#allocation17_spill] sm:$0xff]  ;;  %v3171_v32 = vmul.f32 -1.442695, %v1449_v57  ;;  %v2559_v29 = vrot.slane %v5401_v43, %v5533_v10 }
 0x20a   :  { %v4109_v39 = vpop.eup %4108  ;;  %4134 = vrcp.f32 %v1955_v23  ;;  %v3242_v12 = vmul.f32 -1.442695, %v1520_v52  ;;  %1295 = vadd.xlane.f32.xlu1 %v1104_v8  ;;  %v1218_v13 = vpop.xlane.xlu0 %1217  ;;  %v1168_v47 = vmul.f32 %v5408_v38, %v5983_v61  ;;  %v2876_v15 = vrot.slane %v5523_v24, %v5533_v10 }
 0x20b   :  { %v4111_v35 = vpop.eup %4110  ;;  %v1966_v34 = vadd.f32 1.0, %v4109_v39  ;;  %4136 = vpow2.f32 %v3169_v54  ;;  %v1354_v30 = vpop.xlane.xlu1 %1353  ;;  %v1451_v7 = vadd.f32 %v5105_v4, %v1218_v13  ;;  %v2881_v24 = vrot.slane %v5431_v28, %v5219_v50 }
 0x20c   :  { %v4113_v55 = vpop.eup %4112  ;;  %v2022_v21 = vadd.f32 1.0, %v4111_v35  ;;  %4138 = vpow2.f32 %v3242_v12  ;;  %v1519_v60 = vadd.f32 %v5105_v4, %v1354_v30 }
 0x20d   :  { %v4115_v19 = vpop.eup %4114  ;;  %4140 = vrcp.f32 %v1966_v34  ;;  %v1957_v14 = vadd.f32 1.0, %v4113_v55  ;;  %1421 = vadd.xlane.f32.xlu0 %v1167_v17  ;;  %v3173_v44 = vmul.f32 -1.442695, %v1451_v7 }
 0x20e   :  { %v4117_v53 = vpop.eup %4116  ;;  %4142 = vrcp.f32 %v2022_v21  ;;  %v2030_v8 = vadd.f32 1.0, %v4115_v19  ;;  %v3241_v37 = vmul.f32 -1.442695, %v1519_v60  ;;  %1423 = vadd.xlane.f32.xlu1 %v1168_v47  ;;  %v1222_v58 = vpop.xlane.xlu0 %1221 }
 0x20f   :  { %v5544_v26 = vpop.eup %4118  ;;  %v2552_v5 = vrot.slane %v4117_v53, %v5536_v51  ;;  %4144 = vrcp.f32 %v1957_v14  ;;  %v1232_v38 = vpop.xlane.xlu1 %1231  ;;  %v1453_v18 = vadd.f32 %v5105_v4, %v1222_v58 }
 0x210   :  { %v4121_v1 = vpop.eup %4120  ;;  %4146 = vrcp.f32 %v2030_v8  ;;  %v1458_v54 = vadd.f32 %v5105_v4, %v1232_v38 }
 0x211   :  { %v4123_v22 = vpop.eup %4122  ;;  %4148 = vpow2.f32 %v3171_v32  ;;  %v3175_v23 = vmul.f32 -1.442695, %v1453_v18  ;;  %v2554_v52 = vsel %vm2553_vm13, %v2552_v5, %v5500_v45  ;;  %v2871_v57 = vrot.slane %v4121_v1, %v5536_v51 }
 0x212   :  { %v5556_v39 = vpop.eup %4124  ;;  %v2029_v12 = vadd.f32 1.0, %v4123_v22  ;;  %4150 = vpow2.f32 %v3241_v37  ;;  %v3180_v13 = vmul.f32 -1.442695, %v1458_v54  ;;  %v1226_v43 = vpop.xlane.xlu0 %1225  ;;  %v5559_v35 = vsel %vm2560_vm14, %v2559_v29, %v2554_v52 }
 0x213   :  { %v4127_v34 = vpop.eup %4126  ;;  %4152 = vpow2.f32 %v3173_v44  ;;  %v1358_v30 = vpop.xlane.xlu1 %1357  ;;  %v1455_v7 = vadd.f32 %v5105_v4, %v1226_v43  ;;  %v2872_v45 = vsel %vm2553_vm13, %v2871_v57, %v5527_v25  ;;  %v2569_v5 = vrot.slane %v5427_v56, %v5209_v0 }
 0x214   :  { %v4129_v42 = vpop.eup %4128  ;;  %v2885_v17 = vrot.slane %v4127_v34, %v5209_v0  ;;  %4154 = vrcp.f32 %v2029_v12  ;;  %v1521_v55 = vadd.f32 %v5105_v4, %v1358_v30  ;;  %v5569_v21 = vsel %vm2560_vm14, %v2876_v15, %v2872_v45 }
 0x215   :  { %v4131_v60 = vpop.eup %4130  ;;  %v2021_v61 = vadd.f32 1.0, %v4129_v42  ;;  %4156 = vpow2.f32 %v3180_v13  ;;  %v3177_v28 = vmul.f32 -1.442695, %v1455_v7  ;;  %v2589_v42 = vrot.slane %v5460_v31, %v5250_v40 }
 0x216   :  { %v5571_v47 = vpop.eup %4132  ;;  %v5574_v19 = vsel %vm2462_vm0, %v2885_v17, %v2881_v24  ;;  %v1968_v14 = vadd.f32 1.0, %v4131_v60  ;;  %4158 = vpow2.f32 %v3175_v23  ;;  %v3243_v25 = vmul.f32 -1.442695, %v1521_v55  ;;  %v1360_v32 = vpop.xlane.xlu0 %1359 }
 0x217   :  { %v4135_v53 = vpop.eup %4134  ;;  %4160 = vrcp.f32 %v2021_v61  ;;  %v1236_v8 = vpop.xlane.xlu1 %1235  ;;  %v1522_v37 = vadd.f32 %v5105_v4, %v1360_v32  ;;  %v2579_v24 = vrot.slane %v5446_v41, %v5215_v36  ;;  %v2905_v17 = vrot.slane %v5472_v3, %v5250_v40 }
 0x218   :  { %v4137_v58 = vpop.eup %4136  ;;  %v2565_v44 = vrot.slane %v4135_v53, %v5219_v50  ;;  %4162 = vrcp.f32 %v1968_v14  ;;  %v1460_v38 = vadd.f32 %v5105_v4, %v1236_v8 }
 0x219   :  { %v4139_v18 = vpop.eup %4138  ;;  %v1959_v1 = vadd.f32 1.0, %v4137_v58  ;;  %4164 = vpow2.f32 %v3243_v25  ;;  %v3244_v29 = vmul.f32 -1.442695, %v1522_v37 }
 0x21a   :  { %v5581_v54 = vpop.eup %4140  ;;  %v2570_v15 = vsel %vm2462_vm0, %v2569_v5, %v2565_v44  ;;  %v2032_v22 = vadd.f32 1.0, %v4139_v18  ;;  %4166 = vpow2.f32 %v3177_v28  ;;  %v3182_v23 = vmul.f32 -1.442695, %v1460_v38  ;;  %v1230_v52 = vpop.xlane.xlu0 %1229 }
 0x21b   :  { %v5584_v57 = vpop.eup %4142  ;;  %4168 = vrcp.f32 %v1959_v1  ;;  %v1362_v56 = vpop.xlane.xlu1 %1361  ;;  %v1457_v12 = vadd.f32 %v5105_v4, %v1230_v52  ;;  %v2900_v5 = vrot.slane %v5487_v63, %v5257_v46  ;;  %v2599_v44 = vrot.slane %v5502_v16, %v5260_v62 }
 0x21c   :  { %v4145_v13 = vpop.eup %4144  ;;  %4170 = vrcp.f32 %v2032_v22  ;;  %v1523_v43 = vadd.f32 %v5105_v4, %v1362_v56  ;;  %v2915_v1 = vrot.slane %v5511_v59, %v5260_v62 }
 0x21d   :  { %v5588_v34 = vpop.eup %4146  ;;  %v2574_v30 = vrot.slane %v4145_v13, %v5244_v33  ;;  %4172 = vpow2.f32 %v3182_v23  ;;  %v3179_v7 = vmul.f32 -1.442695, %v1457_v12 }
 0x21e   :  { %v4149_v45 = vpop.eup %4148  ;;  %4174 = vpow2.f32 %v3244_v29  ;;  %v3245_v55 = vmul.f32 -1.442695, %v1523_v43  ;;  %v1364_v60 = vpop.xlane.xlu0 %1363  ;;  %v2910_v29 = vrot.slane %v5529_v20, %v5271_v6  ;;  %v2609_v43 = vrot.slane %v5544_v26, %v5263_v27 }
 0x21f   :  { %v4151_v61 = vpop.eup %4150  ;;  %v2575_v28 = vsel %vm2469_vm1, %v2574_v30, %v2570_v15  ;;  %v1961_v14 = vadd.f32 1.0, %v4149_v45  ;;  %4176 = vpow2.f32 %v3179_v7  ;;  %v1240_v41 = vpop.xlane.xlu1 %1239  ;;  %v1524_v25 = vadd.f32 %v5105_v4, %v1364_v60 }
 0x220   :  { %v4153_v32 = vpop.eup %4152  ;;  %v2580_v53 = vsel %vm2476_vm2, %v2579_v24, %v2575_v28  ;;  %v2031_v8 = vadd.f32 1.0, %v4151_v61  ;;  %4178 = vpow2.f32 %v3245_v55  ;;  %v1462_v37 = vadd.f32 %v5105_v4, %v1240_v41 }
 0x221   :  { %v5601_v58 = vpop.eup %4154  ;;  %4180 = vrcp.f32 %v1961_v14  ;;  %v1963_v38 = vadd.f32 1.0, %v4153_v32  ;;  %v3246_v56 = vmul.f32 -1.442695, %v1524_v25  ;;  %v2925_v45 = vrot.slane %v5556_v39, %v5263_v27 }
 0x222   :  { %v4157_v18 = vpop.eup %4156  ;;  %4182 = vrcp.f32 %v2031_v8  ;;  %v3184_v15 = vmul.f32 -1.442695, %v1462_v37  ;;  %v1234_v22 = vpop.xlane.xlu0 %1233  ;;  %v2920_v55 = vrot.slane %v5571_v47, %v5375_v11  ;;  %v2619_v28 = vrot.slane %v5581_v54, %v5320_v9 }
 0x223   :  { %v4159_v23 = vpop.eup %4158  ;;  %4184 = vrcp.f32 %v1963_v38  ;;  %v1970_v52 = vadd.f32 1.0, %v4157_v18  ;;  %v1366_v63 = vpop.xlane.xlu1 %1365  ;;  %v1459_v12 = vadd.f32 %v5105_v4, %v1234_v22  ;;  %v2895_v14 = vrot.slane %v5584_v57, %v5215_v36 }
 0x224   :  { %v4161_v13 = vpop.eup %4160  ;;  %v1965_v24 = vadd.f32 1.0, %v4159_v23  ;;  %4186 = vpow2.f32 %v3184_v15  ;;  %v1525_v30 = vadd.f32 %v5105_v4, %v1366_v63 }
 0x225   :  { %v5615_v7 = vpop.eup %4162  ;;  %v2890_v60 = vrot.slane %v4161_v13, %v5244_v33  ;;  %4188 = vrcp.f32 %v1970_v52  ;;  %v3181_v47 = vmul.f32 -1.442695, %v1459_v12 }
 0x226   :  { %v4165_v61 = vpop.eup %4164  ;;  %4190 = vrcp.f32 %v1965_v24  ;;  %v3247_v41 = vmul.f32 -1.442695, %v1525_v30  ;;  %v1368_v25 = vpop.xlane.xlu0 %1367  ;;  %v2629_v54 = vrot.slane %v5615_v7, %v5425_v2 }
 0x227   :  { %v4167_v32 = vpop.eup %4166  ;;  %v2891_v8 = vsel %vm2469_vm1, %v2890_v60, %v5574_v19  ;;  %v2033_v37 = vadd.f32 1.0, %v4165_v61  ;;  %4192 = vpow2.f32 %v3246_v56  ;;  %v1244_v38 = vpop.xlane.xlu1 %1243  ;;  %v1526_v19 = vadd.f32 %v5105_v4, %v1368_v25 }
 0x228   :  { %v4169_v18 = vpop.eup %4168  ;;  %v2896_v15 = vsel %vm2476_vm2, %v2895_v14, %v2891_v8  ;;  %v1967_v22 = vadd.f32 1.0, %v4167_v32  ;;  %4194 = vpow2.f32 %v3247_v41  ;;  %v1464_v23 = vadd.f32 %v5105_v4, %v1244_v38 }
 0x229   :  { %v5630_v52 = vpop.eup %4170  ;;  %v2901_v57 = vsel %vm2483_vm3, %v2900_v5, %v2896_v15  ;;  %v2584_v63 = vrot.slane %v4169_v18, %v5257_v46  ;;  %4196 = vrcp.f32 %v2033_v37  ;;  %v2935_v56 = vrot.slane %v5588_v34, %v5320_v9 }
 0x22a   :  { %v4173_v13 = vpop.eup %4172  ;;  %v2906_v12 = vsel %vm2490_vm4, %v2905_v17, %v2901_v57  ;;  %4198 = vrcp.f32 %v1967_v22  ;;  %v3186_v24 = vmul.f32 -1.442695, %v1464_v23  ;;  %v1238_v30 = vpop.xlane.xlu0 %1237  ;;  %v2930_v5 = vrot.slane %v5601_v58, %v5439_v48 }
 0x22b   :  { %v4175_v60 = vpop.eup %4174  ;;  %v2585_v61 = vsel %vm2483_vm3, %v2584_v63, %v2580_v53  ;;  %4200 = vpow2.f32 %v3181_v47  ;;  %v1248_v14 = vpop.xlane.xlu1 %1247  ;;  %v1461_v41 = vadd.f32 %v5105_v4, %v1238_v30  ;;  %v1972_v17 = vadd.f32 1.0, %v4173_v13 }
 0x22c   :  { %v4177_v25 = vpop.eup %4176  ;;  %v2590_v3 = vsel %vm2490_vm4, %v2589_v42, %v2585_v61  ;;  %v2034_v32 = vadd.f32 1.0, %v4175_v60  ;;  %v1466_v8 = vadd.f32 %v5105_v4, %v1248_v14  ;;  %4202 = vpow2.f32 %v3186_v24 }
 0x22d   :  { %v4179_v37 = vpop.eup %4178  ;;  %v1969_v38 = vadd.f32 1.0, %v4177_v25  ;;  %v3248_v58 = vmul.f32 -1.442695, %v1526_v19  ;;  %v2911_v53 = vsel %vm2497_vm5, %v2910_v29, %v2906_v12  ;;  %v3183_v15 = vmul.f32 -1.442695, %v1461_v41 }
 0x22e   :  { %v4181_v47 = vpop.eup %4180  ;;  %4204 = vrcp.f32 %v2034_v32  ;;  %v3188_v18 = vmul.f32 -1.442695, %v1466_v8  ;;  %v1372_v31 = vpop.xlane.xlu0 %1371  ;;  %v2916_v42 = vsel %vm2504_vm6, %v2915_v1, %v2911_v53  ;;  %v2035_v19 = vadd.f32 1.0, %v4179_v37 }
 0x22f   :  { %v4183_v22 = vpop.eup %4182  ;;  %v2594_v23 = vrot.slane %v4181_v47, %v5271_v6  ;;  %4206 = vrcp.f32 %v1969_v38  ;;  %v1252_v57 = vpop.xlane.xlu1 %1251  ;;  %v1528_v63 = vadd.f32 %v5105_v4, %v1372_v31  ;;  %v2921_v20 = vsel %vm2511_vm7, %v2920_v55, %v2916_v42 }
 0x230   :  { %v4185_v29 = vpop.eup %4184  ;;  %4208 = vrcp.f32 %v1972_v17  ;;  %v1468_v13 = vadd.f32 %v5105_v4, %v1252_v57  ;;  %v2926_v59 = vsel %vm2518_vm8, %v2925_v45, %v2921_v20  ;;  %v2945_v30 = vrot.slane %v5630_v52, %v5425_v2 }
 0x231   :  { %v4187_v1 = vpop.eup %4186  ;;  %v2595_v12 = vsel %vm2497_vm5, %v2594_v23, %v2590_v3  ;;  %v2604_v24 = vrot.slane %v4185_v29, %v5375_v11  ;;  %4210 = vpow2.f32 %v3248_v58  ;;  %v3250_v61 = vmul.f32 -1.442695, %v1528_v63 }
 0x232   :  { %v5670_v55 = vpop.eup %4188  ;;  %v2600_v60 = vsel %vm2504_vm6, %v2599_v44, %v2595_v12  ;;  %4212 = vpow2.f32 %v3188_v18  ;;  %v3190_v39 = vmul.f32 -1.442695, %v1468_v13  ;;  %v1242_v45 = vpop.xlane.xlu0 %1241  ;;  %v2940_v41 = vrot.slane %v4183_v22, %v5449_v49 }
 0x233   :  { %v4191_v14 = vpop.eup %4190  ;;  %v2605_v25 = vsel %vm2511_vm7, %v2604_v24, %v2600_v60  ;;  %4214 = vpow2.f32 %v3183_v15  ;;  %v1256_v3 = vpop.xlane.xlu1 %1255  ;;  %v1463_v52 = vadd.f32 %v5105_v4, %v1242_v45  ;;  %v2931_v58 = vsel %vm2525_vm9, %v2930_v5, %v2926_v59 }
 0x234   :  { %v4193_v17 = vpop.eup %4192  ;;  %v2610_v16 = vsel %vm2518_vm8, %v2609_v43, %v2605_v25  ;;  %v2614_v44 = vrot.slane %v4191_v14, %v5439_v48  ;;  %4216 = vrcp.f32 %v2035_v19  ;;  %v1470_v32 = vadd.f32 %v5105_v4, %v1256_v3 }
 0x235   :  { %v4195_v8 = vpop.eup %4194  ;;  %v2036_v37 = vadd.f32 1.0, %v4193_v17  ;;  %4218 = vpow2.f32 %v3190_v39  ;;  %v3185_v38 = vmul.f32 -1.442695, %v1463_v52  ;;  %v2936_v5 = vsel %vm2532_vm10, %v2935_v56, %v2931_v58 }
 0x236   :  { %v4197_v53 = vpop.eup %4196  ;;  %v2615_v47 = vsel %vm2525_vm9, %v2614_v44, %v2610_v16  ;;  %v2037_v18 = vadd.f32 1.0, %v4195_v8  ;;  %4220 = vpow2.f32 %v3250_v61  ;;  %v3192_v15 = vmul.f32 -1.442695, %v1470_v32  ;;  %v1370_v26 = vpop.xlane.xlu0 %1369 }
 0x237   :  { %v4199_v31 = vpop.eup %4198  ;;  %v2620_v43 = vsel %vm2532_vm10, %v2619_v28, %v2615_v47  ;;  %4222 = vrcp.f32 %v2036_v37  ;;  %v1260_v42 = vpop.xlane.xlu1 %1259  ;;  %v1527_v22 = vadd.f32 %v5105_v4, %v1370_v26  ;;  %v2941_v20 = vsel %vm2539_vm11, %v2940_v41, %v2936_v5 }
 0x238   :  { %v4201_v23 = vpop.eup %4200  ;;  %v2624_v57 = vrot.slane %v4199_v31, %v5449_v49  ;;  %4224 = vrcp.f32 %v2037_v18  ;;  %v1472_v63 = vadd.f32 %v5105_v4, %v1260_v42  ;;  %v2946_v29 = vsel %vm2546_vm12, %v2945_v30, %v2941_v20 }
 0x239   :  { %v1971_v28 = vadd.f32 1.0, %v4201_v23  ;;  %4226 = vpow2.f32 %v3192_v15  ;;  %v4203_v19 = vpop.eup %4202  ;;  %v3249_v13 = vmul.f32 -1.442695, %v1527_v22  ;;  %v1974_v24 = vadd.f32 1.0, %v4187_v1 }
 0x23a   :  { %v2625_v34 = vsel %vm2539_vm11, %v2624_v57, %v2620_v43  ;;  %4228 = vpow2.f32 %v3185_v38  ;;  %v3194_v56 = vmul.f32 -1.442695, %v1472_v63  ;;  %v1376_v59 = vpop.xlane.xlu0 %1375  ;;  %v2950_v30 = vrot.slane %v4197_v53, %v5536_v51 }
 0x23b   :  { %v4205_v12 = vpop.eup %4204  ;;  %4230 = vrcp.f32 %v1971_v28  ;;  %v1264_v60 = vpop.xlane.xlu1 %1263  ;;  %v1530_v39 = vadd.f32 %v5105_v4, %v1376_v59  ;;  %v2630_v61 = vsel %vm2546_vm12, %v2629_v54, %v2625_v34  ;;  %v2639_v52 = vrot.slane %v5670_v55, %v5533_v10 }
 0x23c   :  { %v4207_v7 = vpop.eup %4206  ;;  %v1474_v45 = vadd.f32 %v5105_v4, %v1264_v60  ;;  %4232 = vpow2.f32 %v3194_v56  ;;  %v2955_v1 = vrot.slane %v4205_v12, %v5533_v10  ;;  %v1976_v17 = vadd.f32 1.0, %v4203_v19 }
 0x23d   :  { %v5707_v14 = vpop.eup %4208  ;;  %v2634_v41 = vrot.slane %v4207_v7, %v5536_v51  ;;  %v3252_v25 = vmul.f32 -1.442695, %v1530_v39  ;;  %4234 = vpow2.f32 %v3249_v13  ;;  %v2951_v44 = vsel %vm2553_vm13, %v2950_v30, %v2946_v29 }
 0x23e   :  { %v4211_v3 = vpop.eup %4210  ;;  %v1246_v16 = vpop.xlane.xlu0 %1245  ;;  %4236 = vrcp.f32 %v1974_v24  ;;  %v3196_v47 = vmul.f32 -1.442695, %v1474_v45  ;;  %v5719_v31 = vsel %vm2560_vm14, %v2955_v1, %v2951_v44  ;;  %v2648_v60 = vrot.slane %v5707_v14, %v5209_v0 }
 0x23f   :  { %v4213_v32 = vpop.eup %4212  ;;  %v2038_v8 = vadd.f32 1.0, %v4211_v3  ;;  %v1392_v37 = vpop.xlane.xlu1 %1391  ;;  %v1465_v38 = vadd.f32 %v5105_v4, %v1246_v16  ;;  %v2635_v58 = vsel %vm2553_vm13, %v2634_v41, %v2630_v61  ;;  %4238 = vpow2.f32 %v3252_v25 }
 0x240   :  { %v4215_v53 = vpop.eup %4214  ;;  %v1538_v18 = vadd.f32 %v5105_v4, %v1392_v37  ;;  %v2640_v55 = vsel %vm2560_vm14, %v2639_v52, %v2635_v58  ;;  %v1978_v42 = vadd.f32 1.0, %v4213_v32 }
 0x241   :  { %v4217_v15 = vpop.eup %4216  ;;  %4240 = vrcp.f32 %v2038_v8  ;;  %v1973_v26 = vadd.f32 1.0, %v4215_v53  ;;  %v5723_v23 = vsel %vm3115_vm15, %v2640_v55, %v5559_v35  ;;  %v3187_v63 = vmul.f32 -1.442695, %v1465_v38 }
 0x242   :  { %v4219_v43 = vpop.eup %4218  ;;  %4242 = vrcp.f32 %v1976_v17  ;;  %v3260_v22 = vmul.f32 -1.442695, %v1538_v18  ;;  %v1374_v5 = vpop.xlane.xlu0 %1373  ;;  %v2960_v34 = vrot.slane %v4217_v15, %v5219_v50  ;;  %vm3117_vm15 = vcmask 1042434  }
 0x243   :  { %v4221_v57 = vpop.eup %4220  ;;  %4244 = vrcp.f32 %v1973_v26  ;;  %v1390_v20 = vpop.xlane.xlu1 %1389  ;;  %v1529_v54 = vadd.f32 %v5105_v4, %v1374_v5  ;;  %v1980_v41 = vadd.f32 1.0, %v4219_v43 }
 0x244   :  { %v4223_v28 = vpop.eup %4222  ;;  %4246 = vpow2.f32 %v3196_v47  ;;  %v1537_v29 = vadd.f32 %v5105_v4, %v1390_v20  ;;  %v2040_v52 = vadd.f32 1.0, %v4221_v57 }
 0x245   :  { %v4225_v19 = vpop.eup %4224  ;;  %v2964_v56 = vrot.slane %v4223_v28, %v5209_v0  ;;  %4248 = vpow2.f32 %v3260_v22  ;;  %v3251_v61 = vmul.f32 -1.442695, %v1529_v54 }
 0x246   :  { %v4227_v13 = vpop.eup %4226  ;;  %v2969_v35 = vrot.slane %v4225_v19, %v5244_v33  ;;  %4250 = vrcp.f32 %v1978_v42  ;;  %v3259_v59 = vmul.f32 -1.442695, %v1537_v29  ;;  %v1380_v12 = vpop.xlane.xlu0 %1379 }
 0x247   :  { %v4229_v24 = vpop.eup %4228  ;;  %v2965_v39 = vsel %vm2462_vm0, %v2964_v56, %v2960_v34  ;;  %4252 = vpow2.f32 %v3187_v63  ;;  %v1268_v7 = vpop.xlane.xlu1 %1267  ;;  %v1532_v17 = vadd.f32 %v5105_v4, %v1380_v12  ;;  %v1982_v8 = vadd.f32 1.0, %v4227_v13 }
 0x248   :  { %v4231_v45 = vpop.eup %4230  ;;  %v2970_v30 = vsel %vm2469_vm1, %v2969_v35, %v2965_v39  ;;  %v1975_v25 = vadd.f32 1.0, %v4229_v24  ;;  %v1476_v1 = vadd.f32 %v5105_v4, %v1268_v7  ;;  %4254 = vpow2.f32 %v3259_v59 }
 0x249   :  { %v2644_v3 = vrot.slane %v4231_v45, %v5219_v50  ;;  %v4233_v16 = vpop.eup %4232  ;;  %v3254_v15 = vmul.f32 -1.442695, %v1532_v17 }
 0x24a   :  { %4256 = vrcp.f32 %v1975_v25  ;;  %v1250_v14 = vpop.xlane.xlu0 %1249  ;;  %v4235_v44 = vpop.eup %4234  ;;  %v3198_v47 = vmul.f32 -1.442695, %v1476_v1  ;;  %v1984_v43 = vadd.f32 1.0, %v4233_v16 }
 0x24b   :  { %v2649_v32 = vsel %vm2462_vm0, %v2648_v60, %v2644_v3  ;;  %4258 = vpow2.f32 %v3251_v61  ;;  %v1396_v37 = vpop.xlane.xlu1 %1395  ;;  %v1467_v38 = vadd.f32 %v5105_v4, %v1250_v14  ;;  %v4237_v58 = vpop.eup %4236  ;;  %v2039_v53 = vadd.f32 1.0, %v4235_v44 }
 0x24c   :  { %4260 = vrcp.f32 %v1980_v41  ;;  %v1540_v18 = vadd.f32 %v5105_v4, %v1396_v37  ;;  %v4239_v55 = vpop.eup %4238  ;;  %v2658_v35 = vrot.slane %v4237_v58, %v5215_v36 }
 0x24d   :  { %4262 = vrcp.f32 %v2040_v52  ;;  %v3189_v57 = vmul.f32 -1.442695, %v1467_v38  ;;  %v2042_v56 = vadd.f32 1.0, %v4239_v55 }
 0x24e   :  { %v4241_v26 = vpop.eup %4240  ;;  %4264 = vrcp.f32 %v2039_v53  ;;  %v1378_v42 = vpop.xlane.xlu0 %1377  ;;  %v3262_v28 = vmul.f32 -1.442695, %v1540_v18 }
 0x24f   :  { %v4243_v22 = vpop.eup %4242  ;;  %v2974_v5 = vrot.slane %v4241_v26, %v5215_v36  ;;  %4266 = vrcp.f32 %v1982_v8  ;;  %v1272_v63 = vpop.xlane.xlu1 %1271  ;;  %v1531_v20 = vadd.f32 %v5105_v4, %v1378_v42 }
 0x250   :  { %v4245_v54 = vpop.eup %4244  ;;  %4268 = vpow2.f32 %v3198_v47  ;;  %v1478_v41 = vadd.f32 %v5105_v4, %v1272_v63  ;;  %v2668_v14 = vrot.slane %v4243_v22, %v5250_v40 }
 0x251   :  { %v4247_v29 = vpop.eup %4246  ;;  %v5743_v19 = vsel %vm2476_vm2, %v2974_v5, %v2970_v30  ;;  %v2653_v34 = vrot.slane %v4245_v54, %v5244_v33  ;;  %4270 = vpow2.f32 %v3254_v15  ;;  %v3253_v59 = vmul.f32 -1.442695, %v1531_v20 }
 0x252   :  { %v4249_v13 = vpop.eup %4248  ;;  %4272 = vrcp.f32 %v1984_v43  ;;  %v1384_v12 = vpop.xlane.xlu0 %1383  ;;  %v1986_v30 = vadd.f32 1.0, %v4247_v29  ;;  %v3200_v38 = vmul.f32 -1.442695, %v1478_v41 }
 0x253   :  { %v5747_v24 = vpop.eup %4250  ;;  %v2654_v60 = vsel %vm2469_vm1, %v2653_v34, %v2649_v32  ;;  %4274 = vpow2.f32 %v3189_v57  ;;  %v1400_v39 = vpop.xlane.xlu1 %1399  ;;  %v1534_v61 = vadd.f32 %v5105_v4, %v1384_v12  ;;  %v2050_v25 = vadd.f32 1.0, %v4249_v13 }
 0x254   :  { %v4253_v7 = vpop.eup %4252  ;;  %v2659_v45 = vsel %vm2476_vm2, %v2658_v35, %v2654_v60  ;;  %4276 = vpow2.f32 %v3262_v28  ;;  %v1542_v58 = vadd.f32 %v5105_v4, %v1400_v39 }
 0x255   :  { %4278 = vrcp.f32 %v2042_v56  ;;  %v1977_v1 = vadd.f32 1.0, %v4253_v7  ;;  %v4255_v3 = vpop.eup %4254  ;;  %v3256_v52 = vmul.f32 -1.442695, %v1534_v61 }
 0x256   :  { %4280 = vpow2.f32 %v3253_v59  ;;  %v1254_v17 = vpop.xlane.xlu0 %1253  ;;  %v2049_v47 = vadd.f32 1.0, %v4255_v3  ;;  %v3264_v28 = vmul.f32 -1.442695, %v1542_v58 }
 0x257   :  { %v4257_v16 = vpop.eup %4256  ;;  %4282 = vrcp.f32 %v1977_v1  ;;  %v1398_v44 = vpop.xlane.xlu1 %1397  ;;  %v1469_v32 = vadd.f32 %v5105_v4, %v1254_v17 }
 0x258   :  { %v4259_v8 = vpop.eup %4258  ;;  %v2663_v37 = vrot.slane %v4257_v16, %v5257_v46  ;;  %4284 = vrcp.f32 %v1986_v30  ;;  %v1541_v55 = vadd.f32 %v5105_v4, %v1398_v44 }
 0x259   :  { %v5757_v53 = vpop.eup %4260  ;;  %4286 = vrcp.f32 %v2050_v25  ;;  %v2041_v18 = vadd.f32 1.0, %v4259_v8  ;;  %v3191_v43 = vmul.f32 -1.442695, %v1469_v32 }
 0x25a   :  { %v4263_v15 = vpop.eup %4262  ;;  %v2664_v26 = vsel %vm2483_vm3, %v2663_v37, %v2659_v45  ;;  %4288 = vpow2.f32 %v3256_v52  ;;  %v1382_v42 = vpop.xlane.xlu0 %1381  ;;  %v3263_v13 = vmul.f32 -1.442695, %v1541_v55 }
 0x25b   :  { %v4265_v22 = vpop.eup %4264  ;;  %v2669_v5 = vsel %vm2490_vm4, %v2668_v14, %v2664_v26  ;;  %4290 = vrcp.f32 %v2041_v18  ;;  %v1276_v57 = vpop.xlane.xlu1 %1275  ;;  %v1533_v63 = vadd.f32 %v5105_v4, %v1382_v42  ;;  %v2984_v56 = vrot.slane %v4263_v15, %v5250_v40 }
 0x25c   :  { %v5763_v20 = vpop.eup %4266  ;;  %v2979_v54 = vrot.slane %v4265_v22, %v5257_v46  ;;  %4292 = vpow2.f32 %v3200_v38  ;;  %v1480_v29 = vadd.f32 %v5105_v4, %v1276_v57 }
 0x25d   :  { %v4269_v34 = vpop.eup %4268  ;;  %4294 = vrcp.f32 %v2049_v47  ;;  %v3255_v35 = vmul.f32 -1.442695, %v1533_v63 }
 0x25e   :  { %v4271_v59 = vpop.eup %4270  ;;  %v2980_v12 = vsel %vm2483_vm3, %v2979_v54, %v5743_v19  ;;  %4296 = vpow2.f32 %v3191_v43  ;;  %v3202_v60 = vmul.f32 -1.442695, %v1480_v29  ;;  %v1388_v39 = vpop.xlane.xlu0 %1387  ;;  %v1988_v44 = vadd.f32 1.0, %v4269_v34 }
 0x25f   :  { %v5770_v61 = vpop.eup %4272  ;;  %v2985_v7 = vsel %vm2490_vm4, %v2984_v56, %v2980_v12  ;;  %4298 = vpow2.f32 %v3255_v35  ;;  %v1404_v45 = vpop.xlane.xlu1 %1403  ;;  %v2044_v41 = vadd.f32 1.0, %v4271_v59  ;;  %v1536_v52 = vadd.f32 %v5105_v4, %v1388_v39 }
 0x260   :  { %v4275_v30 = vpop.eup %4274  ;;  %4300 = vpow2.f32 %v3264_v28  ;;  %v1544_v25 = vadd.f32 %v5105_v4, %v1404_v45  ;;  %v2678_v43 = vrot.slane %v5747_v24, %v5260_v62 }
 0x261   :  { %v4277_v1 = vpop.eup %4276  ;;  %v1979_v3 = vadd.f32 1.0, %v4275_v30  ;;  %4302 = vpow2.f32 %v3263_v13  ;;  %v3258_v15 = vmul.f32 -1.442695, %v1536_v52 }
 0x262   :  { %v4279_v19 = vpop.eup %4278  ;;  %4304 = vpow2.f32 %v3202_v60  ;;  %v3266_v17 = vmul.f32 -1.442695, %v1544_v25  ;;  %v1258_v16 = vpop.xlane.xlu0 %1257  ;;  %v2052_v38 = vadd.f32 1.0, %v4277_v1 }
 0x263   :  { %v4281_v14 = vpop.eup %4280  ;;  %4306 = vrcp.f32 %v1979_v3  ;;  %v1402_v32 = vpop.xlane.xlu1 %1401  ;;  %v1471_v8 = vadd.f32 %v5105_v4, %v1258_v16 }
 0x264   :  { %v4283_v37 = vpop.eup %4282  ;;  %4308 = vrcp.f32 %v2044_v41  ;;  %v2043_v58 = vadd.f32 1.0, %v4281_v14  ;;  %v1543_v47 = vadd.f32 %v5105_v4, %v1402_v32 }
 0x265   :  { %v5777_v18 = vpop.eup %4284  ;;  %v2673_v55 = vrot.slane %v4283_v37, %v5271_v6  ;;  %4310 = vpow2.f32 %v3266_v17  ;;  %v3193_v54 = vmul.f32 -1.442695, %v1471_v8 }
 0x266   :  { %v5780_v26 = vpop.eup %4286  ;;  %4312 = vrcp.f32 %v2043_v58  ;;  %v3265_v42 = vmul.f32 -1.442695, %v1543_v47  ;;  %v1386_v22 = vpop.xlane.xlu0 %1385 }
 0x267   :  { %v4289_v57 = vpop.eup %4288  ;;  %v2674_v63 = vsel %vm2497_vm5, %v2673_v55, %v2669_v5  ;;  %4314 = vrcp.f32 %v1988_v44  ;;  %v1280_v28 = vpop.xlane.xlu1 %1279  ;;  %v1535_v24 = vadd.f32 %v5105_v4, %v1386_v22  ;;  %v2994_v5 = vrot.slane %v4279_v19, %v5260_v62 }
 0x268   :  { %v4291_v29 = vpop.eup %4290  ;;  %4316 = vrcp.f32 %v2052_v38  ;;  %v2679_v34 = vsel %vm2504_vm6, %v2678_v43, %v2674_v63  ;;  %v1482_v56 = vadd.f32 %v5105_v4, %v1280_v28  ;;  %v2046_v59 = vadd.f32 1.0, %v4289_v57 }
 0x269   :  { %v4293_v13 = vpop.eup %4292  ;;  %v2989_v35 = vrot.slane %v4291_v29, %v5271_v6  ;;  %4318 = vpow2.f32 %v3258_v15  ;;  %v3257_v19 = vmul.f32 -1.442695, %v1535_v24  ;;  %v2688_v57 = vrot.slane %v5757_v53, %v5263_v27 }
 0x26a   :  { %v5789_v12 = vpop.eup %4294  ;;  %4320 = vpow2.f32 %v3265_v42  ;;  %v1262_v60 = vpop.xlane.xlu0 %1261  ;;  %v3204_v3 = vmul.f32 -1.442695, %v1482_v56  ;;  %v1990_v32 = vadd.f32 1.0, %v4293_v13 }
 0x26b   :  { %v4297_v39 = vpop.eup %4296  ;;  %v2990_v45 = vsel %vm2497_vm5, %v2989_v35, %v2985_v7  ;;  %4322 = vpow2.f32 %v3193_v54  ;;  %v1408_v30 = vpop.xlane.xlu1 %1407  ;;  %v1473_v41 = vadd.f32 %v5105_v4, %v1262_v60 }
 0x26c   :  { %v4299_v25 = vpop.eup %4298  ;;  %v1981_v1 = vadd.f32 1.0, %v4297_v39  ;;  %v1546_v52 = vadd.f32 %v5105_v4, %v1408_v30  ;;  %v2995_v17 = vsel %vm2504_vm6, %v2994_v5, %v2990_v45  ;;  %4324 = vrcp.f32 %v2046_v59 }
 0x26d   :  { %v4301_v16 = vpop.eup %4300  ;;  %v2045_v14 = vadd.f32 1.0, %v4299_v25  ;;  %v3195_v37 = vmul.f32 -1.442695, %v1473_v41 }
 0x26e   :  { %v4303_v44 = vpop.eup %4302  ;;  %4326 = vrcp.f32 %v1981_v1  ;;  %v1266_v8 = vpop.xlane.xlu0 %1265  ;;  %v3268_v55 = vmul.f32 -1.442695, %v1546_v52  ;;  %v2054_v42 = vadd.f32 1.0, %v4301_v16 }
 0x26f   :  { %v4305_v7 = vpop.eup %4304  ;;  %4328 = vrcp.f32 %v2045_v14  ;;  %v1406_v38 = vpop.xlane.xlu1 %1405  ;;  %v1475_v58 = vadd.f32 %v5105_v4, %v1266_v8  ;;  %v2053_v63 = vadd.f32 1.0, %v4303_v44 }
 0x270   :  { %v4307_v47 = vpop.eup %4306  ;;  %4330 = vpow2.f32 %v3204_v3  ;;  %v1992_v13 = vadd.f32 1.0, %v4305_v7  ;;  %v1545_v53 = vadd.f32 %v5105_v4, %v1406_v38 }
 0x271   :  { %v4309_v15 = vpop.eup %4308  ;;  %v2683_v43 = vrot.slane %v4307_v47, %v5375_v11  ;;  %4332 = vpow2.f32 %v3257_v19  ;;  %v3197_v54 = vmul.f32 -1.442695, %v1475_v58  ;;  %v2698_v47 = vrot.slane %v5763_v20, %v5320_v9 }
 0x272   :  { %v4311_v22 = vpop.eup %4310  ;;  %4334 = vrcp.f32 %v1990_v32  ;;  %v1394_v28 = vpop.xlane.xlu0 %1393  ;;  %v3004_v45 = vrot.slane %v4309_v15, %v5263_v27  ;;  %v3267_v44 = vmul.f32 -1.442695, %v1545_v53 }
 0x273   :  { %v4313_v29 = vpop.eup %4312  ;;  %v2684_v56 = vsel %vm2511_vm7, %v2683_v43, %v2679_v34  ;;  %4336 = vpow2.f32 %v3195_v37  ;;  %v1284_v35 = vpop.xlane.xlu1 %1283  ;;  %v1539_v59 = vadd.f32 %v5105_v4, %v1394_v28  ;;  %v2056_v34 = vadd.f32 1.0, %v4311_v22 }
 0x274   :  { %v5802_v24 = vpop.eup %4314  ;;  %v2999_v5 = vrot.slane %v4313_v29, %v5375_v11  ;;  %v2689_v60 = vsel %vm2518_vm8, %v2688_v57, %v2684_v56  ;;  %4338 = vpow2.f32 %v3268_v55  ;;  %v1484_v32 = vadd.f32 %v5105_v4, %v1284_v35 }
 0x275   :  { %v5807_v39 = vpop.eup %4316  ;;  %4340 = vrcp.f32 %v2054_v42  ;;  %v3261_v41 = vmul.f32 -1.442695, %v1539_v59 }
 0x276   :  { %v4319_v30 = vpop.eup %4318  ;;  %4342 = vpow2.f32 %v3197_v54  ;;  %v1270_v25 = vpop.xlane.xlu0 %1269  ;;  %v3000_v1 = vsel %vm2511_vm7, %v2999_v5, %v2995_v17  ;;  %v3206_v57 = vmul.f32 -1.442695, %v1484_v32 }
 0x277   :  { %v4321_v3 = vpop.eup %4320  ;;  %4344 = vrcp.f32 %v2053_v63  ;;  %v1412_v52 = vpop.xlane.xlu1 %1411  ;;  %v1477_v16 = vadd.f32 %v5105_v4, %v1270_v25  ;;  %v3005_v14 = vsel %vm2518_vm8, %v3004_v45, %v3000_v1  ;;  %v2048_v8 = vadd.f32 1.0, %v4319_v30 }
 0x278   :  { %v4323_v19 = vpop.eup %4322  ;;  %4346 = vrcp.f32 %v1992_v13  ;;  %v2055_v22 = vadd.f32 1.0, %v4321_v3  ;;  %v1548_v28 = vadd.f32 %v5105_v4, %v1412_v52 }
 0x279   :  { %4348 = vrcp.f32 %v2056_v34  ;;  %v1983_v7 = vadd.f32 1.0, %v4323_v19  ;;  %v4325_v37 = vpop.eup %4324  ;;  %v3199_v38 = vmul.f32 -1.442695, %v1477_v16 }
 0x27a   :  { %4350 = vpow2.f32 %v3261_v41  ;;  %v1274_v58 = vpop.xlane.xlu0 %1273  ;;  %v3014_v20 = vrot.slane %v4325_v37, %v5320_v9  ;;  %v3270_v52 = vmul.f32 -1.442695, %v1548_v28 }
 0x27b   :  { %v4327_v17 = vpop.eup %4326  ;;  %4352 = vrcp.f32 %v1983_v7  ;;  %v1410_v55 = vpop.xlane.xlu1 %1409  ;;  %v1479_v15 = vadd.f32 %v5105_v4, %v1274_v58 }
 0x27c   :  { %v4329_v43 = vpop.eup %4328  ;;  %v2693_v42 = vrot.slane %v4327_v17, %v5439_v48  ;;  %4354 = vpow2.f32 %v3267_v44  ;;  %v1547_v35 = vadd.f32 %v5105_v4, %v1410_v55 }
 0x27d   :  { %v4331_v63 = vpop.eup %4330  ;;  %v3009_v54 = vrot.slane %v4329_v43, %v5439_v48  ;;  %4356 = vrcp.f32 %v2048_v8  ;;  %v3201_v29 = vmul.f32 -1.442695, %v1479_v15 }
 0x27e   :  { %v4333_v56 = vpop.eup %4332  ;;  %v2694_v13 = vsel %vm2525_vm9, %v2693_v42, %v2689_v60  ;;  %4358 = vpow2.f32 %v3199_v38  ;;  %v1278_v59 = vpop.xlane.xlu0 %1277  ;;  %v1994_v25 = vadd.f32 1.0, %v4331_v63  ;;  %v3269_v44 = vmul.f32 -1.442695, %v1547_v35 }
 0x27f   :  { %v5823_v5 = vpop.eup %4334  ;;  %v2047_v53 = vadd.f32 1.0, %v4333_v56  ;;  %4360 = vpow2.f32 %v3201_v29  ;;  %v1288_v45 = vpop.xlane.xlu1 %1287  ;;  %v1481_v34 = vadd.f32 %v5105_v4, %v1278_v59  ;;  %v2699_v30 = vsel %vm2532_vm10, %v2698_v47, %v2694_v13 }
 0x280   :  { %v4337_v41 = vpop.eup %4336  ;;  %4362 = vrcp.f32 %v2055_v22  ;;  %v3010_v1 = vsel %vm2525_vm9, %v3009_v54, %v3005_v14  ;;  %v1486_v42 = vadd.f32 %v5105_v4, %v1288_v45  ;;  %v2708_v59 = vrot.slane %v5770_v61, %v5425_v2 }
 0x281   :  { %v4339_v3 = vpop.eup %4338  ;;  %4364 = vrcp.f32 %v2047_v53  ;;  %v1985_v60 = vadd.f32 1.0, %v4337_v41  ;;  %v5829_v16 = vsel %vm2532_vm10, %v3014_v20, %v3010_v1  ;;  %v3203_v7 = vmul.f32 -1.442695, %v1481_v34 }
 0x282   :  { %v5831_v19 = vpop.eup %4340  ;;  %4366 = vpow2.f32 %v3206_v57  ;;  %v1282_v32 = vpop.xlane.xlu0 %1281  ;;  %v2058_v14 = vadd.f32 1.0, %v4339_v3  ;;  %v3208_v41 = vmul.f32 -1.442695, %v1486_v42 }
 0x283   :  { %v4343_v8 = vpop.eup %4342  ;;  %4368 = vrcp.f32 %v1985_v60  ;;  %v1416_v37 = vpop.xlane.xlu1 %1415  ;;  %v1483_v38 = vadd.f32 %v5105_v4, %v1282_v32 }
 0x284   :  { %v5834_v58 = vpop.eup %4344  ;;  %4370 = vrcp.f32 %v1994_v25  ;;  %v1987_v47 = vadd.f32 1.0, %v4343_v8  ;;  %v1550_v22 = vadd.f32 %v5105_v4, %v1416_v37 }
 0x285   :  { %v5836_v17 = vpop.eup %4346  ;;  %4372 = vpow2.f32 %v3270_v52  ;;  %v3205_v57 = vmul.f32 -1.442695, %v1483_v38 }
 0x286   :  { %v5838_v55 = vpop.eup %4348  ;;  %4374 = vpow2.f32 %v3269_v44  ;;  %v1286_v15 = vpop.xlane.xlu0 %1285  ;;  %v3272_v25 = vmul.f32 -1.442695, %v1550_v22 }
 0x287   :  { %v4351_v43 = vpop.eup %4350  ;;  %4376 = vpow2.f32 %v3203_v7  ;;  %v1414_v63 = vpop.xlane.xlu1 %1413  ;;  %v1485_v13 = vadd.f32 %v5105_v4, %v1286_v15 }
 0x288   :  { %v4353_v54 = vpop.eup %4352  ;;  %4378 = vrcp.f32 %v2058_v14  ;;  %v2051_v28 = vadd.f32 1.0, %v4351_v43  ;;  %v1549_v29 = vadd.f32 %v5105_v4, %v1414_v63 }
 0x289   :  { %v4355_v56 = vpop.eup %4354  ;;  %v2703_v20 = vrot.slane %v4353_v54, %v5449_v49  ;;  %4380 = vrcp.f32 %v1987_v47  ;;  %v3207_v61 = vmul.f32 -1.442695, %v1485_v13 }
 0x28a   :  { %v4357_v35 = vpop.eup %4356  ;;  %4382 = vrcp.f32 %v2051_v28  ;;  %v3271_v53 = vmul.f32 -1.442695, %v1549_v29  ;;  %v1420_v45 = vpop.xlane.xlu0 %1419  ;;  %v2718_v29 = vrot.slane %v5777_v18, %v5533_v10 }
 0x28b   :  { %v4359_v34 = vpop.eup %4358  ;;  %4384 = vpow2.f32 %v3205_v57  ;;  %v1292_v1 = vpop.xlane.xlu1 %1291  ;;  %v2704_v3 = vsel %vm2539_vm11, %v2703_v20, %v2699_v30  ;;  %v1552_v32 = vadd.f32 %v5105_v4, %v1420_v45  ;;  %v3024_v54 = vrot.slane %v4357_v35, %v5425_v2 }
 0x28c   :  { %v4361_v60 = vpop.eup %4360  ;;  %v1989_v52 = vadd.f32 1.0, %v4359_v34  ;;  %v1488_v44 = vadd.f32 %v5105_v4, %v1292_v1  ;;  %v2709_v8 = vsel %vm2546_vm12, %v2708_v59, %v2704_v3  ;;  %4386 = vpow2.f32 %v3271_v53 }
 0x28d   :  { %v5851_v7 = vpop.eup %4362  ;;  %v1991_v38 = vadd.f32 1.0, %v4361_v60  ;;  %v3274_v57 = vmul.f32 -1.442695, %v1552_v32  ;;  %v3029_v3 = vrot.slane %v5789_v12, %v5536_v51 }
 0x28e   :  { %v4365_v37 = vpop.eup %4364  ;;  %4388 = vrcp.f32 %v1989_v52  ;;  %v1290_v14 = vpop.xlane.xlu0 %1289  ;;  %v3210_v30 = vmul.f32 -1.442695, %v1488_v44  ;;  %v2057_v52 = vadd.f32 1.0, %v4355_v56 }
 0x28f   :  { %v4367_v47 = vpop.eup %4366  ;;  %4390 = vpow2.f32 %v3208_v41  ;;  %v1418_v15 = vpop.xlane.xlu1 %1417  ;;  %v1487_v43 = vadd.f32 %v5105_v4, %v1290_v14  ;;  %v3019_v42 = vrot.slane %v4365_v37, %v5449_v49 }
 0x290   :  { %v4369_v22 = vpop.eup %4368  ;;  %4392 = vpow2.f32 %v3272_v25  ;;  %v1551_v63 = vadd.f32 %v5105_v4, %v1418_v15 }
 0x291   :  { %v5857_v28 = vpop.eup %4370  ;;  %v2713_v20 = vrot.slane %v4369_v22, %v5536_v51  ;;  %4394 = vpow2.f32 %v3207_v61  ;;  %v3020_v13 = vsel %vm2539_vm11, %v3019_v42, %v5829_v16  ;;  %v3209_v45 = vmul.f32 -1.442695, %v1487_v43 }
 0x292   :  { %v4373_v59 = vpop.eup %4372  ;;  %4396 = vrcp.f32 %v1991_v38  ;;  %v3273_v53 = vmul.f32 -1.442695, %v1551_v63  ;;  %v1294_v34 = vpop.xlane.xlu0 %1293  ;;  %v3025_v41 = vsel %vm2546_vm12, %v3024_v54, %v3020_v13  ;;  %v3034_v38 = vrot.slane %v5780_v26, %v5533_v10 }
 0x293   :  { %v4375_v25 = vpop.eup %4374  ;;  %4398 = vpow2.f32 %v3210_v30  ;;  %v1296_v35 = vpop.xlane.xlu1 %1295  ;;  %v1489_v1 = vadd.f32 %v5105_v4, %v1294_v34  ;;  %v2714_v18 = vsel %vm2553_vm13, %v2713_v20, %v2709_v8  ;;  %v3030_v37 = vsel %vm2553_vm13, %v3029_v3, %v3025_v41 }
 0x294   :  { %v4377_v60 = vpop.eup %4376  ;;  %4400 = vpow2.f32 %v3274_v57  ;;  %v1490_v16 = vadd.f32 %v5105_v4, %v1296_v35  ;;  %v2719_v44 = vsel %vm2560_vm14, %v2718_v29, %v2714_v18  ;;  %v5878_v42 = vsel %vm2560_vm14, %v3034_v38, %v3030_v37 }
 0x295   :  { %v5871_v32 = vpop.eup %4378  ;;  %v1993_v61 = vadd.f32 1.0, %v4377_v60  ;;  %4402 = vpow2.f32 %v3273_v53  ;;  %v3211_v12 = vmul.f32 -1.442695, %v1489_v1  ;;  %v2059_v57 = vadd.f32 1.0, %v4375_v25 }
 0x296   :  { %v4381_v8 = vpop.eup %4380  ;;  %4404 = vpow2.f32 %v3209_v45  ;;  %v3212_v14 = vmul.f32 -1.442695, %v1490_v16  ;;  %v1422_v30 = vpop.xlane.xlu0 %1421  ;;  %v5883_v26 = vsel %vm3117_vm15, %v2719_v44, %v5723_v23  ;;  %v3043_v34 = vrot.slane %v5807_v39, %v5209_v0 }
 0x297   :  { %v4383_v56 = vpop.eup %4382  ;;  %4406 = vrcp.f32 %v1993_v61  ;;  %v1424_v15 = vpop.xlane.xlu1 %1423  ;;  %v1553_v43 = vadd.f32 %v5105_v4, %v1422_v30  ;;  %v1996_v41 = vadd.f32 1.0, %v4367_v47  ;;  %v2723_v23 = vrot.slane %v4381_v8, %v5219_v50 }
 0x298   :  { %v4385_v22 = vpop.eup %4384  ;;  %4408 = vrcp.f32 %v2057_v52  ;;  %v1554_v63 = vadd.f32 %v5105_v4, %v1424_v15  ;;  %v3039_v54 = vrot.slane %v4383_v56, %v5219_v50  ;;  %v2060_v4 = vadd.f32 1.0, %v4373_v59 }
 0x299   :  { %v1995_v29 = vadd.f32 1.0, %v4385_v22  ;;  %4410 = vpow2.f32 %v3212_v14  ;;  %v4387_v20 = vpop.eup %4386  ;;  %v3275_v53 = vmul.f32 -1.442695, %v1553_v43  ;;  %v3048_v3 = vrot.slane %v5834_v58, %v5244_v33 }
 0x29a   :  { %4412 = vpow2.f32 %v3211_v12  ;;  %v3276_v13 = vmul.f32 -1.442695, %v1554_v63  ;;  %v3044_v1 = vsel %vm2462_vm0, %v3043_v34, %v3039_v54  ;;  %v2061_v52 = vadd.f32 1.0, %v4387_v20 }
 0x29b   :  { %v4389_v45 = vpop.eup %4388  ;;  %4414 = vrcp.f32 %v1995_v29  ;;  %v2727_v47 = vrot.slane %v5802_v24, %v5209_v0  ;;  %v3049_v50 = vsel %vm2469_vm1, %v3048_v3, %v3044_v1  ;;  %v3053_v58 = vrot.slane %v5831_v19, %v5215_v36 }
 0x29c   :  { %v4391_v25 = vpop.eup %4390  ;;  %4416 = vrcp.f32 %v2059_v57  ;;  %v2732_v60 = vrot.slane %v4389_v45, %v5244_v33  ;;  %v2737_v8 = vrot.slane %v5823_v5, %v5215_v36  ;;  %v3058_v19 = vrot.slane %v5851_v7, %v5257_v46 }
 0x29d   :  { %v4393_v35 = vpop.eup %4392  ;;  %4418 = vpow2.f32 %v3276_v13  ;;  %v1998_v59 = vadd.f32 1.0, %v4391_v25  ;;  %v2728_v33 = vsel %vm2462_vm0, %v2727_v47, %v2723_v23  ;;  %v3054_v12 = vsel %vm2476_vm2, %v3053_v58, %v3049_v50 }
 0x29e   :  { %v4395_v18 = vpop.eup %4394  ;;  %4420 = vpow2.f32 %v3275_v53  ;;  %v2062_v61 = vadd.f32 1.0, %v4393_v35  ;;  %v2733_v0 = vsel %vm2469_vm1, %v2732_v60, %v2728_v33  ;;  %v2747_v36 = vrot.slane %v5836_v17, %v5250_v40 }
 0x29f   :  { %v4397_v39 = vpop.eup %4396  ;;  %4422 = vrcp.f32 %v1996_v41  ;;  %v1997_v16 = vadd.f32 1.0, %v4395_v18  ;;  %v2738_v5 = vsel %vm2476_vm2, %v2737_v8, %v2733_v0  ;;  %v3059_v29 = vsel %vm2483_vm3, %v3058_v19, %v3054_v12 }
 0x2a0   :  { %v4399_v44 = vpop.eup %4398  ;;  %4424 = vrcp.f32 %v2060_v4  ;;  %v2742_v24 = vrot.slane %v4397_v39, %v5257_v46  ;;  %v3063_v46 = vrot.slane %v5838_v55, %v5250_v40  ;;  %v2757_v55 = vrot.slane %v5857_v28, %v5260_v62 }
 0x2a1   :  { %v4401_v37 = vpop.eup %4400  ;;  %4426 = vrcp.f32 %v1997_v16  ;;  %v2000_v30 = vadd.f32 1.0, %v4399_v44  ;;  %v3073_v39 = vrot.slane %v5871_v32, %v5260_v62  ;;  %vm3119_vm0 = vcmask 1043459  }
 0x2a2   :  { %v4403_v38 = vpop.eup %4402  ;;  %4428 = vrcp.f32 %v2061_v52  ;;  %v2743_v63 = vsel %vm2483_vm3, %v2742_v24, %v2738_v5  ;;  %v2064_v7 = vadd.f32 1.0, %v4401_v37  ;;  %v3064_v41 = vsel %vm2490_vm4, %v3063_v46, %v3059_v29 }
 0x2a3   :  { %v4405_v14 = vpop.eup %4404  ;;  %4430 = vrcp.f32 %v1998_v59  ;;  %v2063_v56 = vadd.f32 1.0, %v4403_v38  ;;  %v2748_v34 = vsel %vm2490_vm4, %v2747_v36, %v2743_v63  ;;  %vm3121_vm1 = vcmask 1044484  }
 0x2a4   :  { %v4407_v15 = vpop.eup %4406  ;;  %4432 = vrcp.f32 %v2062_v61  ;;  %v1999_v43 = vadd.f32 1.0, %v4405_v14  ;;  %vm3123_vm2 = vcmask 1045509   ;;  %vm3125_vm3 = vcmask 1046534  }
 0x2a5   :  { %v4409_v22 = vpop.eup %4408  ;;  %4434 = vrcp.f32 %v2063_v56  ;;  %v2752_v54 = vrot.slane %v4407_v15, %v5271_v6  ;;  %vm3127_vm4 = vcmask 1047559  }
 0x2a6   :  { %v4411_v57 = vpop.eup %4410  ;;  %4436 = vrcp.f32 %v1999_v43  ;;  %v3068_v4 = vrot.slane %v4409_v22, %v5271_v6 }
 0x2a7   :  { %v4413_v20 = vpop.eup %4412  ;;  %4438 = vrcp.f32 %v2000_v30  ;;  %v2002_v13 = vadd.f32 1.0, %v4411_v57  ;;  %v2753_v35 = vsel %vm2497_vm5, %v2752_v54, %v2748_v34 }
 0x2a8   :  { %v4415_v53 = vpop.eup %4414  ;;  %v2001_v17 = vadd.f32 1.0, %v4413_v20  ;;  %v3069_v60 = vsel %vm2497_vm5, %v3068_v4, %v3064_v41  ;;  %v2758_v6 = vsel %vm2504_vm6, %v2757_v55, %v2753_v35 }
 0x2a9   :  { %v4417_v45 = vpop.eup %4416  ;;  %4440 = vrcp.f32 %v2002_v13  ;;  %v2762_v23 = vrot.slane %v4415_v53, %v5375_v11  ;;  %v3074_v61 = vsel %vm2504_vm6, %v3073_v39, %v3069_v60 }
 0x2aa   :  { %v4419_v25 = vpop.eup %4418  ;;  %4442 = vrcp.f32 %v2001_v17  ;;  %v3078_v59 = vrot.slane %v4417_v45, %v5375_v11 }
 0x2ab   :  { %v4421_v40 = vpop.eup %4420  ;;  %4444 = vrcp.f32 %v2064_v7  ;;  %v2066_v1 = vadd.f32 1.0, %v4419_v25  ;;  %v2763_v16 = vsel %vm2511_vm7, %v2762_v23, %v2758_v6 }
 0x2ac   :  { %v4423_v18 = vpop.eup %4422  ;;  %v2065_v3 = vadd.f32 1.0, %v4421_v40  ;;  %v3079_v11 = vsel %vm2511_vm7, %v3078_v59, %v3074_v61 }
 0x2ad   :  { %v4425_v52 = vpop.eup %4424  ;;  %4446 = vrcp.f32 %v2066_v1  ;;  %v2767_v44 = vrot.slane %v4423_v18, %v5263_v27 }
 0x2ae   :  { %v4427_v47 = vpop.eup %4426  ;;  %4448 = vrcp.f32 %v2065_v3  ;;  %v3083_v0 = vrot.slane %v4425_v52, %v5263_v27 }
 0x2af   :  { %v4429_v28 = vpop.eup %4428  ;;  %v2772_v50 = vrot.slane %v4427_v47, %v5439_v48  ;;  %v2768_v62 = vsel %vm2518_vm8, %v2767_v44, %v2763_v16 }
 0x2b0   :  { %v4431_v37 = vpop.eup %4430  ;;  %v3088_v33 = vrot.slane %v4429_v28, %v5439_v48  ;;  %v3084_v56 = vsel %vm2518_vm8, %v3083_v0, %v3079_v11 }
 0x2b1   :  { %v4433_v58 = vpop.eup %4432  ;;  %v2773_v38 = vsel %vm2525_vm9, %v2772_v50, %v2768_v62  ;;  %v2777_v24 = vrot.slane %v4431_v37, %v5320_v9 }
 0x2b2   :  { %v4435_v32 = vpop.eup %4434  ;;  %v3089_v48 = vsel %vm2525_vm9, %v3088_v33, %v3084_v56  ;;  %v3093_v5 = vrot.slane %v4433_v58, %v5320_v9 }
 0x2b3   :  { %v4437_v8 = vpop.eup %4436  ;;  %v2778_v30 = vsel %vm2532_vm10, %v2777_v24, %v2773_v38  ;;  %v3098_v43 = vrot.slane %v4435_v32, %v5449_v49 }
 0x2b4   :  { %v4439_v14 = vpop.eup %4438  ;;  %v2782_v12 = vrot.slane %v4437_v8, %v5449_v49  ;;  %v3094_v29 = vsel %vm2532_vm10, %v3093_v5, %v3089_v48 }
 0x2b5   :  { %v2787_v36 = vrot.slane %v4439_v14, %v5425_v2  ;;  %v3099_v49 = vsel %vm2539_vm11, %v3098_v43, %v3094_v29 }
 0x2b6   :  { %v4441_v15 = vpop.eup %4440  ;;  %v2783_v19 = vsel %vm2539_vm11, %v2782_v12, %v2778_v30 }
 0x2b7   :  { %v4443_v22 = vpop.eup %4442  ;;  %v2797_v27 = vrot.slane %v4441_v15, %v5533_v10  ;;  %v2788_v54 = vsel %vm2546_vm12, %v2787_v36, %v2783_v19 }
 0x2b8   :  { %v4445_v57 = vpop.eup %4444  ;;  %v2792_v63 = vrot.slane %v4443_v22, %v5536_v51 }
 0x2b9   :  { %v3103_v53 = vrot.slane %v4445_v57, %v5425_v2 }
 0x2ba   :  { %v4447_v20 = vpop.eup %4446  ;;  %v2793_v46 = vsel %vm2553_vm13, %v2792_v63, %v2788_v54 }
 0x2bb   :  { %v4449_v7 = vpop.eup %4448  ;;  %v2798_v13 = vsel %vm2560_vm14, %v2797_v27, %v2793_v46  ;;  %v3113_v9 = vrot.slane %v4447_v20, %v5533_v10  ;;  %v3104_v34 = vsel %vm2546_vm12, %v3103_v53, %v3099_v49 }
 0x2bc   :  { %v3108_v17 = vrot.slane %v4449_v7, %v5536_v51  ;;  %v3120_v45 = vsel %vm3119_vm0, %v2798_v13, %v5883_v26 }
 0x2bd   :  { %v3122_v41 = vsel %vm3121_vm1, %v5569_v21, %v3120_v45 }
 0x2be   :  { %v3109_v25 = vsel %vm2553_vm13, %v3108_v17, %v3104_v34  ;;  %v3124_v4 = vsel %vm3123_vm2, %v5719_v31, %v3122_v41 }
 0x2bf   :  { %v3114_v2 = vsel %vm2560_vm14, %v3113_v9, %v3109_v25  ;;  %v3126_v10 = vsel %vm3125_vm3, %v5878_v42, %v3124_v4 }
 0x2c0   :  { %v3128_v51 = vsel %vm3127_vm4, %v3114_v2, %v3126_v10 }
 0x2c1   :  { %3130 = vst [vmem:[#allocation8] sm:$0xff] %v3128_v51 }
 0x2c2   :  { %4504 = shalt.err (!%p4501_p0)
}
 0x2c3   :  { %3140 = dma.vmem_to_hbm [thread:$0]  %s3138_s13, 128, %s5969_s5, [#allocation5]  }
 0x2c4   :  { %4517 = dma.done.wait [#allocation5], 128  }
 0x2c5   :  { %4518 = vsyncadd [#allocation5], 4294967168 }
 0x2c6   :  { %3144 = vsyncpa [#allocation4], 1 }
 0x2c7   :  { %3145 = vsyncpa [#allocation7], 1 }
 0x2c8   :  { %3146 = vsyncpa [#allocation5], 1 }

</bundles_post_ra>
